<compile_context>
chip_gen: v7x
topology: tpu7x:2x2x1
jax: 0.10.0
libtpu: 0.0.40
codegen_flags: <defaults>
</compile_context>

<pallas_src>
import functools
import math

import jax
import jax.numpy as jnp
from jax.experimental import pallas as pl
from jax.experimental.pallas import tpu as pltpu

EPS = 1e-5


# ---------------------------------------------------------------------------
# Plain-JAX glue: bilinear grid_sample (align_corners=False, zeros padding)
# expressed as one-hot matmuls (MXU-friendly, avoids slow XLA gather).
# ---------------------------------------------------------------------------
# TODO(synk): grid_sample is a data-dependent gather; kept as wrapper-level
# one-hot matmuls rather than a Pallas kernel.
def grid_sample_bilinear(y_nchw, grid_xy):
    """torch.F.grid_sample(y, grid, bilinear, padding_mode='zeros',
    align_corners=False).  grid_xy: (B, Ho, Wo, 2) with (x, y) in [-1, 1].
    Returns NHWC (B, Ho, Wo, C)."""
    B, C, Hi, Wi = y_nchw.shape
    Ho, Wo = grid_xy.shape[1], grid_xy.shape[2]
    gx = grid_xy[..., 0]
    gy = grid_xy[..., 1]
    ix = ((gx + 1.0) * Wi - 1.0) * 0.5
    iy = ((gy + 1.0) * Hi - 1.0) * 0.5
    ix0 = jnp.floor(ix)
    iy0 = jnp.floor(iy)
    wx1 = ix - ix0
    wy1 = iy - iy0
    corners = ((iy0, ix0, (1.0 - wy1) * (1.0 - wx1)),
               (iy0, ix0 + 1.0, (1.0 - wy1) * wx1),
               (iy0 + 1.0, ix0, wy1 * (1.0 - wx1)),
               (iy0 + 1.0, ix0 + 1.0, wy1 * wx1))

    p_idx = jnp.arange(Hi * Wi, dtype=jnp.int32)
    m = jnp.zeros((B, Ho * Wo, Hi * Wi), jnp.float32)
    for iy_, ix_, w in corners:
        valid = (ix_ >= 0) & (ix_ <= Wi - 1) & (iy_ >= 0) & (iy_ <= Hi - 1)
        fi = (jnp.clip(iy_, 0, Hi - 1).astype(jnp.int32) * Wi
              + jnp.clip(ix_, 0, Wi - 1).astype(jnp.int32)).reshape(B, Ho * Wo)
        wv = (w * valid.astype(jnp.float32)).reshape(B, Ho * Wo)
        m = m + (fi[..., None] == p_idx) * wv[..., None]

    y_flat = y_nchw.reshape(B, C, Hi * Wi).astype(jnp.float32)
    out = jnp.einsum("bqp,bcp->bqc", m, y_flat,
                     precision=jax.lax.Precision.HIGHEST)
    return out.reshape(B, Ho, Wo, C)


# ---------------------------------------------------------------------------
# Weight preparation (constant-folded under jit: params are compile constants)
# ---------------------------------------------------------------------------
def _fold_conv_bn(w, b, bn):
    """Fold conv bias + eval-mode BatchNorm into the conv weight/bias."""
    gamma, beta, mean, var = bn
    s = gamma * jax.lax.rsqrt(var + EPS)
    return w * s[:, None, None, None], (b - mean) * s + beta


def _toeplitz_taps(w_eff, width):
    """(Co, Ci, K, K) conv weight -> (K, width*Ci, width*Co) row-tap matrices.

    Tap i maps packed input row (h+i-pad) -> packed output row h; the K
    horizontal taps and the width zero-padding are folded into a block-Toeplitz
    band, so the conv is K lane-dense MXU matmuls."""
    co, ci, k, _ = w_eff.shape
    pad = k // 2
    taps = []
    for i in range(k):
        t = jnp.zeros((width * ci, width * co), jnp.float32)
        for j in range(k):
            t = t + jnp.kron(
                jnp.eye(width, width, k=pad - j, dtype=jnp.float32),
                w_eff[:, :, i, j].T)
        taps.append(t)
    return jnp.stack(taps, axis=0)


def _blockdiag_1x1(w2d, width):
    """(Co, Ci) 1x1-conv weight -> (width*Ci, width*Co) block-diag matmul."""
    return jnp.kron(jnp.eye(width, dtype=jnp.float32), w2d.T)


def _tile_bias(b, width):
    return jnp.tile(b, width).reshape(1, -1).astype(jnp.float32)


def _round_up(v, m):
    return -(-v // m) * m


# ---------------------------------------------------------------------------
# The fused Pallas kernel: whole batch in one invocation, everything in VMEM
# ---------------------------------------------------------------------------
def _refiner_kernel(M, hp, H, ksize, pad, base, n_blocks, B, d_ref, *refs):
    *w_refs, out_ref, act_ref = refs
    nl = act_ref.shape[1]
    scr_rows = act_ref.shape[0]

    def conv_block(tap_fn, t_ref, b1_ref, wd_ref, b2_ref):
        # KxK conv = K vertical-tap matmuls against block-Toeplitz weights.
        # Accumulator seeded by tap 0 (no zeros fill); BN folded into weights.
        acc = jnp.dot(tap_fn(0).astype(jnp.bfloat16), t_ref[0],
                      preferred_element_type=jnp.float32)
        for i in range(1, ksize):
            acc = acc + jnp.dot(tap_fn(i).astype(jnp.bfloat16), t_ref[i],
                                preferred_element_type=jnp.float32)
        h = jnp.maximum(acc + b1_ref[...], 0.0)
        return (jnp.dot(h.astype(jnp.bfloat16), wd_ref[...],
                        preferred_element_type=jnp.float32) + b2_ref[...])

    # Zero only the scratch rows that act as padding but are never stored to.
    act_ref[0:base + pad, :] = jnp.zeros((base + pad, nl), act_ref.dtype)
    if scr_rows > base + pad + M:
        act_ref[base + pad + M:, :] = jnp.zeros(
            (scr_rows - base - pad - M, nl), act_ref.dtype)

    # block1: taps slice the interleaved height-padded packed input directly.
    z = conv_block(lambda i: d_ref[i:i + M, :], *w_refs[0:4])

    def store_act(zval):
        # Main store is sublane-aligned (base + pad is a multiple of 8).
        act_ref[base + pad:base + pad + M, :] = zval.astype(act_ref.dtype)
        # Re-zero the 2*pad inter-image garbage rows so they act as conv pad.
        for b in range(B):
            r0 = base + pad + b * hp + H
            act_ref[r0:r0 + 2 * pad, :] = jnp.zeros((2 * pad, nl),
                                                    act_ref.dtype)

    hidden_tap = lambda i: act_ref[base + i:base + i + M, :]
    for blk in range(1, n_blocks):
        store_act(z)
        z = conv_block(hidden_tap, *w_refs[4 * blk:4 * blk + 4])

    # Last block's conv2 already has the 1x1 out_conv folded in (128 lanes).
    out_ref[...] = z.astype(out_ref.dtype)


# ---------------------------------------------------------------------------
# ConvRefiner.forward (defaults: no displacement_emb / local_correlation)
# ---------------------------------------------------------------------------
# TODO(synk): displacement_emb / local_correlation / no_support_fm branches are
# off in the default config and are not implemented here.
def conv_refiner_forward(x, y, flow, params):
    B, C, H, W = x.shape
    ksize = params["kernel_size"]
    pad = ksize // 2
    hid = params["hidden_dim"]
    out_dim = params["out_dim"]
    blocks = params["blocks"]
    n_blocks = len(blocks)
    hp = H + 2 * pad            # padded rows per image
    M = B * hp                  # matmul M dim: batch folded into rows

    # d = cat(x, x_hat), x_hat = grid_sample(y, flow)
    x_hat = grid_sample_bilinear(y, jnp.transpose(flow, (0, 2, 3, 1)))  # NHWC
    d = jnp.concatenate([jnp.transpose(x, (0, 2, 3, 1)), x_hat], axis=-1)
    cin = d.shape[-1]

    # Pad channel counts so packed lane widths are multiples of 128 (W=16).
    cin_p = _round_up(cin, 8)
    out_p = _round_up(out_dim, 8)
    if cin_p != cin:
        d = jnp.pad(d, ((0, 0), (0, 0), (0, 0), (0, cin_p - cin)))

    # Interleaved height-padded packing: per-image blocks of hp rows stacked,
    # plus a zero tail so tap slices of M rows stay in-bounds.
    d_blocks = jnp.pad(d.reshape(B, H, W * cin_p), ((0, 0), (pad, pad), (0, 0)))
    rows_in = _round_up(M + ksize - 1, 8)
    d_pack = jnp.pad(d_blocks.reshape(M, W * cin_p),
                     ((0, rows_in - M), (0, 0)))

    # Lane-dense weights; BN folded into conv1, out_conv folded into last conv2.
    ops = []
    for bi, blk in enumerate(blocks):
        w1, b1 = _fold_conv_bn(blk["conv1_w"], blk["conv1_b"], blk["bn"])
        if bi == 0 and cin_p != cin:
            w1 = jnp.pad(w1, ((0, 0), (0, cin_p - cin), (0, 0), (0, 0)))
        ops.append(_toeplitz_taps(w1, W).astype(jnp.bfloat16))
        ops.append(_tile_bias(b1, W))
        w2 = blk["conv2_w"][:, :, 0, 0]
        b2 = blk["conv2_b"]
        if bi == n_blocks - 1:
            # Exact fold: out_conv(conv2(h)) = (Wo@W2) h + (Wo@b2 + bo).
            wo = params["out_w"][:, :, 0, 0]
            w2 = wo @ w2
            b2 = wo @ b2 + params["out_b"]
            w2 = jnp.pad(w2, ((0, out_p - out_dim), (0, 0)))
            b2 = jnp.pad(b2, ((0, out_p - out_dim),))
        ops.append(_blockdiag_1x1(w2, W).astype(jnp.bfloat16))
        ops.append(_tile_bias(b2, W))

    base = (-pad) % 8                                   # aligned interior store
    scr_rows = _round_up(base + M + ksize - 1, 8)

    def _full_spec(a):
        zeros = (0,) * a.ndim
        return pl.BlockSpec(a.shape, lambda i, _z=zeros: _z)

    kernel = functools.partial(_refiner_kernel, M, hp, H, ksize, pad, base,
                               n_blocks, B)
    out_packed = pl.pallas_call(
        kernel,
        out_shape=jax.ShapeDtypeStruct((M, W * out_p), jnp.float32),
        grid=(1,),
        in_specs=[pl.BlockSpec((rows_in, W * cin_p), lambda i: (0, 0))]
                 + [_full_spec(a) for a in ops],
        out_specs=pl.BlockSpec((M, W * out_p), lambda i: (0, 0)),
        scratch_shapes=[pltpu.VMEM((scr_rows, W * hid), jnp.float32)],
        compiler_params=pltpu.CompilerParams(
            dimension_semantics=("arbitrary",)),
    )(d_pack, *ops)

    # Drop the inter-image garbage rows and the zero-padded output channels.
    out = out_packed.reshape(B, hp, W, out_p)[:, :H, :, :out_dim]
    out_nchw = jnp.transpose(out, (0, 3, 1, 2))
    certainty, displacement = out_nchw[:, :-2], out_nchw[:, -2:]
    return certainty, displacement


# ---------------------------------------------------------------------------
# Parameters (deterministic, eval-mode BatchNorm running stats)
# ---------------------------------------------------------------------------
def make_refiner_params(key, in_dim=6, hidden_dim=16, out_dim=2,
                        kernel_size=5, hidden_blocks=3):
    keys = iter(jax.random.split(key, 64))

    def conv(cout, cin, k):
        fan_in = cin * k * k
        w = jax.random.normal(next(keys), (cout, cin, k, k), jnp.float32)
        w = w / math.sqrt(fan_in)
        b = 0.05 * jax.random.normal(next(keys), (cout,), jnp.float32)
        return w, b

    def bn(c):
        return (jax.random.uniform(next(keys), (c,), jnp.float32, 0.5, 1.5),
                0.1 * jax.random.normal(next(keys), (c,), jnp.float32),
                0.1 * jax.random.normal(next(keys), (c,), jnp.float32),
                jax.random.uniform(next(keys), (c,), jnp.float32, 0.5, 1.5))

    def block(cin, cout):
        w1, b1 = conv(cout, cin, kernel_size)
        w2, b2 = conv(cout, cout, 1)
        return {"conv1_w": w1, "conv1_b": b1, "bn": bn(cout),
                "conv2_w": w2, "conv2_b": b2}

    blocks = [block(in_dim, hidden_dim)]
    for _ in range(hidden_blocks):
        blocks.append(block(hidden_dim, hidden_dim))
    wo, bo = conv(out_dim, hidden_dim, 1)
    return {"blocks": blocks, "out_w": wo, "out_b": bo,
            "hidden_dim": hidden_dim, "out_dim": out_dim,
            "kernel_size": kernel_size}


# ---------------------------------------------------------------------------
# Pure-JAX reference (for a loose numerical sanity check)
# ---------------------------------------------------------------------------
def _reference_forward(x, y, flow, params):
    x_hat = grid_sample_bilinear(y, jnp.transpose(flow, (0, 2, 3, 1)))
    d = jnp.concatenate([jnp.transpose(x, (0, 2, 3, 1)), x_hat], axis=-1)
    d = jnp.transpose(d, (0, 3, 1, 2))

    def conv(z, w, b, p):
        o = jax.lax.conv_general_dilated(
            z, w, (1, 1), [(p, p), (p, p)],
            dimension_numbers=("NCHW", "OIHW", "NCHW"),
            precision=jax.lax.Precision.HIGHEST)
        return o + b[None, :, None, None]

    for blk in params["blocks"]:
        k = blk["conv1_w"].shape[-1]
        z = conv(d, blk["conv1_w"], blk["conv1_b"], k // 2)
        gamma, beta, mean, var = blk["bn"]
        z = ((z - mean[None, :, None, None])
             * (gamma * jax.lax.rsqrt(var + EPS))[None, :, None, None]
             + beta[None, :, None, None])
        z = jnp.maximum(z, 0.0)
        d = conv(z, blk["conv2_w"], blk["conv2_b"], 0)
    d = conv(d, params["out_w"], params["out_b"], 0)
    return d[:, :-2], d[:, -2:]


if __name__ == "__main__":
    B, C, H, W = 2, 3, 16, 16          # in_dim = 2*C = 6 (ConvRefiner default)
    root = jax.random.PRNGKey(0)
    kx, ky, kf, kp = jax.random.split(root, 4)
    x = jax.random.normal(kx, (B, C, H, W), jnp.float32)
    y = jax.random.normal(ky, (B, C, H, W), jnp.float32)

    # coarse flow: identity sampling grid (align_corners=False) + perturbation
    ys = jnp.linspace(-1 + 1 / H, 1 - 1 / H, H)
    xs = jnp.linspace(-1 + 1 / W, 1 - 1 / W, W)
    gy, gx = jnp.meshgrid(ys, xs, indexing="ij")
    ident = jnp.stack([gx, gy], axis=0)[None]
    flow = ident + 0.05 * jax.random.normal(kf, (B, 2, H, W), jnp.float32)

    params = make_refiner_params(kp)

    fwd = jax.jit(lambda a, b_, f: conv_refiner_forward(a, b_, f, params))
    certainty, displacement = fwd(x, y, flow)
    jax.block_until_ready(displacement)

    assert certainty.shape == (B, 0, H, W), certainty.shape
    assert displacement.shape == (B, 2, H, W), displacement.shape
    assert bool(jnp.all(jnp.isfinite(displacement)))

    # loose check vs. plain-XLA reference (bf16 MXU operands -> generous tol)
    _, ref_disp = _reference_forward(x, y, flow, params)
    err = float(jnp.max(jnp.abs(displacement - ref_disp)))
    scale = float(jnp.max(jnp.abs(ref_disp)))
    assert err <= 0.1 * (1.0 + scale), (err, scale)

    print("KERNEL_OK")
</pallas_src>

<mosaic_0001>
module attributes {stable_mosaic.version = 11 : i64} {
  func.func @_refiner_kernel(%arg0: i32, %arg1: memref<48x128xf32, #tpu.memory_space<vmem>>, %arg2: memref<5x128x256xbf16, #tpu.memory_space<vmem>>, %arg3: memref<1x256xf32, #tpu.memory_space<vmem>>, %arg4: memref<256x256xbf16, #tpu.memory_space<vmem>>, %arg5: memref<1x256xf32, #tpu.memory_space<vmem>>, %arg6: memref<5x256x256xbf16, #tpu.memory_space<vmem>>, %arg7: memref<1x256xf32, #tpu.memory_space<vmem>>, %arg8: memref<256x256xbf16, #tpu.memory_space<vmem>>, %arg9: memref<1x256xf32, #tpu.memory_space<vmem>>, %arg10: memref<5x256x256xbf16, #tpu.memory_space<vmem>>, %arg11: memref<1x256xf32, #tpu.memory_space<vmem>>, %arg12: memref<256x256xbf16, #tpu.memory_space<vmem>>, %arg13: memref<1x256xf32, #tpu.memory_space<vmem>>, %arg14: memref<5x256x256xbf16, #tpu.memory_space<vmem>>, %arg15: memref<1x256xf32, #tpu.memory_space<vmem>>, %arg16: memref<256x128xbf16, #tpu.memory_space<vmem>>, %arg17: memref<1x128xf32, #tpu.memory_space<vmem>>, %arg18: memref<40x128xf32, #tpu.memory_space<vmem>>, %arg19: memref<56x256xf32, #tpu.memory_space<vmem>>) attributes {dimension_semantics = [#tpu.dimension_semantics<arbitrary>], iteration_bounds = array<i64: 1>, scalar_prefetch = 0 : i64, scratch_operands = 1 : i64, tpu.core_type = #tpu.core_type<tc>, window_params = [{pipeline_mode = #tpu.pipeline_mode<synchronous>, transform_indices = @transform_0, window_bounds = array<i64: 48, 128>}, {pipeline_mode = #tpu.pipeline_mode<synchronous>, transform_indices = @transform_1, window_bounds = array<i64: 5, 128, 256>}, {pipeline_mode = #tpu.pipeline_mode<synchronous>, transform_indices = @transform_2, window_bounds = array<i64: 1, 256>}, {pipeline_mode = #tpu.pipeline_mode<synchronous>, transform_indices = @transform_3, window_bounds = array<i64: 256, 256>}, {pipeline_mode = #tpu.pipeline_mode<synchronous>, transform_indices = @transform_4, window_bounds = array<i64: 1, 256>}, {pipeline_mode = #tpu.pipeline_mode<synchronous>, transform_indices = @transform_5, window_bounds = array<i64: 5, 256, 256>}, {pipeline_mode = #tpu.pipeline_mode<synchronous>, transform_indices = @transform_6, window_bounds = array<i64: 1, 256>}, {pipeline_mode = #tpu.pipeline_mode<synchronous>, transform_indices = @transform_7, window_bounds = array<i64: 256, 256>}, {pipeline_mode = #tpu.pipeline_mode<synchronous>, transform_indices = @transform_8, window_bounds = array<i64: 1, 256>}, {pipeline_mode = #tpu.pipeline_mode<synchronous>, transform_indices = @transform_9, window_bounds = array<i64: 5, 256, 256>}, {pipeline_mode = #tpu.pipeline_mode<synchronous>, transform_indices = @transform_10, window_bounds = array<i64: 1, 256>}, {pipeline_mode = #tpu.pipeline_mode<synchronous>, transform_indices = @transform_11, window_bounds = array<i64: 256, 256>}, {pipeline_mode = #tpu.pipeline_mode<synchronous>, transform_indices = @transform_12, window_bounds = array<i64: 1, 256>}, {pipeline_mode = #tpu.pipeline_mode<synchronous>, transform_indices = @transform_13, window_bounds = array<i64: 5, 256, 256>}, {pipeline_mode = #tpu.pipeline_mode<synchronous>, transform_indices = @transform_14, window_bounds = array<i64: 1, 256>}, {pipeline_mode = #tpu.pipeline_mode<synchronous>, transform_indices = @transform_15, window_bounds = array<i64: 256, 128>}, {pipeline_mode = #tpu.pipeline_mode<synchronous>, transform_indices = @transform_16, window_bounds = array<i64: 1, 128>}, {pipeline_mode = #tpu.pipeline_mode<synchronous>, transform_indices = @transform_17, window_bounds = array<i64: 40, 128>}]} {
    %cst = arith.constant 0.000000e+00 : f32
    %0 = vector.broadcast %cst : f32 to vector<8x256xf32>
    %c0 = arith.constant 0 : index
    %c0_0 = arith.constant 0 : index
    %1 = vector.load %arg19[%c0, %c0_0] : memref<56x256xf32, #tpu.memory_space<vmem>>, vector<8x256xf32>
    tpu.vector_store %arg19[%c0, %c0_0], %0 {strides = array<i32>} : memref<56x256xf32, #tpu.memory_space<vmem>>, vector<8x256xf32>,
    %cst_1 = arith.constant 0.000000e+00 : f32
    %2 = vector.broadcast %cst_1 : f32 to vector<8x256xf32>
    %c48 = arith.constant 48 : index
    %c0_2 = arith.constant 0 : index
    %3 = vector.load %arg19[%c48, %c0_2] : memref<56x256xf32, #tpu.memory_space<vmem>>, vector<8x256xf32>
    tpu.vector_store %arg19[%c48, %c0_2], %2 {strides = array<i32>} : memref<56x256xf32, #tpu.memory_space<vmem>>, vector<8x256xf32>,
    %c0_3 = arith.constant 0 : index
    %c0_4 = arith.constant 0 : index
    %4 = vector.load %arg1[%c0_3, %c0_4] : memref<48x128xf32, #tpu.memory_space<vmem>>, vector<40x128xf32>
    %5 = arith.truncf %4 : vector<40x128xf32> to vector<40x128xbf16>
    %c0_5 = arith.constant 0 : index
    %c0_6 = arith.constant 0 : index
    %c0_7 = arith.constant 0 : index
    %6 = vector.load %arg2[%c0_5, %c0_6, %c0_7] : memref<5x128x256xbf16, #tpu.memory_space<vmem>>, vector<1x128x256xbf16>
    %7 = vector.shape_cast %6 : vector<1x128x256xbf16> to vector<128x256xbf16>
    %cst_8 = arith.constant dense<0.000000e+00> : vector<40x256xf32>
    %8 = tpu.matmul %5, %7, %cst_8 {dimension_numbers = #tpu.dot_dimension_numbers<[1], [0], [0], [1], [0, 0, 1, 1], [], []>} : vector<40x128xbf16>, vector<128x256xbf16>, vector<40x256xf32> -> vector<40x256xf32>
    %c1 = arith.constant 1 : index
    %c0_9 = arith.constant 0 : index
    %9 = vector.load %arg1[%c1, %c0_9] : memref<48x128xf32, #tpu.memory_space<vmem>>, vector<40x128xf32>
    %10 = arith.truncf %9 : vector<40x128xf32> to vector<40x128xbf16>
    %c1_10 = arith.constant 1 : index
    %c0_11 = arith.constant 0 : index
    %c0_12 = arith.constant 0 : index
    %11 = vector.load %arg2[%c1_10, %c0_11, %c0_12] : memref<5x128x256xbf16, #tpu.memory_space<vmem>>, vector<1x128x256xbf16>
    %12 = vector.shape_cast %11 : vector<1x128x256xbf16> to vector<128x256xbf16>
    %cst_13 = arith.constant dense<0.000000e+00> : vector<40x256xf32>
    %13 = tpu.matmul %10, %12, %cst_13 {dimension_numbers = #tpu.dot_dimension_numbers<[1], [0], [0], [1], [0, 0, 1, 1], [], []>} : vector<40x128xbf16>, vector<128x256xbf16>, vector<40x256xf32> -> vector<40x256xf32>
    %14 = arith.addf %8, %13 : vector<40x256xf32>
    %c2 = arith.constant 2 : index
    %c0_14 = arith.constant 0 : index
    %15 = vector.load %arg1[%c2, %c0_14] : memref<48x128xf32, #tpu.memory_space<vmem>>, vector<40x128xf32>
    %16 = arith.truncf %15 : vector<40x128xf32> to vector<40x128xbf16>
    %c2_15 = arith.constant 2 : index
    %c0_16 = arith.constant 0 : index
    %c0_17 = arith.constant 0 : index
    %17 = vector.load %arg2[%c2_15, %c0_16, %c0_17] : memref<5x128x256xbf16, #tpu.memory_space<vmem>>, vector<1x128x256xbf16>
    %18 = vector.shape_cast %17 : vector<1x128x256xbf16> to vector<128x256xbf16>
    %cst_18 = arith.constant dense<0.000000e+00> : vector<40x256xf32>
    %19 = tpu.matmul %16, %18, %cst_18 {dimension_numbers = #tpu.dot_dimension_numbers<[1], [0], [0], [1], [0, 0, 1, 1], [], []>} : vector<40x128xbf16>, vector<128x256xbf16>, vector<40x256xf32> -> vector<40x256xf32>
    %20 = arith.addf %14, %19 : vector<40x256xf32>
    %c3 = arith.constant 3 : index
    %c0_19 = arith.constant 0 : index
    %21 = vector.load %arg1[%c3, %c0_19] : memref<48x128xf32, #tpu.memory_space<vmem>>, vector<40x128xf32>
    %22 = arith.truncf %21 : vector<40x128xf32> to vector<40x128xbf16>
    %c3_20 = arith.constant 3 : index
    %c0_21 = arith.constant 0 : index
    %c0_22 = arith.constant 0 : index
    %23 = vector.load %arg2[%c3_20, %c0_21, %c0_22] : memref<5x128x256xbf16, #tpu.memory_space<vmem>>, vector<1x128x256xbf16>
    %24 = vector.shape_cast %23 : vector<1x128x256xbf16> to vector<128x256xbf16>
    %cst_23 = arith.constant dense<0.000000e+00> : vector<40x256xf32>
    %25 = tpu.matmul %22, %24, %cst_23 {dimension_numbers = #tpu.dot_dimension_numbers<[1], [0], [0], [1], [0, 0, 1, 1], [], []>} : vector<40x128xbf16>, vector<128x256xbf16>, vector<40x256xf32> -> vector<40x256xf32>
    %26 = arith.addf %20, %25 : vector<40x256xf32>
    %c4 = arith.constant 4 : index
    %c0_24 = arith.constant 0 : index
    %27 = vector.load %arg1[%c4, %c0_24] : memref<48x128xf32, #tpu.memory_space<vmem>>, vector<40x128xf32>
    %28 = arith.truncf %27 : vector<40x128xf32> to vector<40x128xbf16>
    %c4_25 = arith.constant 4 : index
    %c0_26 = arith.constant 0 : index
    %c0_27 = arith.constant 0 : index
    %29 = vector.load %arg2[%c4_25, %c0_26, %c0_27] : memref<5x128x256xbf16, #tpu.memory_space<vmem>>, vector<1x128x256xbf16>
    %30 = vector.shape_cast %29 : vector<1x128x256xbf16> to vector<128x256xbf16>
    %cst_28 = arith.constant dense<0.000000e+00> : vector<40x256xf32>
    %31 = tpu.matmul %28, %30, %cst_28 {dimension_numbers = #tpu.dot_dimension_numbers<[1], [0], [0], [1], [0, 0, 1, 1], [], []>} : vector<40x128xbf16>, vector<128x256xbf16>, vector<40x256xf32> -> vector<40x256xf32>
    %32 = arith.addf %26, %31 : vector<40x256xf32>
    %c0_29 = arith.constant 0 : index
    %c0_30 = arith.constant 0 : index
    %33 = vector.load %arg3[%c0_29, %c0_30] : memref<1x256xf32, #tpu.memory_space<vmem>>, vector<1x256xf32>
    %34 = vector.broadcast %33 : vector<1x256xf32> to vector<40x256xf32>
    %35 = arith.addf %32, %34 : vector<40x256xf32>
    %cst_31 = arith.constant 0.000000e+00 : f32
    %36 = vector.broadcast %cst_31 : f32 to vector<40x256xf32>
    %37 = arith.maximumf %35, %36 : vector<40x256xf32>
    %38 = arith.truncf %37 : vector<40x256xf32> to vector<40x256xbf16>
    %c0_32 = arith.constant 0 : index
    %c0_33 = arith.constant 0 : index
    %39 = vector.load %arg4[%c0_32, %c0_33] : memref<256x256xbf16, #tpu.memory_space<vmem>>, vector<256x256xbf16>
    %cst_34 = arith.constant dense<0.000000e+00> : vector<40x256xf32>
    %40 = tpu.matmul %38, %39, %cst_34 {dimension_numbers = #tpu.dot_dimension_numbers<[1], [0], [0], [1], [0, 0, 1, 1], [], []>} : vector<40x256xbf16>, vector<256x256xbf16>, vector<40x256xf32> -> vector<40x256xf32>
    %c0_35 = arith.constant 0 : index
    %c0_36 = arith.constant 0 : index
    %41 = vector.load %arg5[%c0_35, %c0_36] : memref<1x256xf32, #tpu.memory_space<vmem>>, vector<1x256xf32>
    %42 = vector.broadcast %41 : vector<1x256xf32> to vector<40x256xf32>
    %43 = arith.addf %40, %42 : vector<40x256xf32>
    %c8 = arith.constant 8 : index
    %c0_37 = arith.constant 0 : index
    %44 = vector.load %arg19[%c8, %c0_37] : memref<56x256xf32, #tpu.memory_space<vmem>>, vector<40x256xf32>
    tpu.vector_store %arg19[%c8, %c0_37], %43 {strides = array<i32>} : memref<56x256xf32, #tpu.memory_space<vmem>>, vector<40x256xf32>,
    %cst_38 = arith.constant 0.000000e+00 : f32
    %45 = vector.broadcast %cst_38 : f32 to vector<4x256xf32>
    %c24 = arith.constant 24 : index
    %c0_39 = arith.constant 0 : index
    %46 = vector.load %arg19[%c24, %c0_39] : memref<56x256xf32, #tpu.memory_space<vmem>>, vector<4x256xf32>
    tpu.vector_store %arg19[%c24, %c0_39], %45 {strides = array<i32>} : memref<56x256xf32, #tpu.memory_space<vmem>>, vector<4x256xf32>,
    %cst_40 = arith.constant 0.000000e+00 : f32
    %47 = vector.broadcast %cst_40 : f32 to vector<4x256xf32>
    %c44 = arith.constant 44 : index
    %c0_41 = arith.constant 0 : index
    %48 = vector.load %arg19[%c44, %c0_41] : memref<56x256xf32, #tpu.memory_space<vmem>>, vector<4x256xf32>
    tpu.vector_store %arg19[%c44, %c0_41], %47 {strides = array<i32>} : memref<56x256xf32, #tpu.memory_space<vmem>>, vector<4x256xf32>,
    %c6 = arith.constant 6 : index
    %c0_42 = arith.constant 0 : index
    %49 = vector.load %arg19[%c6, %c0_42] : memref<56x256xf32, #tpu.memory_space<vmem>>, vector<40x256xf32>
    %50 = arith.truncf %49 : vector<40x256xf32> to vector<40x256xbf16>
    %c0_43 = arith.constant 0 : index
    %c0_44 = arith.constant 0 : index
    %c0_45 = arith.constant 0 : index
    %51 = vector.load %arg6[%c0_43, %c0_44, %c0_45] : memref<5x256x256xbf16, #tpu.memory_space<vmem>>, vector<1x256x256xbf16>
    %52 = vector.shape_cast %51 : vector<1x256x256xbf16> to vector<256x256xbf16>
    %cst_46 = arith.constant dense<0.000000e+00> : vector<40x256xf32>
    %53 = tpu.matmul %50, %52, %cst_46 {dimension_numbers = #tpu.dot_dimension_numbers<[1], [0], [0], [1], [0, 0, 1, 1], [], []>} : vector<40x256xbf16>, vector<256x256xbf16>, vector<40x256xf32> -> vector<40x256xf32>
    %c7 = arith.constant 7 : index
    %c0_47 = arith.constant 0 : index
    %54 = vector.load %arg19[%c7, %c0_47] : memref<56x256xf32, #tpu.memory_space<vmem>>, vector<40x256xf32>
    %55 = arith.truncf %54 : vector<40x256xf32> to vector<40x256xbf16>
    %c1_48 = arith.constant 1 : index
    %c0_49 = arith.constant 0 : index
    %c0_50 = arith.constant 0 : index
    %56 = vector.load %arg6[%c1_48, %c0_49, %c0_50] : memref<5x256x256xbf16, #tpu.memory_space<vmem>>, vector<1x256x256xbf16>
    %57 = vector.shape_cast %56 : vector<1x256x256xbf16> to vector<256x256xbf16>
    %cst_51 = arith.constant dense<0.000000e+00> : vector<40x256xf32>
    %58 = tpu.matmul %55, %57, %cst_51 {dimension_numbers = #tpu.dot_dimension_numbers<[1], [0], [0], [1], [0, 0, 1, 1], [], []>} : vector<40x256xbf16>, vector<256x256xbf16>, vector<40x256xf32> -> vector<40x256xf32>
    %59 = arith.addf %53, %58 : vector<40x256xf32>
    %c8_52 = arith.constant 8 : index
    %c0_53 = arith.constant 0 : index
    %60 = vector.load %arg19[%c8_52, %c0_53] : memref<56x256xf32, #tpu.memory_space<vmem>>, vector<40x256xf32>
    %61 = arith.truncf %60 : vector<40x256xf32> to vector<40x256xbf16>
    %c2_54 = arith.constant 2 : index
    %c0_55 = arith.constant 0 : index
    %c0_56 = arith.constant 0 : index
    %62 = vector.load %arg6[%c2_54, %c0_55, %c0_56] : memref<5x256x256xbf16, #tpu.memory_space<vmem>>, vector<1x256x256xbf16>
    %63 = vector.shape_cast %62 : vector<1x256x256xbf16> to vector<256x256xbf16>
    %cst_57 = arith.constant dense<0.000000e+00> : vector<40x256xf32>
    %64 = tpu.matmul %61, %63, %cst_57 {dimension_numbers = #tpu.dot_dimension_numbers<[1], [0], [0], [1], [0, 0, 1, 1], [], []>} : vector<40x256xbf16>, vector<256x256xbf16>, vector<40x256xf32> -> vector<40x256xf32>
    %65 = arith.addf %59, %64 : vector<40x256xf32>
    %c9 = arith.constant 9 : index
    %c0_58 = arith.constant 0 : index
    %66 = vector.load %arg19[%c9, %c0_58] : memref<56x256xf32, #tpu.memory_space<vmem>>, vector<40x256xf32>
    %67 = arith.truncf %66 : vector<40x256xf32> to vector<40x256xbf16>
    %c3_59 = arith.constant 3 : index
    %c0_60 = arith.constant 0 : index
    %c0_61 = arith.constant 0 : index
    %68 = vector.load %arg6[%c3_59, %c0_60, %c0_61] : memref<5x256x256xbf16, #tpu.memory_space<vmem>>, vector<1x256x256xbf16>
    %69 = vector.shape_cast %68 : vector<1x256x256xbf16> to vector<256x256xbf16>
    %cst_62 = arith.constant dense<0.000000e+00> : vector<40x256xf32>
    %70 = tpu.matmul %67, %69, %cst_62 {dimension_numbers = #tpu.dot_dimension_numbers<[1], [0], [0], [1], [0, 0, 1, 1], [], []>} : vector<40x256xbf16>, vector<256x256xbf16>, vector<40x256xf32> -> vector<40x256xf32>
    %71 = arith.addf %65, %70 : vector<40x256xf32>
    %c10 = arith.constant 10 : index
    %c0_63 = arith.constant 0 : index
    %72 = vector.load %arg19[%c10, %c0_63] : memref<56x256xf32, #tpu.memory_space<vmem>>, vector<40x256xf32>
    %73 = arith.truncf %72 : vector<40x256xf32> to vector<40x256xbf16>
    %c4_64 = arith.constant 4 : index
    %c0_65 = arith.constant 0 : index
    %c0_66 = arith.constant 0 : index
    %74 = vector.load %arg6[%c4_64, %c0_65, %c0_66] : memref<5x256x256xbf16, #tpu.memory_space<vmem>>, vector<1x256x256xbf16>
    %75 = vector.shape_cast %74 : vector<1x256x256xbf16> to vector<256x256xbf16>
    %cst_67 = arith.constant dense<0.000000e+00> : vector<40x256xf32>
    %76 = tpu.matmul %73, %75, %cst_67 {dimension_numbers = #tpu.dot_dimension_numbers<[1], [0], [0], [1], [0, 0, 1, 1], [], []>} : vector<40x256xbf16>, vector<256x256xbf16>, vector<40x256xf32> -> vector<40x256xf32>
    %77 = arith.addf %71, %76 : vector<40x256xf32>
    %c0_68 = arith.constant 0 : index
    %c0_69 = arith.constant 0 : index
    %78 = vector.load %arg7[%c0_68, %c0_69] : memref<1x256xf32, #tpu.memory_space<vmem>>, vector<1x256xf32>
    %79 = vector.broadcast %78 : vector<1x256xf32> to vector<40x256xf32>
    %80 = arith.addf %77, %79 : vector<40x256xf32>
    %cst_70 = arith.constant 0.000000e+00 : f32
    %81 = vector.broadcast %cst_70 : f32 to vector<40x256xf32>
    %82 = arith.maximumf %80, %81 : vector<40x256xf32>
    %83 = arith.truncf %82 : vector<40x256xf32> to vector<40x256xbf16>
    %c0_71 = arith.constant 0 : index
    %c0_72 = arith.constant 0 : index
    %84 = vector.load %arg8[%c0_71, %c0_72] : memref<256x256xbf16, #tpu.memory_space<vmem>>, vector<256x256xbf16>
    %cst_73 = arith.constant dense<0.000000e+00> : vector<40x256xf32>
    %85 = tpu.matmul %83, %84, %cst_73 {dimension_numbers = #tpu.dot_dimension_numbers<[1], [0], [0], [1], [0, 0, 1, 1], [], []>} : vector<40x256xbf16>, vector<256x256xbf16>, vector<40x256xf32> -> vector<40x256xf32>
    %c0_74 = arith.constant 0 : index
    %c0_75 = arith.constant 0 : index
    %86 = vector.load %arg9[%c0_74, %c0_75] : memref<1x256xf32, #tpu.memory_space<vmem>>, vector<1x256xf32>
    %87 = vector.broadcast %86 : vector<1x256xf32> to vector<40x256xf32>
    %88 = arith.addf %85, %87 : vector<40x256xf32>
    %c8_76 = arith.constant 8 : index
    %c0_77 = arith.constant 0 : index
    %89 = vector.load %arg19[%c8_76, %c0_77] : memref<56x256xf32, #tpu.memory_space<vmem>>, vector<40x256xf32>
    tpu.vector_store %arg19[%c8_76, %c0_77], %88 {strides = array<i32>} : memref<56x256xf32, #tpu.memory_space<vmem>>, vector<40x256xf32>,
    %cst_78 = arith.constant 0.000000e+00 : f32
    %90 = vector.broadcast %cst_78 : f32 to vector<4x256xf32>
    %c24_79 = arith.constant 24 : index
    %c0_80 = arith.constant 0 : index
    %91 = vector.load %arg19[%c24_79, %c0_80] : memref<56x256xf32, #tpu.memory_space<vmem>>, vector<4x256xf32>
    tpu.vector_store %arg19[%c24_79, %c0_80], %90 {strides = array<i32>} : memref<56x256xf32, #tpu.memory_space<vmem>>, vector<4x256xf32>,
    %cst_81 = arith.constant 0.000000e+00 : f32
    %92 = vector.broadcast %cst_81 : f32 to vector<4x256xf32>
    %c44_82 = arith.constant 44 : index
    %c0_83 = arith.constant 0 : index
    %93 = vector.load %arg19[%c44_82, %c0_83] : memref<56x256xf32, #tpu.memory_space<vmem>>, vector<4x256xf32>
    tpu.vector_store %arg19[%c44_82, %c0_83], %92 {strides = array<i32>} : memref<56x256xf32, #tpu.memory_space<vmem>>, vector<4x256xf32>,
    %c6_84 = arith.constant 6 : index
    %c0_85 = arith.constant 0 : index
    %94 = vector.load %arg19[%c6_84, %c0_85] : memref<56x256xf32, #tpu.memory_space<vmem>>, vector<40x256xf32>
    %95 = arith.truncf %94 : vector<40x256xf32> to vector<40x256xbf16>
    %c0_86 = arith.constant 0 : index
    %c0_87 = arith.constant 0 : index
    %c0_88 = arith.constant 0 : index
    %96 = vector.load %arg10[%c0_86, %c0_87, %c0_88] : memref<5x256x256xbf16, #tpu.memory_space<vmem>>, vector<1x256x256xbf16>
    %97 = vector.shape_cast %96 : vector<1x256x256xbf16> to vector<256x256xbf16>
    %cst_89 = arith.constant dense<0.000000e+00> : vector<40x256xf32>
    %98 = tpu.matmul %95, %97, %cst_89 {dimension_numbers = #tpu.dot_dimension_numbers<[1], [0], [0], [1], [0, 0, 1, 1], [], []>} : vector<40x256xbf16>, vector<256x256xbf16>, vector<40x256xf32> -> vector<40x256xf32>
    %c7_90 = arith.constant 7 : index
    %c0_91 = arith.constant 0 : index
    %99 = vector.load %arg19[%c7_90, %c0_91] : memref<56x256xf32, #tpu.memory_space<vmem>>, vector<40x256xf32>
    %100 = arith.truncf %99 : vector<40x256xf32> to vector<40x256xbf16>
    %c1_92 = arith.constant 1 : index
    %c0_93 = arith.constant 0 : index
    %c0_94 = arith.constant 0 : index
    %101 = vector.load %arg10[%c1_92, %c0_93, %c0_94] : memref<5x256x256xbf16, #tpu.memory_space<vmem>>, vector<1x256x256xbf16>
    %102 = vector.shape_cast %101 : vector<1x256x256xbf16> to vector<256x256xbf16>
    %cst_95 = arith.constant dense<0.000000e+00> : vector<40x256xf32>
    %103 = tpu.matmul %100, %102, %cst_95 {dimension_numbers = #tpu.dot_dimension_numbers<[1], [0], [0], [1], [0, 0, 1, 1], [], []>} : vector<40x256xbf16>, vector<256x256xbf16>, vector<40x256xf32> -> vector<40x256xf32>
    %104 = arith.addf %98, %103 : vector<40x256xf32>
    %c8_96 = arith.constant 8 : index
    %c0_97 = arith.constant 0 : index
    %105 = vector.load %arg19[%c8_96, %c0_97] : memref<56x256xf32, #tpu.memory_space<vmem>>, vector<40x256xf32>
    %106 = arith.truncf %105 : vector<40x256xf32> to vector<40x256xbf16>
    %c2_98 = arith.constant 2 : index
    %c0_99 = arith.constant 0 : index
    %c0_100 = arith.constant 0 : index
    %107 = vector.load %arg10[%c2_98, %c0_99, %c0_100] : memref<5x256x256xbf16, #tpu.memory_space<vmem>>, vector<1x256x256xbf16>
    %108 = vector.shape_cast %107 : vector<1x256x256xbf16> to vector<256x256xbf16>
    %cst_101 = arith.constant dense<0.000000e+00> : vector<40x256xf32>
    %109 = tpu.matmul %106, %108, %cst_101 {dimension_numbers = #tpu.dot_dimension_numbers<[1], [0], [0], [1], [0, 0, 1, 1], [], []>} : vector<40x256xbf16>, vector<256x256xbf16>, vector<40x256xf32> -> vector<40x256xf32>
    %110 = arith.addf %104, %109 : vector<40x256xf32>
    %c9_102 = arith.constant 9 : index
    %c0_103 = arith.constant 0 : index
    %111 = vector.load %arg19[%c9_102, %c0_103] : memref<56x256xf32, #tpu.memory_space<vmem>>, vector<40x256xf32>
    %112 = arith.truncf %111 : vector<40x256xf32> to vector<40x256xbf16>
    %c3_104 = arith.constant 3 : index
    %c0_105 = arith.constant 0 : index
    %c0_106 = arith.constant 0 : index
    %113 = vector.load %arg10[%c3_104, %c0_105, %c0_106] : memref<5x256x256xbf16, #tpu.memory_space<vmem>>, vector<1x256x256xbf16>
    %114 = vector.shape_cast %113 : vector<1x256x256xbf16> to vector<256x256xbf16>
    %cst_107 = arith.constant dense<0.000000e+00> : vector<40x256xf32>
    %115 = tpu.matmul %112, %114, %cst_107 {dimension_numbers = #tpu.dot_dimension_numbers<[1], [0], [0], [1], [0, 0, 1, 1], [], []>} : vector<40x256xbf16>, vector<256x256xbf16>, vector<40x256xf32> -> vector<40x256xf32>
    %116 = arith.addf %110, %115 : vector<40x256xf32>
    %c10_108 = arith.constant 10 : index
    %c0_109 = arith.constant 0 : index
    %117 = vector.load %arg19[%c10_108, %c0_109] : memref<56x256xf32, #tpu.memory_space<vmem>>, vector<40x256xf32>
    %118 = arith.truncf %117 : vector<40x256xf32> to vector<40x256xbf16>
    %c4_110 = arith.constant 4 : index
    %c0_111 = arith.constant 0 : index
    %c0_112 = arith.constant 0 : index
    %119 = vector.load %arg10[%c4_110, %c0_111, %c0_112] : memref<5x256x256xbf16, #tpu.memory_space<vmem>>, vector<1x256x256xbf16>
    %120 = vector.shape_cast %119 : vector<1x256x256xbf16> to vector<256x256xbf16>
    %cst_113 = arith.constant dense<0.000000e+00> : vector<40x256xf32>
    %121 = tpu.matmul %118, %120, %cst_113 {dimension_numbers = #tpu.dot_dimension_numbers<[1], [0], [0], [1], [0, 0, 1, 1], [], []>} : vector<40x256xbf16>, vector<256x256xbf16>, vector<40x256xf32> -> vector<40x256xf32>
    %122 = arith.addf %116, %121 : vector<40x256xf32>
    %c0_114 = arith.constant 0 : index
    %c0_115 = arith.constant 0 : index
    %123 = vector.load %arg11[%c0_114, %c0_115] : memref<1x256xf32, #tpu.memory_space<vmem>>, vector<1x256xf32>
    %124 = vector.broadcast %123 : vector<1x256xf32> to vector<40x256xf32>
    %125 = arith.addf %122, %124 : vector<40x256xf32>
    %cst_116 = arith.constant 0.000000e+00 : f32
    %126 = vector.broadcast %cst_116 : f32 to vector<40x256xf32>
    %127 = arith.maximumf %125, %126 : vector<40x256xf32>
    %128 = arith.truncf %127 : vector<40x256xf32> to vector<40x256xbf16>
    %c0_117 = arith.constant 0 : index
    %c0_118 = arith.constant 0 : index
    %129 = vector.load %arg12[%c0_117, %c0_118] : memref<256x256xbf16, #tpu.memory_space<vmem>>, vector<256x256xbf16>
    %cst_119 = arith.constant dense<0.000000e+00> : vector<40x256xf32>
    %130 = tpu.matmul %128, %129, %cst_119 {dimension_numbers = #tpu.dot_dimension_numbers<[1], [0], [0], [1], [0, 0, 1, 1], [], []>} : vector<40x256xbf16>, vector<256x256xbf16>, vector<40x256xf32> -> vector<40x256xf32>
    %c0_120 = arith.constant 0 : index
    %c0_121 = arith.constant 0 : index
    %131 = vector.load %arg13[%c0_120, %c0_121] : memref<1x256xf32, #tpu.memory_space<vmem>>, vector<1x256xf32>
    %132 = vector.broadcast %131 : vector<1x256xf32> to vector<40x256xf32>
    %133 = arith.addf %130, %132 : vector<40x256xf32>
    %c8_122 = arith.constant 8 : index
    %c0_123 = arith.constant 0 : index
    %134 = vector.load %arg19[%c8_122, %c0_123] : memref<56x256xf32, #tpu.memory_space<vmem>>, vector<40x256xf32>
    tpu.vector_store %arg19[%c8_122, %c0_123], %133 {strides = array<i32>} : memref<56x256xf32, #tpu.memory_space<vmem>>, vector<40x256xf32>,
    %cst_124 = arith.constant 0.000000e+00 : f32
    %135 = vector.broadcast %cst_124 : f32 to vector<4x256xf32>
    %c24_125 = arith.constant 24 : index
    %c0_126 = arith.constant 0 : index
    %136 = vector.load %arg19[%c24_125, %c0_126] : memref<56x256xf32, #tpu.memory_space<vmem>>, vector<4x256xf32>
    tpu.vector_store %arg19[%c24_125, %c0_126], %135 {strides = array<i32>} : memref<56x256xf32, #tpu.memory_space<vmem>>, vector<4x256xf32>,
    %cst_127 = arith.constant 0.000000e+00 : f32
    %137 = vector.broadcast %cst_127 : f32 to vector<4x256xf32>
    %c44_128 = arith.constant 44 : index
    %c0_129 = arith.constant 0 : index
    %138 = vector.load %arg19[%c44_128, %c0_129] : memref<56x256xf32, #tpu.memory_space<vmem>>, vector<4x256xf32>
    tpu.vector_store %arg19[%c44_128, %c0_129], %137 {strides = array<i32>} : memref<56x256xf32, #tpu.memory_space<vmem>>, vector<4x256xf32>,
    %c6_130 = arith.constant 6 : index
    %c0_131 = arith.constant 0 : index
    %139 = vector.load %arg19[%c6_130, %c0_131] : memref<56x256xf32, #tpu.memory_space<vmem>>, vector<40x256xf32>
    %140 = arith.truncf %139 : vector<40x256xf32> to vector<40x256xbf16>
    %c0_132 = arith.constant 0 : index
    %c0_133 = arith.constant 0 : index
    %c0_134 = arith.constant 0 : index
    %141 = vector.load %arg14[%c0_132, %c0_133, %c0_134] : memref<5x256x256xbf16, #tpu.memory_space<vmem>>, vector<1x256x256xbf16>
    %142 = vector.shape_cast %141 : vector<1x256x256xbf16> to vector<256x256xbf16>
    %cst_135 = arith.constant dense<0.000000e+00> : vector<40x256xf32>
    %143 = tpu.matmul %140, %142, %cst_135 {dimension_numbers = #tpu.dot_dimension_numbers<[1], [0], [0], [1], [0, 0, 1, 1], [], []>} : vector<40x256xbf16>, vector<256x256xbf16>, vector<40x256xf32> -> vector<40x256xf32>
    %c7_136 = arith.constant 7 : index
    %c0_137 = arith.constant 0 : index
    %144 = vector.load %arg19[%c7_136, %c0_137] : memref<56x256xf32, #tpu.memory_space<vmem>>, vector<40x256xf32>
    %145 = arith.truncf %144 : vector<40x256xf32> to vector<40x256xbf16>
    %c1_138 = arith.constant 1 : index
    %c0_139 = arith.constant 0 : index
    %c0_140 = arith.constant 0 : index
    %146 = vector.load %arg14[%c1_138, %c0_139, %c0_140] : memref<5x256x256xbf16, #tpu.memory_space<vmem>>, vector<1x256x256xbf16>
    %147 = vector.shape_cast %146 : vector<1x256x256xbf16> to vector<256x256xbf16>
    %cst_141 = arith.constant dense<0.000000e+00> : vector<40x256xf32>
    %148 = tpu.matmul %145, %147, %cst_141 {dimension_numbers = #tpu.dot_dimension_numbers<[1], [0], [0], [1], [0, 0, 1, 1], [], []>} : vector<40x256xbf16>, vector<256x256xbf16>, vector<40x256xf32> -> vector<40x256xf32>
    %149 = arith.addf %143, %148 : vector<40x256xf32>
    %c8_142 = arith.constant 8 : index
    %c0_143 = arith.constant 0 : index
    %150 = vector.load %arg19[%c8_142, %c0_143] : memref<56x256xf32, #tpu.memory_space<vmem>>, vector<40x256xf32>
    %151 = arith.truncf %150 : vector<40x256xf32> to vector<40x256xbf16>
    %c2_144 = arith.constant 2 : index
    %c0_145 = arith.constant 0 : index
    %c0_146 = arith.constant 0 : index
    %152 = vector.load %arg14[%c2_144, %c0_145, %c0_146] : memref<5x256x256xbf16, #tpu.memory_space<vmem>>, vector<1x256x256xbf16>
    %153 = vector.shape_cast %152 : vector<1x256x256xbf16> to vector<256x256xbf16>
    %cst_147 = arith.constant dense<0.000000e+00> : vector<40x256xf32>
    %154 = tpu.matmul %151, %153, %cst_147 {dimension_numbers = #tpu.dot_dimension_numbers<[1], [0], [0], [1], [0, 0, 1, 1], [], []>} : vector<40x256xbf16>, vector<256x256xbf16>, vector<40x256xf32> -> vector<40x256xf32>
    %155 = arith.addf %149, %154 : vector<40x256xf32>
    %c9_148 = arith.constant 9 : index
    %c0_149 = arith.constant 0 : index
    %156 = vector.load %arg19[%c9_148, %c0_149] : memref<56x256xf32, #tpu.memory_space<vmem>>, vector<40x256xf32>
    %157 = arith.truncf %156 : vector<40x256xf32> to vector<40x256xbf16>
    %c3_150 = arith.constant 3 : index
    %c0_151 = arith.constant 0 : index
    %c0_152 = arith.constant 0 : index
    %158 = vector.load %arg14[%c3_150, %c0_151, %c0_152] : memref<5x256x256xbf16, #tpu.memory_space<vmem>>, vector<1x256x256xbf16>
    %159 = vector.shape_cast %158 : vector<1x256x256xbf16> to vector<256x256xbf16>
    %cst_153 = arith.constant dense<0.000000e+00> : vector<40x256xf32>
    %160 = tpu.matmul %157, %159, %cst_153 {dimension_numbers = #tpu.dot_dimension_numbers<[1], [0], [0], [1], [0, 0, 1, 1], [], []>} : vector<40x256xbf16>, vector<256x256xbf16>, vector<40x256xf32> -> vector<40x256xf32>
    %161 = arith.addf %155, %160 : vector<40x256xf32>
    %c10_154 = arith.constant 10 : index
    %c0_155 = arith.constant 0 : index
    %162 = vector.load %arg19[%c10_154, %c0_155] : memref<56x256xf32, #tpu.memory_space<vmem>>, vector<40x256xf32>
    %163 = arith.truncf %162 : vector<40x256xf32> to vector<40x256xbf16>
    %c4_156 = arith.constant 4 : index
    %c0_157 = arith.constant 0 : index
    %c0_158 = arith.constant 0 : index
    %164 = vector.load %arg14[%c4_156, %c0_157, %c0_158] : memref<5x256x256xbf16, #tpu.memory_space<vmem>>, vector<1x256x256xbf16>
    %165 = vector.shape_cast %164 : vector<1x256x256xbf16> to vector<256x256xbf16>
    %cst_159 = arith.constant dense<0.000000e+00> : vector<40x256xf32>
    %166 = tpu.matmul %163, %165, %cst_159 {dimension_numbers = #tpu.dot_dimension_numbers<[1], [0], [0], [1], [0, 0, 1, 1], [], []>} : vector<40x256xbf16>, vector<256x256xbf16>, vector<40x256xf32> -> vector<40x256xf32>
    %167 = arith.addf %161, %166 : vector<40x256xf32>
    %c0_160 = arith.constant 0 : index
    %c0_161 = arith.constant 0 : index
    %168 = vector.load %arg15[%c0_160, %c0_161] : memref<1x256xf32, #tpu.memory_space<vmem>>, vector<1x256xf32>
    %169 = vector.broadcast %168 : vector<1x256xf32> to vector<40x256xf32>
    %170 = arith.addf %167, %169 : vector<40x256xf32>
    %cst_162 = arith.constant 0.000000e+00 : f32
    %171 = vector.broadcast %cst_162 : f32 to vector<40x256xf32>
    %172 = arith.maximumf %170, %171 : vector<40x256xf32>
    %173 = arith.truncf %172 : vector<40x256xf32> to vector<40x256xbf16>
    %c0_163 = arith.constant 0 : index
    %c0_164 = arith.constant 0 : index
    %174 = vector.load %arg16[%c0_163, %c0_164] : memref<256x128xbf16, #tpu.memory_space<vmem>>, vector<256x128xbf16>
    %cst_165 = arith.constant dense<0.000000e+00> : vector<40x128xf32>
    %175 = tpu.matmul %173, %174, %cst_165 {dimension_numbers = #tpu.dot_dimension_numbers<[1], [0], [0], [1], [0, 0, 1, 1], [], []>} : vector<40x256xbf16>, vector<256x128xbf16>, vector<40x128xf32> -> vector<40x128xf32>
    %c0_166 = arith.constant 0 : index
    %c0_167 = arith.constant 0 : index
    %176 = vector.load %arg17[%c0_166, %c0_167] : memref<1x128xf32, #tpu.memory_space<vmem>>, vector<1x128xf32>
    %177 = vector.broadcast %176 : vector<1x128xf32> to vector<40x128xf32>
    %178 = arith.addf %175, %177 : vector<40x128xf32>
    %c0_168 = arith.constant 0 : index
    %c0_169 = arith.constant 0 : index
    %179 = vector.load %arg18[%c0_168, %c0_169] : memref<40x128xf32, #tpu.memory_space<vmem>>, vector<40x128xf32>
    tpu.vector_store %arg18[%c0_168, %c0_169], %178 {strides = array<i32>} : memref<40x128xf32, #tpu.memory_space<vmem>>, vector<40x128xf32>,
    return
  }
  func.func @transform_0(%arg0: i32) -> (i32, i32) {
    %c0_i32 = arith.constant 0 : i32
    %c0_i32_0 = arith.constant 0 : i32
    %c0_i32_1 = arith.constant 0 : i32
    return %c0_i32, %c0_i32_0 : i32, i32
  }
  func.func @transform_1(%arg0: i32) -> (i32, i32, i32) {
    %c0_i32 = arith.constant 0 : i32
    %c0_i32_0 = arith.constant 0 : i32
    %c0_i32_1 = arith.constant 0 : i32
    %c0_i32_2 = arith.constant 0 : i32
    return %c0_i32, %c0_i32_0, %c0_i32_1 : i32, i32, i32
  }
  func.func @transform_2(%arg0: i32) -> (i32, i32) {
    %c0_i32 = arith.constant 0 : i32
    %c0_i32_0 = arith.constant 0 : i32
    %c0_i32_1 = arith.constant 0 : i32
    return %c0_i32, %c0_i32_0 : i32, i32
  }
  func.func @transform_3(%arg0: i32) -> (i32, i32) {
    %c0_i32 = arith.constant 0 : i32
    %c0_i32_0 = arith.constant 0 : i32
    %c0_i32_1 = arith.constant 0 : i32
    return %c0_i32, %c0_i32_0 : i32, i32
  }
  func.func @transform_4(%arg0: i32) -> (i32, i32) {
    %c0_i32 = arith.constant 0 : i32
    %c0_i32_0 = arith.constant 0 : i32
    %c0_i32_1 = arith.constant 0 : i32
    return %c0_i32, %c0_i32_0 : i32, i32
  }
  func.func @transform_5(%arg0: i32) -> (i32, i32, i32) {
    %c0_i32 = arith.constant 0 : i32
    %c0_i32_0 = arith.constant 0 : i32
    %c0_i32_1 = arith.constant 0 : i32
    %c0_i32_2 = arith.constant 0 : i32
    return %c0_i32, %c0_i32_0, %c0_i32_1 : i32, i32, i32
  }
  func.func @transform_6(%arg0: i32) -> (i32, i32) {
    %c0_i32 = arith.constant 0 : i32
    %c0_i32_0 = arith.constant 0 : i32
    %c0_i32_1 = arith.constant 0 : i32
    return %c0_i32, %c0_i32_0 : i32, i32
  }
  func.func @transform_7(%arg0: i32) -> (i32, i32) {
    %c0_i32 = arith.constant 0 : i32
    %c0_i32_0 = arith.constant 0 : i32
    %c0_i32_1 = arith.constant 0 : i32
    return %c0_i32, %c0_i32_0 : i32, i32
  }
  func.func @transform_8(%arg0: i32) -> (i32, i32) {
    %c0_i32 = arith.constant 0 : i32
    %c0_i32_0 = arith.constant 0 : i32
    %c0_i32_1 = arith.constant 0 : i32
    return %c0_i32, %c0_i32_0 : i32, i32
  }
  func.func @transform_9(%arg0: i32) -> (i32, i32, i32) {
    %c0_i32 = arith.constant 0 : i32
    %c0_i32_0 = arith.constant 0 : i32
    %c0_i32_1 = arith.constant 0 : i32
    %c0_i32_2 = arith.constant 0 : i32
    return %c0_i32, %c0_i32_0, %c0_i32_1 : i32, i32, i32
  }
  func.func @transform_10(%arg0: i32) -> (i32, i32) {
    %c0_i32 = arith.constant 0 : i32
    %c0_i32_0 = arith.constant 0 : i32
    %c0_i32_1 = arith.constant 0 : i32
    return %c0_i32, %c0_i32_0 : i32, i32
  }
  func.func @transform_11(%arg0: i32) -> (i32, i32) {
    %c0_i32 = arith.constant 0 : i32
    %c0_i32_0 = arith.constant 0 : i32
    %c0_i32_1 = arith.constant 0 : i32
    return %c0_i32, %c0_i32_0 : i32, i32
  }
  func.func @transform_12(%arg0: i32) -> (i32, i32) {
    %c0_i32 = arith.constant 0 : i32
    %c0_i32_0 = arith.constant 0 : i32
    %c0_i32_1 = arith.constant 0 : i32
    return %c0_i32, %c0_i32_0 : i32, i32
  }
  func.func @transform_13(%arg0: i32) -> (i32, i32, i32) {
    %c0_i32 = arith.constant 0 : i32
    %c0_i32_0 = arith.constant 0 : i32
    %c0_i32_1 = arith.constant 0 : i32
    %c0_i32_2 = arith.constant 0 : i32
    return %c0_i32, %c0_i32_0, %c0_i32_1 : i32, i32, i32
  }
  func.func @transform_14(%arg0: i32) -> (i32, i32) {
    %c0_i32 = arith.constant 0 : i32
    %c0_i32_0 = arith.constant 0 : i32
    %c0_i32_1 = arith.constant 0 : i32
    return %c0_i32, %c0_i32_0 : i32, i32
  }
  func.func @transform_15(%arg0: i32) -> (i32, i32) {
    %c0_i32 = arith.constant 0 : i32
    %c0_i32_0 = arith.constant 0 : i32
    %c0_i32_1 = arith.constant 0 : i32
    return %c0_i32, %c0_i32_0 : i32, i32
  }
  func.func @transform_16(%arg0: i32) -> (i32, i32) {
    %c0_i32 = arith.constant 0 : i32
    %c0_i32_0 = arith.constant 0 : i32
    %c0_i32_1 = arith.constant 0 : i32
    return %c0_i32, %c0_i32_0 : i32, i32
  }
  func.func @transform_17(%arg0: i32) -> (i32, i32) {
    %c0_i32 = arith.constant 0 : i32
    %c0_i32_0 = arith.constant 0 : i32
    %c0_i32_1 = arith.constant 0 : i32
    return %c0_i32, %c0_i32_0 : i32, i32
  }
}

</mosaic_0001>

<bundles_post_ra>
// kernel: tile.35
= control target key start
LH: loop header
LB: loop body
LE: loop exit
PB: predicated region body
PF: predicated region fallthrough
CT: control target
= control target key end

     0   :  { %2 = vsyncpa [#allocation1], 0  ;;  %s47_s6 = smov [#allocation0]   ;;  %s76_s0 = inlined_call_operand.hbm [shape: f32[16], index: 0, kind: input, shape index: {}]   ;;  %s77_s1 = inlined_call_operand.vmem [shape: f32[16,16], index: 1, kind: output, shape index: {}]  }
   0x1   :  { %s9_s7 = sshll.u32 %s47_s6, 4  ;;  %s23_s10 = scalar_lea.hbm %s76_s0, 16  ;;  %s10_s7 = int_to_ptr.vmem [resolvable:$true] %s9_s7 }
   0x2   :  { %p24_p0 = scmp.ne.s32.totalorder %s76_s0, %s23_s10  ;;  %p27_p1 = scmp.lt.u32.totalorder %s23_s10, %s76_s0 }
   0x4   :  { %p29_p2 = pnand %p27_p1, %p24_p0 }
   0x6   :  { %32 = shalt.err (!%p29_p2)
}
   0x7   :  { %s33_s15 = scalar_lea.vmem %s10_s7, 16  ;;  %s37_s16 = scalar_lea.vmem %s10_s7, 32 }
   0x8   :  { %p34_p3 = scmp.ne.s32.totalorder %s10_s7, %s33_s15  ;;  %p38_p4 = scmp.lt.s32.totalorder %s10_s7, %s10_s7 }
   0x9   :  { %p39_p5 = scmp.lt.s32.totalorder %s37_s16, %s33_s15 }
   0xb   :  { %p40_p6 = por %p39_p5, %p38_p4 }
   0xd   :  { %p41_p7 = pnand %p40_p6, %p34_p3 }
   0xf   :  { %44 = shalt.err (!%p41_p7)
}
  0x10   :  { %12 = dma.hbm_to_vmem [thread:$0]  %s76_s0, 16, %s10_s7, [#allocation1]  }
  0x11   :  { %45 = dma.done.wait [#allocation1], 16  }
  0x12   :  { %46 = vsyncadd [#allocation1], 4294967280  ;;  %v16_v0 = vld [vmem:[#allocation0] ss:$0 sm:$0xff] }
  0x13   :  { %17 = vst [vmem:[%s77_s1] sm:$0xff] %v16_v0  ;;  %21 = vst [vmem:[%s77_s1 + $0x8] sm:$0xff] %v16_v0 }
  0x14   :  { %20 = vsyncpa [#allocation1], 1 }

// kernel: tile.36
= control target key start
LH: loop header
LB: loop body
LE: loop exit
PB: predicated region body
PF: predicated region fallthrough
CT: control target
= control target key end

     0   :  { %s7_s6 = smov 3  ;;  %s21_s9 = smov 3  ;;  %vm4_vm0 = vcmask 130048   ;;  %vm11_vm1 = vcmask 1048448   ;;  %vm18_vm2 = vcmask 917248   ;;  %vm25_vm3 = vcmask 786048   ;;  %s128_s0 = inlined_call_operand.vmem [shape: f32[16,16], index: 0, kind: input, shape index: {}]   ;;  %s129_s1 = inlined_call_operand.vmem [shape: f32[1,256], index: 1, kind: output, shape index: {}]  }
   0x1   :  { %v66_v0 = vld [vmem:[%s128_s0 + $0x7] ss:$8 sm:%s7_s6]   ;;  %s81_s10 = smov 112   ;;  %v68_v1 = vld [vmem:[%s128_s0 + $0x5] ss:$8 sm:%s21_s9]   ;;  %s14_s13 = smov 3 }
   0x2   :  { %9 = vrot.lane.b32.xlu0 %v66_v0, %s81_s10  ;;  %s82_s14 = smov 80   ;;  %v67_v2 = vld [vmem:[%s128_s0 + $0x6] ss:$8 sm:%s14_s13]   ;;  %s28_s17 = smov 3  ;;  %vm32_vm4 = vcmask 654848   ;;  %vm39_vm5 = vcmask 523648  }
   0x3   :  { %23 = vrot.lane.b32.xlu1 %v68_v1, %s82_s14  ;;  %v69_v3 = vld [vmem:[%s128_s0 + $0x4] ss:$8 sm:%s28_s17]   ;;  %s35_s20 = smov 3  ;;  %s42_s21 = smov 3  ;;  %vm46_vm6 = vcmask 392448   ;;  %vm53_vm7 = vcmask 261248  }
   0x4   :  { %s83_s22 = smov 96   ;;  %s84_s23 = smov 64   ;;  %v70_v4 = vld [vmem:[%s128_s0 + $0x3] ss:$8 sm:%s35_s20]   ;;  %v71_v5 = vld [vmem:[%s128_s0 + $0x2] ss:$8 sm:%s42_s21]  }
   0x5   :  { %s2_s26 = smov 3  ;;  %s49_s29 = smov 3 }
   0x6   :  { %16 = vrot.lane.b32.xlu0 %v67_v2, %s83_s22  ;;  %v3_v6 = vld [vmem:[%s128_s0] ss:$8 sm:%s2_s26]   ;;  %s85_s3 = smov 48   ;;  %s86_s4 = smov 32  }
   0x7   :  { %30 = vrot.lane.b32.xlu1 %v69_v3, %s84_s23  ;;  %5 = vst.msk [vmem:[#allocation0] ss:$8 sm:$0x3] %vm4_vm0, %v3_v6   ;;  %v72_v7 = vld [vmem:[%s128_s0 + $0x1] ss:$8 sm:%s49_s29]   ;;  %s87_s0 = smov 16  }
   0xa   :  { %37 = vrot.lane.b32.xlu0 %v70_v4, %s85_s3 }
   0xb   :  { %44 = vrot.lane.b32.xlu1 %v71_v5, %s86_s4 }
   0xe   :  { %51 = vrot.lane.b32.xlu0 %v72_v7, %s87_s0 }
  0x74   :  { %v10_v8 = vpop.permute.xlu0 %9  }
  0x75   :  { %12 = vst.msk [vmem:[#allocation0] ss:$8 sm:$0x3] %vm11_vm1, %v10_v8   ;;  %v24_v9 = vpop.permute.xlu1 %23  }
  0x78   :  { %v17_v10 = vpop.permute.xlu0 %16  }
  0x79   :  { %19 = vst.msk [vmem:[#allocation0] ss:$8 sm:$0x3] %vm18_vm2, %v17_v10   ;;  %v31_v11 = vpop.permute.xlu1 %30  }
  0x7a   :  { %26 = vst.msk [vmem:[#allocation0] ss:$8 sm:$0x3] %vm25_vm3, %v24_v9  }
  0x7b   :  { %33 = vst.msk [vmem:[#allocation0] ss:$8 sm:$0x3] %vm32_vm4, %v31_v11  }
  0x7c   :  { %v38_v12 = vpop.permute.xlu0 %37  }
  0x7d   :  { %40 = vst.msk [vmem:[#allocation0] ss:$8 sm:$0x3] %vm39_vm5, %v38_v12   ;;  %v45_v13 = vpop.permute.xlu1 %44  }
  0x7e   :  { %47 = vst.msk [vmem:[#allocation0] ss:$8 sm:$0x3] %vm46_vm6, %v45_v13  }
  0x80   :  { %v52_v14 = vpop.permute.xlu0 %51  }
  0x81   :  { %54 = vst.msk [vmem:[#allocation0] ss:$8 sm:$0x3] %vm53_vm7, %v52_v14  }
  0x88   :  { %v58_v15 = vld [vmem:[#allocation0] sm:$0x1]  ;;  %v62_v16 = vld [vmem:[#allocation0 + $0x8] sm:$0x1] }
  0x89   :  { %60 = vst [vmem:[%s129_s1] sm:$0x1] %v58_v15  ;;  %73 = vst [vmem:[%s129_s1 + $0x1] sm:$0x1] %v62_v16 }

// kernel: tile.64
= control target key start
LH: loop header
LB: loop body
LE: loop exit
PB: predicated region body
PF: predicated region fallthrough
CT: control target
= control target key end

     0   :  { %2 = vsyncpa [#allocation1], 0  ;;  %s47_s6 = smov [#allocation0]   ;;  %s76_s0 = inlined_call_operand.hbm [shape: f32[8], index: 0, kind: input, shape index: {}]   ;;  %s77_s1 = inlined_call_operand.vmem [shape: f32[16,8], index: 1, kind: output, shape index: {}]  }
   0x1   :  { %s9_s7 = sshll.u32 %s47_s6, 4  ;;  %s23_s10 = scalar_lea.hbm %s76_s0, 16  ;;  %s10_s7 = int_to_ptr.vmem [resolvable:$true] %s9_s7 }
   0x2   :  { %p24_p0 = scmp.ne.s32.totalorder %s76_s0, %s23_s10  ;;  %p27_p1 = scmp.lt.u32.totalorder %s23_s10, %s76_s0 }
   0x4   :  { %p29_p2 = pnand %p27_p1, %p24_p0 }
   0x6   :  { %32 = shalt.err (!%p29_p2)
}
   0x7   :  { %s33_s15 = scalar_lea.vmem %s10_s7, 16  ;;  %s37_s16 = scalar_lea.vmem %s10_s7, 32 }
   0x8   :  { %p34_p3 = scmp.ne.s32.totalorder %s10_s7, %s33_s15  ;;  %p38_p4 = scmp.lt.s32.totalorder %s10_s7, %s10_s7 }
   0x9   :  { %p39_p5 = scmp.lt.s32.totalorder %s37_s16, %s33_s15 }
   0xb   :  { %p40_p6 = por %p39_p5, %p38_p4 }
   0xd   :  { %p41_p7 = pnand %p40_p6, %p34_p3 }
   0xf   :  { %44 = shalt.err (!%p41_p7)
}
  0x10   :  { %12 = dma.hbm_to_vmem [thread:$0]  %s76_s0, 16, %s10_s7, [#allocation1]  }
  0x11   :  { %45 = dma.done.wait [#allocation1], 16  }
  0x12   :  { %46 = vsyncadd [#allocation1], 4294967280  ;;  %v16_v0 = vld [vmem:[#allocation0] ss:$0 sm:$0xff] }
  0x13   :  { %17 = vst [vmem:[%s77_s1] sm:$0xff] %v16_v0  ;;  %21 = vst [vmem:[%s77_s1 + $0x8] sm:$0xff] %v16_v0 }
  0x14   :  { %20 = vsyncpa [#allocation1], 1 }

// kernel: tile.65
= control target key start
LH: loop header
LB: loop body
LE: loop exit
PB: predicated region body
PF: predicated region fallthrough
CT: control target
= control target key end

     0   :  { %s131_s10 = smov 120   ;;  %s132_s11 = smov 104   ;;  %vm3_vm0 = vcmask 64512   ;;  %vm9_vm1 = vcmask 1048512   ;;  %vm15_vm2 = vcmask 982912   ;;  %vm21_vm3 = vcmask 917312   ;;  %s207_s0 = inlined_call_operand.vmem [shape: f32[16,8], index: 0, kind: input, shape index: {}]   ;;  %s208_s1 = inlined_call_operand.vmem [shape: f32[1,128], index: 1, kind: output, shape index: {}]  }
   0x1   :  { %v101_v0 = vld [vmem:[%s207_s0 + $0xf] sm:$0x1]   ;;  %v103_v1 = vld [vmem:[%s207_s0 + $0xd] sm:$0x1]   ;;  %v102_v2 = vld [vmem:[%s207_s0 + $0xe] sm:$0x1]  }
   0x2   :  { %7 = vrot.lane.b32.xlu0 %v101_v0, %s131_s10  ;;  %19 = vrot.lane.b32.xlu1 %v103_v1, %s132_s11  ;;  %v104_v3 = vld [vmem:[%s207_s0 + $0xc] sm:$0x1]   ;;  %s133_s16 = smov 112   ;;  %s134_s17 = smov 96   ;;  %v105_v4 = vld [vmem:[%s207_s0 + $0xb] sm:$0x1]  }
   0x3   :  { %v106_v5 = vld [vmem:[%s207_s0 + $0xa] sm:$0x1]   ;;  %v2_v6 = vld [vmem:[%s207_s0] sm:$0x1]   ;;  %s135_s24 = smov 88   ;;  %s136_s25 = smov 80  }
   0x4   :  { %4 = vst.msk [vmem:[#allocation0] sm:$0x1] %vm3_vm0, %v2_v6   ;;  %v107_v7 = vld [vmem:[%s207_s0 + $0x9] sm:$0x1]   ;;  %v108_v8 = vld [vmem:[%s207_s0 + $0x8] sm:$0x1]  }
   0x5   :  { %s137_s30 = smov 72   ;;  %s138_s2 = smov 64   ;;  %v109_v9 = vld [vmem:[%s207_s0 + $0x7] sm:$0x1]   ;;  %v110_v10 = vld [vmem:[%s207_s0 + $0x6] sm:$0x1]  }
   0x6   :  { %13 = vrot.lane.b32.xlu0 %v102_v2, %s133_s16  ;;  %25 = vrot.lane.b32.xlu1 %v104_v3, %s134_s17  ;;  %s139_s7 = smov 56   ;;  %s140_s8 = smov 48   ;;  %v111_v11 = vld [vmem:[%s207_s0 + $0x5] sm:$0x1]   ;;  %v112_v12 = vld [vmem:[%s207_s0 + $0x4] sm:$0x1]  }
   0x7   :  { %s141_s13 = smov 40   ;;  %s142_s14 = smov 32   ;;  %v113_v13 = vld [vmem:[%s207_s0 + $0x3] sm:$0x1]   ;;  %v114_v14 = vld [vmem:[%s207_s0 + $0x2] sm:$0x1]  }
   0x8   :  { %s143_s19 = smov 24   ;;  %s144_s20 = smov 16   ;;  %v115_v15 = vld [vmem:[%s207_s0 + $0x1] sm:$0x1]   ;;  %vm27_vm4 = vcmask 851712   ;;  %vm33_vm5 = vcmask 786112  }
   0x9   :  { %s145_s0 = smov 8   ;;  %vm39_vm6 = vcmask 720512   ;;  %vm45_vm7 = vcmask 654912   ;;  %vm51_vm8 = vcmask 589312   ;;  %vm57_vm9 = vcmask 523712  }
   0xa   :  { %31 = vrot.lane.b32.xlu0 %v105_v4, %s135_s24  ;;  %37 = vrot.lane.b32.xlu1 %v106_v5, %s136_s25  ;;  %vm63_vm10 = vcmask 458112   ;;  %vm69_vm11 = vcmask 392512   ;;  %vm75_vm12 = vcmask 326912   ;;  %vm81_vm13 = vcmask 261312  }
   0xb   :  { %vm87_vm14 = vcmask 195712   ;;  %vm93_vm15 = vcmask 130112  }
   0xe   :  { %43 = vrot.lane.b32.xlu0 %v107_v7, %s137_s30  ;;  %49 = vrot.lane.b32.xlu1 %v108_v8, %s138_s2 }
  0x12   :  { %55 = vrot.lane.b32.xlu0 %v109_v9, %s139_s7  ;;  %61 = vrot.lane.b32.xlu1 %v110_v10, %s140_s8 }
  0x16   :  { %67 = vrot.lane.b32.xlu0 %v111_v11, %s141_s13  ;;  %73 = vrot.lane.b32.xlu1 %v112_v12, %s142_s14 }
  0x1a   :  { %79 = vrot.lane.b32.xlu0 %v113_v13, %s143_s19  ;;  %85 = vrot.lane.b32.xlu1 %v114_v14, %s144_s20 }
  0x1e   :  { %91 = vrot.lane.b32.xlu0 %v115_v15, %s145_s0 }
  0x74   :  { %v8_v16 = vpop.permute.xlu0 %7   ;;  %v20_v17 = vpop.permute.xlu1 %19  }
  0x75   :  { %10 = vst.msk [vmem:[#allocation0] sm:$0x1] %vm9_vm1, %v8_v16  }
  0x78   :  { %v14_v18 = vpop.permute.xlu0 %13   ;;  %v26_v19 = vpop.permute.xlu1 %25  }
  0x79   :  { %16 = vst.msk [vmem:[#allocation0] sm:$0x1] %vm15_vm2, %v14_v18  }
  0x7a   :  { %22 = vst.msk [vmem:[#allocation0] sm:$0x1] %vm21_vm3, %v20_v17  }
  0x7b   :  { %28 = vst.msk [vmem:[#allocation0] sm:$0x1] %vm27_vm4, %v26_v19  }
  0x7c   :  { %v32_v20 = vpop.permute.xlu0 %31   ;;  %v38_v21 = vpop.permute.xlu1 %37  }
  0x7d   :  { %34 = vst.msk [vmem:[#allocation0] sm:$0x1] %vm33_vm5, %v32_v20  }
  0x7e   :  { %40 = vst.msk [vmem:[#allocation0] sm:$0x1] %vm39_vm6, %v38_v21  }
  0x80   :  { %v44_v22 = vpop.permute.xlu0 %43   ;;  %v50_v23 = vpop.permute.xlu1 %49  }
  0x81   :  { %46 = vst.msk [vmem:[#allocation0] sm:$0x1] %vm45_vm7, %v44_v22  }
  0x82   :  { %52 = vst.msk [vmem:[#allocation0] sm:$0x1] %vm51_vm8, %v50_v23  }
  0x84   :  { %v56_v24 = vpop.permute.xlu0 %55   ;;  %v62_v25 = vpop.permute.xlu1 %61  }
  0x85   :  { %58 = vst.msk [vmem:[#allocation0] sm:$0x1] %vm57_vm9, %v56_v24  }
  0x86   :  { %64 = vst.msk [vmem:[#allocation0] sm:$0x1] %vm63_vm10, %v62_v25  }
  0x88   :  { %v68_v26 = vpop.permute.xlu0 %67   ;;  %v74_v27 = vpop.permute.xlu1 %73  }
  0x89   :  { %70 = vst.msk [vmem:[#allocation0] sm:$0x1] %vm69_vm11, %v68_v26  }
  0x8a   :  { %76 = vst.msk [vmem:[#allocation0] sm:$0x1] %vm75_vm12, %v74_v27  }
  0x8c   :  { %v80_v28 = vpop.permute.xlu0 %79   ;;  %v86_v29 = vpop.permute.xlu1 %85  }
  0x8d   :  { %82 = vst.msk [vmem:[#allocation0] sm:$0x1] %vm81_vm13, %v80_v28  }
  0x8e   :  { %88 = vst.msk [vmem:[#allocation0] sm:$0x1] %vm87_vm14, %v86_v29  }
  0x90   :  { %v92_v30 = vpop.permute.xlu0 %91  }
  0x91   :  { %94 = vst.msk [vmem:[#allocation0] sm:$0x1] %vm93_vm15, %v92_v30  }
  0x98   :  { %v98_v31 = vld [vmem:[#allocation0] sm:$0x1] }
  0x99   :  { %100 = vst [vmem:[%s208_s1] sm:$0x1] %v98_v31 }

// kernel: _lambda_.1
= control target key start
LH: loop header
LB: loop body
LE: loop exit
PB: predicated region body
PF: predicated region fallthrough
CT: control target
= control target key end

     0   :  { %v8939_v1 = vmov 0   ;;  %vm1614_vm0 = vcmask 1044480   ;;  %vm1328_vm1 = vsmask.f32 4352  ;;  %vm2175_vm2 = vsmask.f32 7424  ;;  %s11561_s1 = inlined_call_operand.vmem [shape: bf16[5,128,256], index: 1, kind: input, shape index: {}]   ;;  %s11562_s0 = inlined_call_operand.vmem [shape: f32[48,128], index: 0, kind: input, shape index: {}]   ;;  %s11563_s3 = inlined_call_operand.vmem [shape: bf16[256,256], index: 3, kind: input, shape index: {}]   ;;  %s11564_s5 = inlined_call_operand.vmem [shape: bf16[5,256,256], index: 5, kind: input, shape index: {}]   ;;  %s11565_s2 = inlined_call_operand.vmem [shape: f32[1,256], index: 2, kind: input, shape index: {}]   ;;  %s11566_s4 = inlined_call_operand.vmem [shape: f32[1,256], index: 4, kind: input, shape index: {}]   ;;  %s11567_s7 = inlined_call_operand.vmem [shape: bf16[256,256], index: 7, kind: input, shape index: {}]   ;;  %s11568_s9 = inlined_call_operand.vmem [shape: bf16[5,256,256], index: 9, kind: input, shape index: {}]   ;;  %s11569_s6 = inlined_call_operand.vmem [shape: f32[1,256], index: 6, kind: input, shape index: {}]   ;;  %s11570_s8 = inlined_call_operand.vmem [shape: f32[1,256], index: 8, kind: input, shape index: {}]   ;;  %s11571_s11 = inlined_call_operand.vmem [shape: bf16[256,256], index: 11, kind: input, shape index: {}]   ;;  %s11572_s13 = inlined_call_operand.vmem [shape: bf16[5,256,256], index: 13, kind: input, shape index: {}]   ;;  %s11573_s10 = inlined_call_operand.vmem [shape: f32[1,256], index: 10, kind: input, shape index: {}]   ;;  %s11574_s12 = inlined_call_operand.vmem [shape: f32[1,256], index: 12, kind: input, shape index: {}]   ;;  %s11575_s15 = inlined_call_operand.vmem [shape: bf16[256,128], index: 15, kind: input, shape index: {}]   ;;  %s11576_s14 = inlined_call_operand.vmem [shape: f32[1,256], index: 14, kind: input, shape index: {}]   ;;  %s11577_s16 = inlined_call_operand.vmem [shape: f32[1,128], index: 16, kind: input, shape index: {}]   ;;  %s11578_s17 = inlined_call_operand.vmem [shape: f32[40,128], index: 17, kind: output, shape index: {}]  }
   0x1   :  { %11581 = sst [smem:[#allocation3_spill]] %s11561_s1  ;;  %222 = vmatprep.mubr.bf16.mxu0 %v8939_v1  ;;  %vm2506_vm3 = vcmask 1046528  }
   0x2   :  { %11582 = sst [smem:[#allocation4_spill]] %s11562_s0  ;;  %s11583_s26 = sld [smem:[#allocation3_spill]] }
   0x3   :  { %s11584_s30 = sld [smem:[#allocation4_spill]] }
   0x8   :  { %v7937_v0 = vld [vmem:[%s11583_s26 + $0x84] ss:$8 sps:$4 sm:$0xff]   ;;  %v7939_v2 = vld [vmem:[%s11583_s26 + $0x80] ss:$8 sps:$4 sm:$0xff]   ;;  %v7940_v3 = vld [vmem:[%s11583_s26 + $0x94] ss:$8 sps:$4 sm:$0xff]  }
   0x9   :  { %190 = vmatprep.subr.bf16.mxu0 %v7937_v0  ;;  %v7942_v4 = vld [vmem:[%s11583_s26 + $0x90] ss:$8 sps:$4 sm:$0xff]   ;;  %v7943_v5 = vld [vmem:[%s11583_s26 + $0xa4] ss:$8 sps:$4 sm:$0xff]   ;;  %v7945_v6 = vld [vmem:[%s11583_s26 + $0xa0] ss:$8 sps:$4 sm:$0xff]  }
   0xa   :  { %191 = vmatpush1.bf16.msra.mxu0 %v7939_v2  ;;  %v7946_v7 = vld [vmem:[%s11583_s26 + $0xb4] ss:$8 sps:$4 sm:$0xff]   ;;  %v7948_v8 = vld [vmem:[%s11583_s26 + $0xb0] ss:$8 sps:$4 sm:$0xff]   ;;  %v7949_v9 = vld [vmem:[%s11583_s26 + $0xc4] ss:$8 sps:$4 sm:$0xff]  }
   0xb   :  { %192 = vmatprep.subr.bf16.mxu0 %v7940_v3  ;;  %v7951_v10 = vld [vmem:[%s11583_s26 + $0xc0] ss:$8 sps:$4 sm:$0xff]   ;;  %v7952_v11 = vld [vmem:[%s11583_s26 + $0xd4] ss:$8 sps:$4 sm:$0xff]   ;;  %v7954_v12 = vld [vmem:[%s11583_s26 + $0xd0] ss:$8 sps:$4 sm:$0xff]  }
   0xc   :  { %v7955_v13 = vld [vmem:[%s11583_s26 + $0xe4] ss:$8 sps:$4 sm:$0xff]   ;;  %v7957_v14 = vld [vmem:[%s11583_s26 + $0xe0] ss:$8 sps:$4 sm:$0xff]   ;;  %v7958_v15 = vld [vmem:[%s11583_s26 + $0xf4] ss:$8 sps:$4 sm:$0xff]  }
   0xd   :  { %v7960_v16 = vld [vmem:[%s11583_s26 + $0xf0] ss:$8 sps:$4 sm:$0xff]   ;;  %v85_v17 = vld [vmem:[%s11584_s30 + $0x1] sm:$0xff]  ;;  %v7966_v22 = vld [vmem:[%s11583_s26 + $0x14] ss:$8 sps:$4 sm:$0xff]  }
   0xe   :  { %193 = vmatpush1.bf16.msra.mxu0 %v7942_v4  ;;  %v86_v18 = vld [vmem:[%s11584_s30 + $0x9] sm:$0xff]  ;;  %v87_v24 = vld [vmem:[%s11584_s30 + $0x11] sm:$0xff]  ;;  %v88_v25 = vld [vmem:[%s11584_s30 + $0x19] sm:$0xff] }
   0xf   :  { %194 = vmatprep.subr.bf16.mxu0 %v7943_v5  ;;  %v7963_v19 = vld [vmem:[%s11583_s26 + $0x4] ss:$8 sps:$4 sm:$0xff]   ;;  %v90_v20 = vpack.c.bf16 %v86_v18, %v85_v17  ;;  %v7961_v21 = vld [vmem:[%s11583_s26] ss:$8 sps:$4 sm:$0xff]   ;;  %v7964_v23 = vld [vmem:[%s11583_s26 + $0x10] ss:$8 sps:$4 sm:$0xff]   ;;  %v91_v27 = vpack.c.bf16 %v88_v25, %v87_v24 }
  0x10   :  { %v7969_v26 = vld [vmem:[%s11583_s26 + $0x24] ss:$8 sps:$4 sm:$0xff]   ;;  %v7967_v28 = vld [vmem:[%s11583_s26 + $0x20] ss:$8 sps:$4 sm:$0xff]   ;;  %v7972_v29 = vld [vmem:[%s11583_s26 + $0x34] ss:$8 sps:$4 sm:$0xff]  }
  0x11   :  { %v7970_v30 = vld [vmem:[%s11583_s26 + $0x30] ss:$8 sps:$4 sm:$0xff]   ;;  %v89_v31 = vld [vmem:[%s11584_s30 + $0x21] sm:$0xff]  ;;  %v7978_v35 = vld [vmem:[%s11583_s26 + $0x54] ss:$8 sps:$4 sm:$0xff]  }
  0x12   :  { %195 = vmatpush1.bf16.msra.mxu0 %v7945_v6  ;;  %v7975_v32 = vld [vmem:[%s11583_s26 + $0x44] ss:$8 sps:$4 sm:$0xff]   ;;  %v92_v33 = vpack.c.bf16 %v89_v31, %v89_v31  ;;  %v7973_v34 = vld [vmem:[%s11583_s26 + $0x40] ss:$8 sps:$4 sm:$0xff]   ;;  %v7976_v36 = vld [vmem:[%s11583_s26 + $0x50] ss:$8 sps:$4 sm:$0xff]  }
  0x13   :  { %196 = vmatprep.subr.bf16.mxu0 %v7946_v7  ;;  %v7981_v37 = vld [vmem:[%s11583_s26 + $0x64] ss:$8 sps:$4 sm:$0xff]   ;;  %v7979_v38 = vld [vmem:[%s11583_s26 + $0x60] ss:$8 sps:$4 sm:$0xff]   ;;  %v7984_v39 = vld [vmem:[%s11583_s26 + $0x74] ss:$8 sps:$4 sm:$0xff]  }
  0x14   :  { %v7982_v40 = vld [vmem:[%s11583_s26 + $0x70] ss:$8 sps:$4 sm:$0xff]   ;;  %v61_v41 = vld [vmem:[%s11584_s30] sm:$0xff]  ;;  %v62_v42 = vld [vmem:[%s11584_s30 + $0x8] sm:$0xff] }
  0x15   :  { %v7987_v43 = vld [vmem:[%s11583_s26 + $0x104] ss:$8 sps:$4 sm:$0xff]   ;;  %v66_v44 = vpack.c.bf16 %v62_v42, %v61_v41  ;;  %v7985_v45 = vld [vmem:[%s11583_s26 + $0x100] ss:$8 sps:$4 sm:$0xff]   ;;  %v7990_v46 = vld [vmem:[%s11583_s26 + $0x114] ss:$8 sps:$4 sm:$0xff]  }
  0x16   :  { %197 = vmatpush1.bf16.msra.mxu0 %v7948_v8  ;;  %v7988_v47 = vld [vmem:[%s11583_s26 + $0x110] ss:$8 sps:$4 sm:$0xff]   ;;  %v7993_v50 = vld [vmem:[%s11583_s26 + $0x124] ss:$8 sps:$4 sm:$0xff]   ;;  %v7991_v52 = vld [vmem:[%s11583_s26 + $0x120] ss:$8 sps:$4 sm:$0xff]  }
  0x17   :  { %198 = vmatprep.subr.bf16.mxu0 %v7949_v9  ;;  %v63_v48 = vld [vmem:[%s11584_s30 + $0x10] sm:$0xff]  ;;  %v64_v49 = vld [vmem:[%s11584_s30 + $0x18] sm:$0xff]  ;;  %v65_v55 = vld [vmem:[%s11584_s30 + $0x20] sm:$0xff] }
  0x18   :  { %v67_v51 = vpack.c.bf16 %v64_v49, %v63_v48  ;;  %v7996_v53 = vld [vmem:[%s11583_s26 + $0x134] ss:$8 sps:$4 sm:$0xff]   ;;  %v7994_v54 = vld [vmem:[%s11583_s26 + $0x130] ss:$8 sps:$4 sm:$0xff]   ;;  %v7999_v56 = vld [vmem:[%s11583_s26 + $0x144] ss:$8 sps:$4 sm:$0xff]   ;;  %v68_v57 = vpack.c.bf16 %v65_v55, %v65_v55 }
  0x19   :  { %v7997_v58 = vld [vmem:[%s11583_s26 + $0x140] ss:$8 sps:$4 sm:$0xff]   ;;  %v8002_v59 = vld [vmem:[%s11583_s26 + $0x154] ss:$8 sps:$4 sm:$0xff]   ;;  %v8000_v60 = vld [vmem:[%s11583_s26 + $0x150] ss:$8 sps:$4 sm:$0xff]  }
  0x1a   :  { %199 = vmatpush1.bf16.msra.mxu0 %v7951_v10  ;;  %v8005_v61 = vld [vmem:[%s11583_s26 + $0x164] ss:$8 sps:$4 sm:$0xff]   ;;  %v8003_v62 = vld [vmem:[%s11583_s26 + $0x160] ss:$8 sps:$4 sm:$0xff]   ;;  %v8008_v63 = vld [vmem:[%s11583_s26 + $0x174] ss:$8 sps:$4 sm:$0xff]  }
  0x1b   :  { %200 = vmatprep.subr.bf16.mxu0 %v7952_v11  ;;  %v8006_v0 = vld [vmem:[%s11583_s26 + $0x170] ss:$8 sps:$4 sm:$0xff]   ;;  %v392_v2 = vld [vmem:[%s11584_s30 + $0x2] sm:$0xff]  ;;  %v8014_v7 = vld [vmem:[%s11583_s26 + $0x194] ss:$8 sps:$4 sm:$0xff]  }
  0x1c   :  { %v393_v3 = vld [vmem:[%s11584_s30 + $0xa] sm:$0xff]  ;;  %v394_v9 = vld [vmem:[%s11584_s30 + $0x12] sm:$0xff]  ;;  %v395_v10 = vld [vmem:[%s11584_s30 + $0x1a] sm:$0xff] }
  0x1d   :  { %v8011_v4 = vld [vmem:[%s11583_s26 + $0x184] ss:$8 sps:$4 sm:$0xff]   ;;  %v397_v5 = vpack.c.bf16 %v393_v3, %v392_v2  ;;  %v8009_v6 = vld [vmem:[%s11583_s26 + $0x180] ss:$8 sps:$4 sm:$0xff]   ;;  %v8012_v8 = vld [vmem:[%s11583_s26 + $0x190] ss:$8 sps:$4 sm:$0xff]  }
  0x1e   :  { %201 = vmatpush1.bf16.msra.mxu0 %v7954_v12  ;;  %v8017_v11 = vld [vmem:[%s11583_s26 + $0x1a4] ss:$8 sps:$4 sm:$0xff]   ;;  %v398_v12 = vpack.c.bf16 %v395_v10, %v394_v9  ;;  %v8032_v24 = vld [vmem:[%s11583_s26 + $0x1f4] ss:$8 sps:$4 sm:$0xff]   ;;  %v8030_v25 = vld [vmem:[%s11583_s26 + $0x1f0] ss:$8 sps:$4 sm:$0xff]  }
  0x1f   :  { %202 = vmatprep.subr.bf16.mxu0 %v7955_v13  ;;  %v8015_v13 = vld [vmem:[%s11583_s26 + $0x1a0] ss:$8 sps:$4 sm:$0xff]   ;;  %v8023_v17 = vld [vmem:[%s11583_s26 + $0x1c4] ss:$8 sps:$4 sm:$0xff]   ;;  %v8038_v31 = vld [vmem:[%s11583_s26 + $0x214] ss:$8 sps:$4 sm:$0xff]  }
  0x20   :  { %v8047_v41 = vld [vmem:[%s11583_s26 + $0x244] ss:$8 sps:$4 sm:$0xff]   ;;  %v8056_v48 = vld [vmem:[%s11583_s26 + $0x274] ss:$8 sps:$4 sm:$0xff]   ;;  %v8054_v49 = vld [vmem:[%s11583_s26 + $0x270] ss:$8 sps:$4 sm:$0xff]  }
  0x21   :  { %v8071_v2 = vld [vmem:[%s11563_s3 + $0x44] ss:$8 sps:$4 sm:$0xff]   ;;  %v8069_v3 = vld [vmem:[%s11563_s3 + $0x40] ss:$8 sps:$4 sm:$0xff]   ;;  %v8078_v9 = vld [vmem:[%s11563_s3 + $0x70] ss:$8 sps:$4 sm:$0xff]  }
  0x22   :  { %203 = vmatpush1.bf16.msra.mxu0 %v7957_v14  ;;  %v8020_v14 = vld [vmem:[%s11583_s26 + $0x1b4] ss:$8 sps:$4 sm:$0xff]   ;;  %v8083_v10 = vld [vmem:[%s11563_s3 + $0x84] ss:$8 sps:$4 sm:$0xff]  }
  0x23   :  { %204 = vmatprep.subr.bf16.mxu0 %v7958_v15  ;;  %v8018_v15 = vld [vmem:[%s11583_s26 + $0x1b0] ss:$8 sps:$4 sm:$0xff]  }
  0x26   :  { %205 = vmatpush1.bf16.msra.mxu0 %v7960_v16  ;;  %v396_v16 = vld [vmem:[%s11584_s30 + $0x22] sm:$0xff] }
  0x27   :  { %331 = vmatprep.subr.bf16.mxu0 %v7963_v19  ;;  %v399_v18 = vpack.c.bf16 %v396_v16, %v396_v16  ;;  %v8021_v19 = vld [vmem:[%s11583_s26 + $0x1c0] ss:$8 sps:$4 sm:$0xff]   ;;  %v8092_v16 = vld [vmem:[%s11563_s3 + $0xb4] ss:$8 sps:$4 sm:$0xff]  }
  0x29   :  { %223 = vmatmul.mubr.bf16.vlgmr.msra.gmra.mrb[0].mxu0 %v90_v20  ;;  %v8026_v20 = vld [vmem:[%s11583_s26 + $0x1d4] ss:$8 sps:$4 sm:$0xff]  }
  0x2a   :  { %332 = vmatpush1.bf16.msra.mxu0 %v7961_v21  ;;  %232 = vmatprep.mubr.bf16.mxu0 %v8939_v1  ;;  %v8024_v21 = vld [vmem:[%s11583_s26 + $0x1d0] ss:$8 sps:$4 sm:$0xff]  }
  0x2b   :  { %333 = vmatprep.subr.bf16.mxu0 %v7966_v22  ;;  %v8029_v22 = vld [vmem:[%s11583_s26 + $0x1e4] ss:$8 sps:$4 sm:$0xff]  }
  0x2e   :  { %334 = vmatpush1.bf16.msra.mxu0 %v7964_v23  ;;  %v8027_v23 = vld [vmem:[%s11583_s26 + $0x1e0] ss:$8 sps:$4 sm:$0xff]  }
  0x2f   :  { %335 = vmatprep.subr.bf16.mxu0 %v7969_v26  ;;  %v568_v26 = vld [vmem:[%s11584_s30 + $0x3] sm:$0xff] }
  0x31   :  { %233 = vmatmul.mubr.bf16.gmra.mrb[4].mxu0 %v91_v27  ;;  %v569_v27 = vld [vmem:[%s11584_s30 + $0xb] sm:$0xff] }
  0x32   :  { %336 = vmatpush1.bf16.msra.mxu0 %v7967_v28  ;;  %242 = vmatprep.mubr.bf16.mxu0 %v8939_v1  ;;  %v8035_v28 = vld [vmem:[%s11583_s26 + $0x204] ss:$8 sps:$4 sm:$0xff]  }
  0x33   :  { %337 = vmatprep.subr.bf16.mxu0 %v7972_v29  ;;  %v573_v29 = vpack.c.bf16 %v569_v27, %v568_v26 }
  0x36   :  { %338 = vmatpush1.bf16.msra.mxu0 %v7970_v30  ;;  %v8033_v30 = vld [vmem:[%s11583_s26 + $0x200] ss:$8 sps:$4 sm:$0xff]  }
  0x37   :  { %339 = vmatprep.subr.bf16.mxu0 %v7975_v32  ;;  %v8036_v32 = vld [vmem:[%s11583_s26 + $0x210] ss:$8 sps:$4 sm:$0xff]  }
  0x39   :  { %243 = vmatmul.mubr.bf16.gmra.mrb[8].mxu0 %v92_v33  ;;  %v570_v33 = vld [vmem:[%s11584_s30 + $0x13] sm:$0xff] }
  0x3a   :  { %340 = vmatpush1.bf16.msra.mxu0 %v7973_v34  ;;  %363 = vmatprep.mubr.bf16.mxu0 %v8939_v1  ;;  %v571_v34 = vld [vmem:[%s11584_s30 + $0x1b] sm:$0xff] }
  0x3b   :  { %341 = vmatprep.subr.bf16.mxu0 %v7978_v35  ;;  %v8041_v35 = vld [vmem:[%s11583_s26 + $0x224] ss:$8 sps:$4 sm:$0xff]  }
  0x3e   :  { %342 = vmatpush1.bf16.msra.mxu0 %v7976_v36  ;;  %v574_v36 = vpack.c.bf16 %v571_v34, %v570_v33  ;;  %v8110_v33 = vld [vmem:[%s11564_s5 + $0x110] ss:$8 sps:$4 sm:$0xff]   ;;  %v8111_v34 = vld [vmem:[%s11564_s5 + $0x124] ss:$8 sps:$4 sm:$0xff]  }
  0x3f   :  { %343 = vmatprep.subr.bf16.mxu0 %v7981_v37  ;;  %v8039_v37 = vld [vmem:[%s11583_s26 + $0x220] ss:$8 sps:$4 sm:$0xff]  }
  0x42   :  { %344 = vmatpush1.bf16.msra.mxu0 %v7979_v38  ;;  %v8044_v38 = vld [vmem:[%s11583_s26 + $0x234] ss:$8 sps:$4 sm:$0xff]  }
  0x43   :  { %345 = vmatprep.subr.bf16.mxu0 %v7984_v39  ;;  %v8042_v39 = vld [vmem:[%s11583_s26 + $0x230] ss:$8 sps:$4 sm:$0xff]  }
  0x46   :  { %346 = vmatpush1.bf16.msra.mxu0 %v7982_v40  ;;  %v572_v40 = vld [vmem:[%s11584_s30 + $0x23] sm:$0xff] }
  0x47   :  { %497 = vmatprep.subr.bf16.mxu0 %v7987_v43  ;;  %v575_v42 = vpack.c.bf16 %v572_v40, %v572_v40  ;;  %v8045_v43 = vld [vmem:[%s11583_s26 + $0x240] ss:$8 sps:$4 sm:$0xff]   ;;  %v8120_v40 = vld [vmem:[%s11564_s5 + $0x154] ss:$8 sps:$4 sm:$0xff]  }
  0x49   :  { %364 = vmatmul.mubr.bf16.vlgmr.msra.gmra.mrb[0].mxu0 %v66_v44  ;;  %v8050_v44 = vld [vmem:[%s11583_s26 + $0x254] ss:$8 sps:$4 sm:$0xff]  }
  0x4a   :  { %498 = vmatpush1.bf16.msra.mxu0 %v7985_v45  ;;  %373 = vmatprep.mubr.bf16.mxu0 %v8939_v1  ;;  %v8048_v45 = vld [vmem:[%s11583_s26 + $0x250] ss:$8 sps:$4 sm:$0xff]  }
  0x4b   :  { %499 = vmatprep.subr.bf16.mxu0 %v7990_v46  ;;  %v8053_v46 = vld [vmem:[%s11583_s26 + $0x264] ss:$8 sps:$4 sm:$0xff]  }
  0x4e   :  { %500 = vmatpush1.bf16.msra.mxu0 %v7988_v47  ;;  %v8051_v47 = vld [vmem:[%s11583_s26 + $0x260] ss:$8 sps:$4 sm:$0xff]  }
  0x4f   :  { %501 = vmatprep.subr.bf16.mxu0 %v7993_v50  ;;  %v744_v50 = vld [vmem:[%s11584_s30 + $0x4] sm:$0xff] }
  0x51   :  { %374 = vmatmul.mubr.bf16.gmra.mrb[4].mxu0 %v67_v51  ;;  %v745_v51 = vld [vmem:[%s11584_s30 + $0xc] sm:$0xff] }
  0x52   :  { %502 = vmatpush1.bf16.msra.mxu0 %v7991_v52  ;;  %383 = vmatprep.mubr.bf16.mxu0 %v8939_v1  ;;  %v749_v52 = vpack.c.bf16 %v745_v51, %v744_v50  ;;  %v8128_v51 = vld [vmem:[%s11564_s5 + $0x170] ss:$8 sps:$4 sm:$0xff]  }
  0x53   :  { %503 = vmatprep.subr.bf16.mxu0 %v7996_v53  ;;  %v746_v53 = vld [vmem:[%s11584_s30 + $0x14] sm:$0xff] }
  0x56   :  { %504 = vmatpush1.bf16.msra.mxu0 %v7994_v54  ;;  %v747_v54 = vld [vmem:[%s11584_s30 + $0x1c] sm:$0xff] }
  0x57   :  { %505 = vmatprep.subr.bf16.mxu0 %v7999_v56  ;;  %v750_v55 = vpack.c.bf16 %v747_v54, %v746_v53  ;;  %v748_v56 = vld [vmem:[%s11584_s30 + $0x24] sm:$0xff] }
  0x58   :  { %v8131_v53 = vld [vmem:[%s11564_s5 + $0x180] ss:$8 sps:$4 sm:$0xff]  }
  0x59   :  { %384 = vmatmul.mubr.bf16.gmra.mrb[12].mxu0 %v68_v57  ;;  %v8057_v57 = vld [vmem:[%s11563_s3] ss:$8 sps:$4 sm:$0xff]  }
  0x5a   :  { %506 = vmatpush1.bf16.msra.mxu0 %v7997_v58  ;;  %529 = vmatprep.mubr.bf16.mxu0 %v8939_v1  ;;  %v8059_v58 = vld [vmem:[%s11563_s3 + $0x4] ss:$8 sps:$4 sm:$0xff]  }
  0x5b   :  { %507 = vmatprep.subr.bf16.mxu0 %v8002_v59  ;;  %v8060_v59 = vld [vmem:[%s11563_s3 + $0x10] ss:$8 sps:$4 sm:$0xff]  }
  0x5e   :  { %508 = vmatpush1.bf16.msra.mxu0 %v8000_v60  ;;  %v8062_v60 = vld [vmem:[%s11563_s3 + $0x14] ss:$8 sps:$4 sm:$0xff]  }
  0x5f   :  { %509 = vmatprep.subr.bf16.mxu0 %v8005_v61  ;;  %v751_v61 = vpack.c.bf16 %v748_v56, %v748_v56 }
  0x62   :  { %510 = vmatpush1.bf16.msra.mxu0 %v8003_v62  ;;  %v8065_v62 = vld [vmem:[%s11563_s3 + $0x24] ss:$8 sps:$4 sm:$0xff]  }
  0x63   :  { %511 = vmatprep.subr.bf16.mxu0 %v8008_v63  ;;  %v8068_v63 = vld [vmem:[%s11563_s3 + $0x34] ss:$8 sps:$4 sm:$0xff]  }
  0x66   :  { %512 = vmatpush1.bf16.msra.mxu0 %v8006_v0  ;;  %v8066_v0 = vld [vmem:[%s11563_s3 + $0x30] ss:$8 sps:$4 sm:$0xff]  }
  0x67   :  { %673 = vmatprep.subr.bf16.mxu0 %v8011_v4  ;;  %v8074_v4 = vld [vmem:[%s11563_s3 + $0x54] ss:$8 sps:$4 sm:$0xff]  }
  0x69   :  { %530 = vmatmul.mubr.bf16.vlgmr.msra.gmra.mrb[0].mxu0 %v397_v5  ;;  %v8072_v5 = vld [vmem:[%s11563_s3 + $0x50] ss:$8 sps:$4 sm:$0xff]  }
  0x6a   :  { %674 = vmatpush1.bf16.msra.mxu0 %v8009_v6  ;;  %539 = vmatprep.mubr.bf16.mxu0 %v8939_v1  ;;  %v8077_v6 = vld [vmem:[%s11563_s3 + $0x64] ss:$8 sps:$4 sm:$0xff]  }
  0x6b   :  { %675 = vmatprep.subr.bf16.mxu0 %v8014_v7  ;;  %v8075_v7 = vld [vmem:[%s11563_s3 + $0x60] ss:$8 sps:$4 sm:$0xff]  }
  0x6e   :  { %676 = vmatpush1.bf16.msra.mxu0 %v8012_v8  ;;  %v8080_v8 = vld [vmem:[%s11563_s3 + $0x74] ss:$8 sps:$4 sm:$0xff]  }
  0x6f   :  { %677 = vmatprep.subr.bf16.mxu0 %v8017_v11  ;;  %v8081_v11 = vld [vmem:[%s11563_s3 + $0x80] ss:$8 sps:$4 sm:$0xff]  }
  0x71   :  { %540 = vmatmul.mubr.bf16.gmra.mrb[4].mxu0 %v398_v12  ;;  %v8086_v12 = vld [vmem:[%s11563_s3 + $0x94] ss:$8 sps:$4 sm:$0xff]  }
  0x72   :  { %678 = vmatpush1.bf16.msra.mxu0 %v8015_v13  ;;  %549 = vmatprep.mubr.bf16.mxu0 %v8939_v1  ;;  %v8084_v13 = vld [vmem:[%s11563_s3 + $0x90] ss:$8 sps:$4 sm:$0xff]  }
  0x73   :  { %679 = vmatprep.subr.bf16.mxu0 %v8020_v14  ;;  %v8089_v14 = vld [vmem:[%s11563_s3 + $0xa4] ss:$8 sps:$4 sm:$0xff]  }
  0x76   :  { %680 = vmatpush1.bf16.msra.mxu0 %v8018_v15  ;;  %v8087_v15 = vld [vmem:[%s11563_s3 + $0xa0] ss:$8 sps:$4 sm:$0xff]  }
  0x77   :  { %681 = vmatprep.subr.bf16.mxu0 %v8023_v17  ;;  %v8090_v17 = vld [vmem:[%s11563_s3 + $0xb0] ss:$8 sps:$4 sm:$0xff]  }
  0x79   :  { %550 = vmatmul.mubr.bf16.gmra.mrb[16].mxu0 %v399_v18  ;;  %v8095_v18 = vld [vmem:[%s11563_s3 + $0xc4] ss:$8 sps:$4 sm:$0xff]  }
  0x7a   :  { %682 = vmatpush1.bf16.msra.mxu0 %v8021_v19  ;;  %705 = vmatprep.mubr.bf16.mxu0 %v8939_v1  ;;  %v8093_v19 = vld [vmem:[%s11563_s3 + $0xc0] ss:$8 sps:$4 sm:$0xff]  }
  0x7b   :  { %683 = vmatprep.subr.bf16.mxu0 %v8026_v20  ;;  %v8098_v20 = vld [vmem:[%s11563_s3 + $0xd4] ss:$8 sps:$4 sm:$0xff]  }
  0x7e   :  { %684 = vmatpush1.bf16.msra.mxu0 %v8024_v21  ;;  %v8096_v21 = vld [vmem:[%s11563_s3 + $0xd0] ss:$8 sps:$4 sm:$0xff]  }
  0x7f   :  { %685 = vmatprep.subr.bf16.mxu0 %v8029_v22  ;;  %v8101_v22 = vld [vmem:[%s11563_s3 + $0xe4] ss:$8 sps:$4 sm:$0xff]  }
  0x82   :  { %686 = vmatpush1.bf16.msra.mxu0 %v8027_v23  ;;  %v8099_v23 = vld [vmem:[%s11563_s3 + $0xe0] ss:$8 sps:$4 sm:$0xff]  }
  0x83   :  { %687 = vmatprep.subr.bf16.mxu0 %v8032_v24  ;;  %v8104_v24 = vld [vmem:[%s11563_s3 + $0xf4] ss:$8 sps:$4 sm:$0xff]  }
  0x86   :  { %688 = vmatpush1.bf16.msra.mxu0 %v8030_v25  ;;  %v8102_v25 = vld [vmem:[%s11563_s3 + $0xf0] ss:$8 sps:$4 sm:$0xff]  }
  0x87   :  { %849 = vmatprep.subr.bf16.mxu0 %v8035_v28 }
  0x89   :  { %706 = vmatmul.mubr.bf16.vlgmr.msra.gmra.mrb[0].mxu0 %v573_v29 }
  0x8a   :  { %850 = vmatpush1.bf16.msra.mxu0 %v8033_v30  ;;  %715 = vmatprep.mubr.bf16.mxu0 %v8939_v1  ;;  %v8105_v30 = vld [vmem:[%s11564_s5 + $0x104] ss:$8 sps:$4 sm:$0xff]  }
  0x8b   :  { %851 = vmatprep.subr.bf16.mxu0 %v8038_v31  ;;  %v8107_v31 = vld [vmem:[%s11564_s5 + $0x100] ss:$8 sps:$4 sm:$0xff]   ;;  %1547 = vmatprep.subr.bf16.mxu1 %v8105_v30 }
  0x8c   :  { %1548 = vmatpush1.bf16.msra.mxu1 %v8107_v31 }
  0x8e   :  { %852 = vmatpush1.bf16.msra.mxu0 %v8036_v32  ;;  %v8108_v32 = vld [vmem:[%s11564_s5 + $0x114] ss:$8 sps:$4 sm:$0xff]  }
  0x8f   :  { %853 = vmatprep.subr.bf16.mxu0 %v8041_v35  ;;  %1549 = vmatprep.subr.bf16.mxu1 %v8108_v32  ;;  %v8113_v35 = vld [vmem:[%s11564_s5 + $0x120] ss:$8 sps:$4 sm:$0xff]  }
  0x90   :  { %1550 = vmatpush1.bf16.msra.mxu1 %v8110_v33 }
  0x91   :  { %716 = vmatmul.mubr.bf16.gmra.mrb[4].mxu0 %v574_v36  ;;  %1551 = vmatprep.subr.bf16.mxu1 %v8111_v34  ;;  %v8114_v36 = vld [vmem:[%s11564_s5 + $0x134] ss:$8 sps:$4 sm:$0xff]  }
  0x92   :  { %854 = vmatpush1.bf16.msra.mxu0 %v8039_v37  ;;  %725 = vmatprep.mubr.bf16.mxu0 %v8939_v1  ;;  %v8116_v37 = vld [vmem:[%s11564_s5 + $0x130] ss:$8 sps:$4 sm:$0xff]  }
  0x93   :  { %855 = vmatprep.subr.bf16.mxu0 %v8044_v38  ;;  %v8117_v38 = vld [vmem:[%s11564_s5 + $0x144] ss:$8 sps:$4 sm:$0xff]  }
  0x94   :  { %1552 = vmatpush1.bf16.msra.mxu1 %v8113_v35 }
  0x95   :  { %1553 = vmatprep.subr.bf16.mxu1 %v8114_v36 }
  0x96   :  { %856 = vmatpush1.bf16.msra.mxu0 %v8042_v39  ;;  %v8119_v39 = vld [vmem:[%s11564_s5 + $0x140] ss:$8 sps:$4 sm:$0xff]  }
  0x97   :  { %857 = vmatprep.subr.bf16.mxu0 %v8047_v41  ;;  %v8122_v41 = vld [vmem:[%s11564_s5 + $0x150] ss:$8 sps:$4 sm:$0xff]  }
  0x98   :  { %1554 = vmatpush1.bf16.msra.mxu1 %v8116_v37 }
  0x99   :  { %726 = vmatmul.mubr.bf16.gmra.mrb[20].mxu0 %v575_v42  ;;  %1555 = vmatprep.subr.bf16.mxu1 %v8117_v38  ;;  %v8123_v42 = vld [vmem:[%s11564_s5 + $0x164] ss:$8 sps:$4 sm:$0xff]  }
  0x9a   :  { %858 = vmatpush1.bf16.msra.mxu0 %v8045_v43  ;;  %881 = vmatprep.mubr.bf16.mxu0 %v8939_v1 }
  0x9b   :  { %859 = vmatprep.subr.bf16.mxu0 %v8050_v44 }
  0x9c   :  { %1556 = vmatpush1.bf16.msra.mxu1 %v8119_v39 }
  0x9d   :  { %1557 = vmatprep.subr.bf16.mxu1 %v8120_v40 }
  0x9e   :  { %860 = vmatpush1.bf16.msra.mxu0 %v8048_v45 }
  0x9f   :  { %861 = vmatprep.subr.bf16.mxu0 %v8053_v46  ;;  %v8125_v46 = vld [vmem:[%s11564_s5 + $0x160] ss:$8 sps:$4 sm:$0xff]  }
  0xa0   :  { %1558 = vmatpush1.bf16.msra.mxu1 %v8122_v41 }
  0xa1   :  { %1559 = vmatprep.subr.bf16.mxu1 %v8123_v42 }
  0xa2   :  { %862 = vmatpush1.bf16.msra.mxu0 %v8051_v47 }
  0xa3   :  { %863 = vmatprep.subr.bf16.mxu0 %v8056_v48 }
  0xa4   :  { %1560 = vmatpush1.bf16.msra.mxu1 %v8125_v46 }
  0xa6   :  { %864 = vmatpush1.bf16.msra.mxu0 %v8054_v49  ;;  %v8126_v49 = vld [vmem:[%s11564_s5 + $0x174] ss:$8 sps:$4 sm:$0xff]  }
  0xa7   :  { %1162 = vmatprep.subr.bf16.mxu0 %v8059_v58  ;;  %1561 = vmatprep.subr.bf16.mxu1 %v8126_v49  ;;  %v8940_v49 = vmov 0.0  }
  0xa8   :  { %1562 = vmatpush1.bf16.msra.mxu1 %v8128_v51  ;;  %57 = vst [vmem:[#allocation2] sm:$0xff] %v8940_v49  ;;  %58 = vst [vmem:[#allocation2 + $0x8] sm:$0xff] %v8940_v49  ;;  %v8134_v51 = vld [vmem:[%s11564_s5 + $0x190] ss:$8 sps:$4 sm:$0xff]  }
  0xa9   :  { %882 = vmatmul.mubr.bf16.vlgmr.msra.gmra.mrb[0].mxu0 %v749_v52  ;;  %v8129_v52 = vld [vmem:[%s11564_s5 + $0x184] ss:$8 sps:$4 sm:$0xff]   ;;  %59 = vst [vmem:[#allocation2 + $0x60] sm:$0xff] %v8940_v49  ;;  %60 = vst [vmem:[#allocation2 + $0x68] sm:$0xff] %v8940_v49 }
  0xaa   :  { %891 = vmatprep.mubr.bf16.mxu0 %v8939_v1  ;;  %1163 = vmatpush1.bf16.msra.mxu0 %v8057_v57 }
  0xab   :  { %1164 = vmatprep.subr.bf16.mxu0 %v8062_v60  ;;  %1563 = vmatprep.subr.bf16.mxu1 %v8129_v52  ;;  %v8135_v52 = vld [vmem:[%s11564_s5 + $0x1a4] ss:$8 sps:$4 sm:$0xff]  }
  0xac   :  { %1564 = vmatpush1.bf16.msra.mxu1 %v8131_v53  ;;  %v8137_v53 = vld [vmem:[%s11564_s5 + $0x1a0] ss:$8 sps:$4 sm:$0xff]  }
  0xae   :  { %1165 = vmatpush1.bf16.msra.mxu0 %v8060_v59 }
  0xaf   :  { %1166 = vmatprep.subr.bf16.mxu0 %v8065_v62 }
  0xb1   :  { %892 = vmatmul.mubr.bf16.gmra.mrb[4].mxu0 %v750_v55 }
  0xb2   :  { %901 = vmatprep.mubr.bf16.mxu0 %v8939_v1  ;;  %v8063_v1 = vld [vmem:[%s11563_s3 + $0x20] ss:$8 sps:$4 sm:$0xff]  }
  0xb3   :  { %1167 = vmatpush1.bf16.msra.mxu0 %v8063_v1  ;;  %v922_v1 = vlaneseq }
  0xb4   :  { %1168 = vmatprep.subr.bf16.mxu0 %v8068_v63 }
  0xb7   :  { %1169 = vmatpush1.bf16.msra.mxu0 %v8066_v0 }
  0xb8   :  { %1170 = vmatprep.subr.bf16.mxu0 %v8071_v2 }
  0xb9   :  { %902 = vmatmul.mubr.bf16.gmra.mrb[24].mxu0 %v751_v61 }
  0xbb   :  { %1171 = vmatpush1.bf16.msra.mxu0 %v8069_v3  ;;  %v923_v3 = vshrl.u32 %v922_v1, 7  ;;  %v8152_v1 = vld [vmem:[%s11564_s5 + $0x1f0] ss:$8 sps:$4 sm:$0xff]  }
  0xbc   :  { %1172 = vmatprep.subr.bf16.mxu0 %v8074_v4 }
  0xbd   :  { %v9511_v4 = vsub.s32 0, %v923_v3 }
  0xbf   :  { %1173 = vmatpush1.bf16.msra.mxu0 %v8072_v5  ;;  %v920_v5 = vld [vmem:[%s11565_s2] sm:$0x3] }
  0xc0   :  { %1174 = vmatprep.subr.bf16.mxu0 %v8077_v6  ;;  %v9516_v6 = vsub.s32 1, %v923_v3 }
  0xc3   :  { %1175 = vmatpush1.bf16.msra.mxu0 %v8075_v7  ;;  %v925_v7 = vrot.slane %v920_v5, %v9511_v4 }
  0xc4   :  { %1176 = vmatprep.subr.bf16.mxu0 %v8080_v8  ;;  %v929_v8 = vrot.slane %v920_v5, %v9516_v6 }
  0xc7   :  { %1177 = vmatpush1.bf16.msra.mxu0 %v8078_v9 }
  0xc8   :  { %1178 = vmatprep.subr.bf16.mxu0 %v8083_v10 }
  0xcb   :  { %1179 = vmatpush1.bf16.msra.mxu0 %v8081_v11 }
  0xcc   :  { %1180 = vmatprep.subr.bf16.mxu0 %v8086_v12 }
  0xcf   :  { %1181 = vmatpush1.bf16.msra.mxu0 %v8084_v13 }
  0xd0   :  { %1182 = vmatprep.subr.bf16.mxu0 %v8089_v14 }
  0xd3   :  { %1183 = vmatpush1.bf16.msra.mxu0 %v8087_v15 }
  0xd4   :  { %1184 = vmatprep.subr.bf16.mxu0 %v8092_v16 }
  0xd7   :  { %1185 = vmatpush1.bf16.msra.mxu0 %v8090_v17 }
  0xd8   :  { %1186 = vmatprep.subr.bf16.mxu0 %v8095_v18 }
  0xdb   :  { %1187 = vmatpush1.bf16.msra.mxu0 %v8093_v19 }
  0xdc   :  { %1188 = vmatprep.subr.bf16.mxu0 %v8098_v20 }
  0xdf   :  { %1189 = vmatpush1.bf16.msra.mxu0 %v8096_v21 }
  0xe0   :  { %1190 = vmatprep.subr.bf16.mxu0 %v8101_v22 }
  0xe3   :  { %1191 = vmatpush1.bf16.msra.mxu0 %v8099_v23 }
  0xe4   :  { %1192 = vmatprep.subr.bf16.mxu0 %v8104_v24 }
  0xe7   :  { %1193 = vmatpush1.bf16.msra.mxu0 %v8102_v25 }
 0x10c   :  { %v244_v26 = vpop.f32.mrb[8].mxu0 }
 0x10d   :  { %v246_v27 = vpop.f32.mrb[9].mxu0 }
 0x10e   :  { %v248_v28 = vpop.f32.mrb[10].mxu0 }
 0x10f   :  { %v249_v29 = vpop.f32.mrb[11].mxu0 }
 0x12c   :  { %v385_v43 = vpop.f32.mrb[12].mxu0 }
 0x12d   :  { %v386_v44 = vadd.f32 %v385_v43, %v244_v26  ;;  %v387_v45 = vpop.f32.mrb[13].mxu0 }
 0x12e   :  { %v388_v47 = vadd.f32 %v387_v45, %v246_v27  ;;  %v389_v48 = vpop.f32.mrb[14].mxu0 }
 0x12f   :  { %v390_v50 = vpop.f32.mrb[15].mxu0 }
 0x130   :  { %v8132_v50 = vld [vmem:[%s11564_s5 + $0x194] ss:$8 sps:$4 sm:$0xff]  }
 0x131   :  { %1565 = vmatprep.subr.bf16.mxu1 %v8132_v50 }
 0x132   :  { %1566 = vmatpush1.bf16.msra.mxu1 %v8134_v51 }
 0x133   :  { %1567 = vmatprep.subr.bf16.mxu1 %v8135_v52 }
 0x136   :  { %1568 = vmatpush1.bf16.msra.mxu1 %v8137_v53 }
 0x14c   :  { %v551_v54 = vpop.f32.mrb[16].mxu0 }
 0x14d   :  { %v566_v55 = vadd.f32 %v551_v54, %v386_v44  ;;  %v553_v56 = vpop.f32.mrb[17].mxu0  ;;  %v8138_v54 = vld [vmem:[%s11564_s5 + $0x1b4] ss:$8 sps:$4 sm:$0xff]  }
 0x14e   :  { %v567_v57 = vadd.f32 %v553_v56, %v388_v47  ;;  %v555_v58 = vpop.f32.mrb[18].mxu0  ;;  %1569 = vmatprep.subr.bf16.mxu1 %v8138_v54  ;;  %v8141_v56 = vld [vmem:[%s11564_s5 + $0x1c4] ss:$8 sps:$4 sm:$0xff]  }
 0x14f   :  { %v556_v59 = vpop.f32.mrb[19].mxu0  ;;  %v8144_v58 = vld [vmem:[%s11564_s5 + $0x1d4] ss:$8 sps:$4 sm:$0xff]  }
 0x150   :  { %v8146_v59 = vld [vmem:[%s11564_s5 + $0x1d0] ss:$8 sps:$4 sm:$0xff]  }
 0x16c   :  { %v727_v60 = vpop.f32.mrb[20].mxu0 }
 0x16d   :  { %v742_v61 = vadd.f32 %v727_v60, %v566_v55  ;;  %v729_v62 = vpop.f32.mrb[21].mxu0  ;;  %v8140_v55 = vld [vmem:[%s11564_s5 + $0x1b0] ss:$8 sps:$4 sm:$0xff]   ;;  %v8147_v60 = vld [vmem:[%s11564_s5 + $0x1e4] ss:$8 sps:$4 sm:$0xff]  }
 0x16e   :  { %v743_v63 = vadd.f32 %v729_v62, %v567_v57  ;;  %v731_v0 = vpop.f32.mrb[22].mxu0  ;;  %1570 = vmatpush1.bf16.msra.mxu1 %v8140_v55  ;;  %v8143_v57 = vld [vmem:[%s11564_s5 + $0x1c0] ss:$8 sps:$4 sm:$0xff]   ;;  %v8150_v62 = vld [vmem:[%s11564_s5 + $0x1f4] ss:$8 sps:$4 sm:$0xff]  }
 0x16f   :  { %v732_v2 = vpop.f32.mrb[23].mxu0  ;;  %1571 = vmatprep.subr.bf16.mxu1 %v8141_v56  ;;  %v990_v0 = vld [vmem:[%s11566_s4] sm:$0x3] }
 0x170   :  { %v9573_v2 = vrot.slane %v990_v0, %v9511_v4  ;;  %v9576_v3 = vrot.slane %v990_v0, %v9516_v6 }
 0x172   :  { %1572 = vmatpush1.bf16.msra.mxu1 %v8143_v57 }
 0x173   :  { %1573 = vmatprep.subr.bf16.mxu1 %v8144_v58 }
 0x176   :  { %1574 = vmatpush1.bf16.msra.mxu1 %v8146_v59 }
 0x177   :  { %1575 = vmatprep.subr.bf16.mxu1 %v8147_v60 }
 0x17c   :  { %v883_v9 = vpop.f32.mrb[0].mxu0 }
 0x17d   :  { %v932_v10 = vadd.f32 %v925_v7, %v883_v9  ;;  %v885_v11 = vpop.f32.mrb[1].mxu0 }
 0x17e   :  { %v933_v12 = vadd.f32 %v929_v8, %v885_v11  ;;  %v887_v13 = vpop.f32.mrb[2].mxu0 }
 0x17f   :  { %v934_v14 = vadd.f32 %v925_v7, %v887_v13  ;;  %v889_v15 = vpop.f32.mrb[3].mxu0  ;;  %v942_v17 = vmax.f32 %v932_v10, 0.0 }
 0x180   :  { %v935_v16 = vadd.f32 %v929_v8, %v889_v15  ;;  %v943_v19 = vmax.f32 %v933_v12, 0.0 }
 0x181   :  { %v944_v18 = vmax.f32 %v934_v14, 0.0 }
 0x182   :  { %v945_v20 = vmax.f32 %v935_v16, 0.0 }
 0x183   :  { %v952_v21 = vpack.c.bf16 %v944_v18, %v942_v17 }
 0x184   :  { %v953_v22 = vpack.c.bf16 %v945_v20, %v943_v19  ;;  %v893_v23 = vpop.f32.mrb[4].mxu0 }
 0x185   :  { %v936_v24 = vadd.f32 %v925_v7, %v893_v23  ;;  %v895_v25 = vpop.f32.mrb[5].mxu0  ;;  %v1288_v23 = vld [vmem:[#allocation2 + $0x8] sm:$0x80] }
 0x186   :  { %v937_v26 = vadd.f32 %v929_v8, %v895_v25  ;;  %v897_v27 = vpop.f32.mrb[6].mxu0  ;;  %1194 = vmatprep.mubr.bf16.mxu0 %v953_v22  ;;  %v1237_v25 = vld [vmem:[#allocation2] sm:$0xc0] }
 0x187   :  { %v938_v28 = vadd.f32 %v925_v7, %v897_v27  ;;  %v899_v29 = vpop.f32.mrb[7].mxu0  ;;  %1195 = vmatmul.mubr.bf16.vlgmr.msra.gmra.mrb[28].mxu0 %v952_v21  ;;  %v946_v31 = vmax.f32 %v936_v24, 0.0  ;;  %v1287_v21 = vld [vmem:[#allocation2] sm:$0x80]  ;;  %v1238_v27 = vld [vmem:[#allocation2 + $0x8] sm:$0xc0] }
 0x188   :  { %v939_v30 = vadd.f32 %v929_v8, %v899_v29  ;;  %v947_v33 = vmax.f32 %v937_v26, 0.0 }
 0x189   :  { %v948_v32 = vmax.f32 %v938_v28, 0.0 }
 0x18a   :  { %v949_v34 = vmax.f32 %v939_v30, 0.0 }
 0x18b   :  { %v954_v35 = vpack.c.bf16 %v948_v32, %v946_v31 }
 0x18c   :  { %v955_v36 = vpack.c.bf16 %v949_v34, %v947_v33  ;;  %v903_v37 = vpop.f32.mrb[24].mxu0 }
 0x18d   :  { %v918_v38 = vadd.f32 %v903_v37, %v742_v61  ;;  %v905_v39 = vpop.f32.mrb[25].mxu0  ;;  %v8149_v61 = vld [vmem:[%s11564_s5 + $0x1e0] ss:$8 sps:$4 sm:$0xff]  }
 0x18e   :  { %v919_v40 = vadd.f32 %v905_v39, %v743_v63  ;;  %1204 = vmatprep.mubr.bf16.mxu0 %v955_v36  ;;  %v907_v41 = vpop.f32.mrb[26].mxu0  ;;  %1576 = vmatpush1.bf16.msra.mxu1 %v8149_v61  ;;  %v8155_v63 = vld [vmem:[%s11564_s5 + $0x4] ss:$8 sps:$4 sm:$0xff]  }
 0x18f   :  { %v940_v42 = vadd.f32 %v925_v7, %v918_v38  ;;  %1205 = vmatmul.mubr.bf16.gmra.mrb[32].mxu0 %v954_v35  ;;  %v908_v43 = vpop.f32.mrb[27].mxu0  ;;  %1577 = vmatprep.subr.bf16.mxu1 %v8150_v62 }
 0x190   :  { %v941_v44 = vadd.f32 %v929_v8, %v919_v40 }
 0x191   :  { %v950_v45 = vmax.f32 %v940_v42, 0.0 }
 0x192   :  { %v951_v46 = vmax.f32 %v941_v44, 0.0  ;;  %1578 = vmatpush1.bf16.msra.mxu1 %v8152_v1 }
 0x193   :  { %v956_v48 = vpack.c.bf16 %v950_v45, %v950_v45  ;;  %1791 = vmatprep.subr.bf16.mxu1 %v8155_v63 }
 0x194   :  { %v957_v47 = vpack.c.bf16 %v951_v46, %v951_v46 }
 0x196   :  { %1214 = vmatprep.mubr.bf16.mxu0 %v957_v47 }
 0x197   :  { %1215 = vmatmul.mubr.bf16.gmra.mrb[36].mxu0 %v956_v48 }
 0x25a   :  { %v1196_v5 = vpop.f32.mrb[28].mxu0 }
 0x25b   :  { %v9579_v7 = vadd.f32 %v1196_v5, %v9573_v2  ;;  %v1198_v8 = vpop.f32.mrb[29].mxu0 }
 0x25c   :  { %v9582_v9 = vadd.f32 %v1198_v8, %v9576_v3  ;;  %v1200_v10 = vpop.f32.mrb[30].mxu0 }
 0x25d   :  { %1223 = vst [vmem:[#allocation2 + $0x10] sm:$0xff] %v9579_v7  ;;  %v9586_v11 = vadd.f32 %v1200_v10, %v9573_v2  ;;  %v1202_v12 = vpop.f32.mrb[31].mxu0  ;;  %v1291_v24 = vpack.c.bf16 %v9579_v7, %v1287_v21  ;;  %v1249_v29 = vpack.c.bf16 %v9579_v7, %v1237_v25 }
 0x25e   :  { %1224 = vst [vmem:[#allocation2 + $0x18] sm:$0xff] %v9582_v9  ;;  %v9590_v13 = vadd.f32 %v1202_v12, %v9576_v3  ;;  %v1292_v26 = vpack.c.bf16 %v9582_v9, %v1288_v23  ;;  %v1250_v34 = vpack.c.bf16 %v9582_v9, %v1238_v27 }
 0x25f   :  { %v1854_v14 = vpack.c.bf16 %v9586_v11, %v9579_v7  ;;  %v1330_v32 = vshrl.u32 %v1291_v24, 16  ;;  %v1333_v33 = vshll.u32 %v1291_v24, 16  ;;  %v1615_v43 = vrot.slane %v1249_v29, 3  ;;  %v8255_v7 = vld [vmem:[%s11564_s5 + $0x320] ss:$8 sps:$4 sm:$0xff]  }
 0x260   :  { %v1855_v15 = vpack.c.bf16 %v9590_v13, %v9582_v9  ;;  %v1347_v37 = vshrl.u32 %v1292_v26, 16  ;;  %v1350_v39 = vshll.u32 %v1292_v26, 16  ;;  %v1618_v47 = vrot.slane %v1250_v34, 3  ;;  %v8224_v9 = vld [vmem:[%s11564_s5 + $0x274] ss:$8 sps:$4 sm:$0xff]  }
 0x261   :  { %v1332_v45 = vrot.slane %v1330_v32, 3  ;;  %v1335_v46 = vrot.slane %v1333_v33, 4 }
 0x262   :  { %v1206_v16 = vpop.f32.mrb[32].mxu0  ;;  %v1349_v48 = vrot.slane %v1347_v37, 3  ;;  %v1352_v53 = vrot.slane %v1350_v39, 4 }
 0x263   :  { %v1207_v17 = vadd.f32 %v1206_v16, %v9573_v2  ;;  %v1208_v18 = vpop.f32.mrb[33].mxu0  ;;  %v1336_v1 = vor.u32 %v1335_v46, %v1332_v45  ;;  %v8153_v16 = vld [vmem:[%s11564_s5] ss:$8 sps:$4 sm:$0xff]   ;;  %v8164_v45 = vld [vmem:[%s11564_s5 + $0x34] ss:$8 sps:$4 sm:$0xff]  }
 0x264   :  { %v1209_v19 = vadd.f32 %v1208_v18, %v9576_v3  ;;  %v1210_v20 = vpop.f32.mrb[34].mxu0  ;;  %v1353_v5 = vor.u32 %v1352_v53, %v1349_v48  ;;  %v8162_v46 = vld [vmem:[%s11564_s5 + $0x30] ss:$8 sps:$4 sm:$0xff]   ;;  %v8165_v48 = vld [vmem:[%s11564_s5 + $0x40] ss:$8 sps:$4 sm:$0xff]  }
 0x265   :  { %1227 = vst [vmem:[#allocation2 + $0x30] sm:$0xff] %v1207_v17  ;;  %v1212_v22 = vpop.f32.mrb[35].mxu0  ;;  %v9621_v62 = vadd.f32 %v1210_v20, %v9573_v2  ;;  %v8171_v53 = vld [vmem:[%s11564_s5 + $0x60] ss:$8 sps:$4 sm:$0xff]  }
 0x266   :  { %1233 = vst [vmem:[#allocation2 + $0x30] sm:$0xf] %v8940_v49  ;;  %1228 = vst [vmem:[#allocation2 + $0x38] sm:$0xff] %v1209_v19  ;;  %v9624_v0 = vadd.f32 %v1212_v22, %v9576_v3 }
 0x267   :  { %1234 = vst [vmem:[#allocation2 + $0x38] sm:$0xf] %v8940_v49 }
 0x26a   :  { %v1216_v28 = vpop.f32.mrb[36].mxu0 }
 0x26b   :  { %v1217_v30 = vadd.f32 %v1216_v28, %v9573_v2  ;;  %v1218_v31 = vpop.f32.mrb[37].mxu0 }
 0x26c   :  { %v1219_v35 = vadd.f32 %v1218_v31, %v9576_v3  ;;  %v1220_v36 = vpop.f32.mrb[38].mxu0  ;;  %v8158_v3 = vld [vmem:[%s11564_s5 + $0x14] ss:$8 sps:$4 sm:$0xff]  }
 0x26d   :  { %1231 = vst [vmem:[#allocation2 + $0x50] sm:$0xff] %v1217_v30  ;;  %v1221_v38 = vpop.f32.mrb[39].mxu0  ;;  %v9606_v40 = vld [vmem:[#allocation2 + $0x30] sm:$0xff]  ;;  %v8161_v36 = vld [vmem:[%s11564_s5 + $0x24] ss:$8 sps:$4 sm:$0xff]  }
 0x26e   :  { %1235 = vst [vmem:[#allocation2 + $0x50] sm:$0xf0] %v8940_v49  ;;  %1232 = vst [vmem:[#allocation2 + $0x58] sm:$0xff] %v1219_v35  ;;  %v9609_v41 = vld [vmem:[#allocation2 + $0x38] sm:$0xff]  ;;  %v1251_v42 = vpack.c.bf16 %v9606_v40, %v9586_v11 }
 0x26f   :  { %1236 = vst [vmem:[#allocation2 + $0x58] sm:$0xf0] %v8940_v49  ;;  %v1252_v44 = vpack.c.bf16 %v9609_v41, %v9590_v13  ;;  %v8156_v30 = vld [vmem:[%s11564_s5 + $0x10] ss:$8 sps:$4 sm:$0xff]  }
 0x270   :  { %v1338_v50 = vshrl.u32 %v1251_v42, 16  ;;  %v1341_v51 = vshll.u32 %v1251_v42, 16  ;;  %v1616_v52 = vrot.slane %v1251_v42, 3  ;;  %v8159_v42 = vld [vmem:[%s11564_s5 + $0x20] ss:$8 sps:$4 sm:$0xff]  }
 0x271   :  { %v1355_v54 = vshrl.u32 %v1252_v44, 16  ;;  %v1358_v55 = vshll.u32 %v1252_v44, 16  ;;  %v1619_v56 = vrot.slane %v1252_v44, 3 }
 0x272   :  { %v1340_v57 = vrot.slane %v1338_v50, 3  ;;  %v1343_v58 = vrot.slane %v1341_v51, 4  ;;  %v9617_v59 = vsel %vm1614_vm0, %v1615_v43, %v1616_v52  ;;  %v8170_v50 = vld [vmem:[%s11564_s5 + $0x54] ss:$8 sps:$4 sm:$0xff]   ;;  %v8168_v51 = vld [vmem:[%s11564_s5 + $0x50] ss:$8 sps:$4 sm:$0xff]  }
 0x273   :  { %v1357_v49 = vrot.slane %v1355_v54, 3  ;;  %v1360_v60 = vrot.slane %v1358_v55, 4  ;;  %v1620_v61 = vsel %vm1614_vm0, %v1618_v47, %v1619_v56  ;;  %v8167_v47 = vld [vmem:[%s11564_s5 + $0x44] ss:$8 sps:$4 sm:$0xff]   ;;  %v8176_v54 = vld [vmem:[%s11564_s5 + $0x74] ss:$8 sps:$4 sm:$0xff]  }
 0x274   :  { %v1344_v63 = vor.u32 %v1343_v58, %v1340_v57  ;;  %v8174_v55 = vld [vmem:[%s11564_s5 + $0x70] ss:$8 sps:$4 sm:$0xff]   ;;  %v8177_v57 = vld [vmem:[%s11564_s5 + $0x80] ss:$8 sps:$4 sm:$0xff]   ;;  %v8182_v58 = vld [vmem:[%s11564_s5 + $0x94] ss:$8 sps:$4 sm:$0xff]  }
 0x275   :  { %v1361_v8 = vor.u32 %v1360_v60, %v1357_v49  ;;  %v1289_v10 = vld [vmem:[#allocation2 + $0x50] sm:$0x7f]  ;;  %v8185_v60 = vld [vmem:[%s11564_s5 + $0xa4] ss:$8 sps:$4 sm:$0xff]  }
 0x276   :  { %v1247_v12 = vld [vmem:[#allocation2 + $0x50] sm:$0x3f]  ;;  %v1345_v17 = vsel %vm1328_vm1, %v1336_v1, %v1344_v63  ;;  %v1290_v18 = vld [vmem:[#allocation2 + $0x58] sm:$0x7f]  ;;  %v1293_v19 = vpack.c.bf16 %v1289_v10, %v9621_v62 }
 0x277   :  { %v1248_v2 = vld [vmem:[#allocation2 + $0x58] sm:$0x3f]  ;;  %v1253_v20 = vpack.c.bf16 %v1247_v12, %v9621_v62  ;;  %v1362_v21 = vsel %vm1328_vm1, %v1353_v5, %v1361_v8  ;;  %v1294_v22 = vpack.c.bf16 %v1290_v18, %v9624_v0  ;;  %v8191_v5 = vld [vmem:[%s11564_s5 + $0xc4] ss:$8 sps:$4 sm:$0xff]  }
 0x278   :  { %v1254_v23 = vpack.c.bf16 %v1248_v2, %v9624_v0  ;;  %1579 = vmatprep.mubr.bf16.mxu1 %v1362_v21  ;;  %v1364_v24 = vshrl.u32 %v1293_v19, 16  ;;  %v1367_v25 = vshll.u32 %v1293_v19, 16  ;;  %v8180_v49 = vld [vmem:[%s11564_s5 + $0x90] ss:$8 sps:$4 sm:$0xff]   ;;  %v8188_v1 = vld [vmem:[%s11564_s5 + $0xb4] ss:$8 sps:$4 sm:$0xff]  }
 0x279   :  { %v9638_v26 = vrot.slane %v1253_v20, 3  ;;  %1580 = vmatmul.mubr.bf16.vlgmr.msra.gmra.mrb[0].mxu1 %v1345_v17  ;;  %v1373_v27 = vshrl.u32 %v1294_v22, 16  ;;  %v1376_v28 = vshll.u32 %v1294_v22, 16  ;;  %v8194_v10 = vld [vmem:[%s11564_s5 + $0xd4] ss:$8 sps:$4 sm:$0xff]  }
 0x27a   :  { %v9640_v29 = vrot.slane %v1254_v23, 3  ;;  %1792 = vmatpush1.bf16.msra.mxu1 %v8153_v16  ;;  %v1366_v31 = vrot.slane %v1364_v24, 3  ;;  %v1369_v32 = vrot.slane %v1367_v25, 4  ;;  %v8192_v12 = vld [vmem:[%s11564_s5 + $0xd0] ss:$8 sps:$4 sm:$0xff]  }
 0x27b   :  { %v9647_v33 = vsel %vm1614_vm0, %v1616_v52, %v9638_v26  ;;  %1793 = vmatprep.subr.bf16.mxu1 %v8158_v3  ;;  %v1375_v34 = vrot.slane %v1373_v27, 3  ;;  %v1378_v35 = vrot.slane %v1376_v28, 4  ;;  %v8173_v52 = vld [vmem:[%s11564_s5 + $0x64] ss:$8 sps:$4 sm:$0xff]   ;;  %v8195_v17 = vld [vmem:[%s11564_s5 + $0xe0] ss:$8 sps:$4 sm:$0xff]  }
 0x27c   :  { %v9654_v37 = vsel %vm1614_vm0, %v1619_v56, %v9640_v29  ;;  %v1370_v38 = vor.u32 %v1369_v32, %v1366_v31  ;;  %v8179_v56 = vld [vmem:[%s11564_s5 + $0x84] ss:$8 sps:$4 sm:$0xff]   ;;  %v8200_v18 = vld [vmem:[%s11564_s5 + $0xf4] ss:$8 sps:$4 sm:$0xff]   ;;  %v8198_v19 = vld [vmem:[%s11564_s5 + $0xf0] ss:$8 sps:$4 sm:$0xff]  }
 0x27d   :  { %v1379_v39 = vor.u32 %v1378_v35, %v1375_v34  ;;  %v8197_v16 = vld [vmem:[%s11564_s5 + $0xe4] ss:$8 sps:$4 sm:$0xff]   ;;  %v8201_v20 = vld [vmem:[%s11564_s5 + $0x200] ss:$8 sps:$4 sm:$0xff]   ;;  %v8206_v21 = vld [vmem:[%s11564_s5 + $0x214] ss:$8 sps:$4 sm:$0xff]  }
 0x27e   :  { %1794 = vmatpush1.bf16.msra.mxu1 %v8156_v30  ;;  %v1371_v43 = vsel %vm1328_vm1, %v1344_v63, %v1370_v38  ;;  %v8186_v63 = vld [vmem:[%s11564_s5 + $0xb0] ss:$8 sps:$4 sm:$0xff]   ;;  %v8203_v2 = vld [vmem:[%s11564_s5 + $0x204] ss:$8 sps:$4 sm:$0xff]   ;;  %v8207_v23 = vld [vmem:[%s11564_s5 + $0x220] ss:$8 sps:$4 sm:$0xff]  }
 0x27f   :  { %v1380_v44 = vsel %vm1328_vm1, %v1361_v8, %v1379_v39  ;;  %1795 = vmatprep.subr.bf16.mxu1 %v8161_v36  ;;  %v8189_v8 = vld [vmem:[%s11564_s5 + $0xc0] ss:$8 sps:$4 sm:$0xff]   ;;  %v8204_v3 = vld [vmem:[%s11564_s5 + $0x210] ss:$8 sps:$4 sm:$0xff]   ;;  %v8209_v22 = vld [vmem:[%s11564_s5 + $0x224] ss:$8 sps:$4 sm:$0xff]  }
 0x280   :  { %1589 = vmatprep.mubr.bf16.mxu1 %v1380_v44  ;;  %v8210_v24 = vld [vmem:[%s11564_s5 + $0x230] ss:$8 sps:$4 sm:$0xff]   ;;  %v8215_v25 = vld [vmem:[%s11564_s5 + $0x244] ss:$8 sps:$4 sm:$0xff]   ;;  %v8213_v27 = vld [vmem:[%s11564_s5 + $0x240] ss:$8 sps:$4 sm:$0xff]  }
 0x281   :  { %1590 = vmatmul.mubr.bf16.gmra.mrb[4].mxu1 %v1371_v43  ;;  %v8218_v28 = vld [vmem:[%s11564_s5 + $0x254] ss:$8 sps:$4 sm:$0xff]   ;;  %v8221_v30 = vld [vmem:[%s11564_s5 + $0x264] ss:$8 sps:$4 sm:$0xff]   ;;  %v8219_v31 = vld [vmem:[%s11564_s5 + $0x260] ss:$8 sps:$4 sm:$0xff]  }
 0x282   :  { %1796 = vmatpush1.bf16.msra.mxu1 %v8159_v42  ;;  %1599 = vmatprep.mubr.bf16.mxu1 %v1379_v39  ;;  %v8225_v32 = vld [vmem:[%s11564_s5 + $0x280] ss:$8 sps:$4 sm:$0xff]   ;;  %v8228_v34 = vld [vmem:[%s11564_s5 + $0x290] ss:$8 sps:$4 sm:$0xff]   ;;  %v8233_v35 = vld [vmem:[%s11564_s5 + $0x2a4] ss:$8 sps:$4 sm:$0xff]  }
 0x283   :  { %1797 = vmatprep.subr.bf16.mxu1 %v8164_v45  ;;  %v8231_v36 = vld [vmem:[%s11564_s5 + $0x2a0] ss:$8 sps:$4 sm:$0xff]   ;;  %v8239_v39 = vld [vmem:[%s11564_s5 + $0x2c4] ss:$8 sps:$4 sm:$0xff]   ;;  %v8242_v43 = vld [vmem:[%s11564_s5 + $0x2d4] ss:$8 sps:$4 sm:$0xff]  }
 0x284   :  { %v8237_v42 = vld [vmem:[%s11564_s5 + $0x2c0] ss:$8 sps:$4 sm:$0xff]   ;;  %v8240_v44 = vld [vmem:[%s11564_s5 + $0x2d0] ss:$8 sps:$4 sm:$0xff]   ;;  %v8245_v45 = vld [vmem:[%s11564_s5 + $0x2e4] ss:$8 sps:$4 sm:$0xff]  }
 0x286   :  { %1798 = vmatpush1.bf16.msra.mxu1 %v8162_v46  ;;  %v8243_v46 = vld [vmem:[%s11564_s5 + $0x2e0] ss:$8 sps:$4 sm:$0xff]  }
 0x287   :  { %1799 = vmatprep.subr.bf16.mxu1 %v8167_v47  ;;  %v8248_v47 = vld [vmem:[%s11564_s5 + $0x2f4] ss:$8 sps:$4 sm:$0xff]  }
 0x289   :  { %1600 = vmatmul.mubr.bf16.gmra.mrb[8].mxu1 %v1370_v38  ;;  %v8234_v38 = vld [vmem:[%s11564_s5 + $0x2b0] ss:$8 sps:$4 sm:$0xff]  }
 0x28a   :  { %1800 = vmatpush1.bf16.msra.mxu1 %v8165_v48  ;;  %1823 = vmatprep.mubr.bf16.mxu1 %v1620_v61  ;;  %v8183_v61 = vld [vmem:[%s11564_s5 + $0xa0] ss:$8 sps:$4 sm:$0xff]   ;;  %v8246_v48 = vld [vmem:[%s11564_s5 + $0x2f0] ss:$8 sps:$4 sm:$0xff]  }
 0x28b   :  { %1801 = vmatprep.subr.bf16.mxu1 %v8170_v50  ;;  %v8251_v50 = vld [vmem:[%s11564_s5 + $0x304] ss:$8 sps:$4 sm:$0xff]  }
 0x28e   :  { %1802 = vmatpush1.bf16.msra.mxu1 %v8168_v51  ;;  %v8249_v51 = vld [vmem:[%s11564_s5 + $0x300] ss:$8 sps:$4 sm:$0xff]  }
 0x28f   :  { %1803 = vmatprep.subr.bf16.mxu1 %v8173_v52  ;;  %v8254_v52 = vld [vmem:[%s11564_s5 + $0x314] ss:$8 sps:$4 sm:$0xff]  }
 0x292   :  { %1804 = vmatpush1.bf16.msra.mxu1 %v8171_v53  ;;  %v9854_v53 = vpack.c.bf16 %v9624_v0, %v9609_v41  ;;  %v9867_v0 = vld [vmem:[#allocation2 + $0x58] sm:$0xff] }
 0x293   :  { %1805 = vmatprep.subr.bf16.mxu1 %v8176_v54  ;;  %v2125_v54 = vld [vmem:[#allocation2 + $0x18] sm:$0xfe] }
 0x294   :  { %v2137_v41 = vpack.c.bf16 %v9590_v13, %v2125_v54  ;;  %v8297_v54 = vld [vmem:[%s11564_s5 + $0x400] ss:$8 sps:$4 sm:$0xff]  }
 0x296   :  { %1806 = vmatpush1.bf16.msra.mxu1 %v8174_v55  ;;  %v8252_v55 = vld [vmem:[%s11564_s5 + $0x310] ss:$8 sps:$4 sm:$0xff]  }
 0x297   :  { %1807 = vmatprep.subr.bf16.mxu1 %v8179_v56  ;;  %v8257_v56 = vld [vmem:[%s11564_s5 + $0x324] ss:$8 sps:$4 sm:$0xff]  }
 0x29a   :  { %1808 = vmatpush1.bf16.msra.mxu1 %v8177_v57  ;;  %v8260_v57 = vld [vmem:[%s11564_s5 + $0x334] ss:$8 sps:$4 sm:$0xff]  }
 0x29b   :  { %1809 = vmatprep.subr.bf16.mxu1 %v8182_v58  ;;  %v2191_v58 = vshll.u32 %v2137_v41, 16 }
 0x29e   :  { %1810 = vmatpush1.bf16.msra.mxu1 %v8180_v49  ;;  %v1859_v49 = vpack.c.bf16 %v9867_v0, %v9867_v0 }
 0x29f   :  { %1811 = vmatprep.subr.bf16.mxu1 %v8185_v60  ;;  %v2196_v60 = vshll.u32 %v9854_v53, 16 }
 0x2a2   :  { %1812 = vmatpush1.bf16.msra.mxu1 %v8183_v61  ;;  %v2193_v61 = vrot.slane %v2191_v58, 1  ;;  %v8300_v58 = vld [vmem:[%s11564_s5 + $0x410] ss:$8 sps:$4 sm:$0xff]  }
 0x2a3   :  { %1813 = vmatprep.subr.bf16.mxu1 %v8188_v1  ;;  %v9889_v1 = vld [vmem:[#allocation2 + $0x50] sm:$0xff] }
 0x2a6   :  { %1814 = vmatpush1.bf16.msra.mxu1 %v8186_v63  ;;  %v2189_v63 = vshrl.u32 %v2137_v41, 16 }
 0x2a7   :  { %1815 = vmatprep.subr.bf16.mxu1 %v8191_v5  ;;  %v9891_v5 = vrot.slane %v2196_v60, 1 }
 0x2aa   :  { %1816 = vmatpush1.bf16.msra.mxu1 %v8189_v8  ;;  %v8261_v8 = vld [vmem:[%s11564_s5 + $0x340] ss:$8 sps:$4 sm:$0xff]  }
 0x2ab   :  { %1817 = vmatprep.subr.bf16.mxu1 %v8194_v10  ;;  %v1858_v10 = vpack.c.bf16 %v9889_v1, %v9889_v1 }
 0x2ae   :  { %1818 = vmatpush1.bf16.msra.mxu1 %v8192_v12  ;;  %v2194_v12 = vor.u32 %v2193_v61, %v2189_v63  ;;  %v8303_v61 = vld [vmem:[%s11564_s5 + $0x420] ss:$8 sps:$4 sm:$0xff]  }
 0x2af   :  { %1819 = vmatprep.subr.bf16.mxu1 %v8197_v16  ;;  %v8266_v16 = vld [vmem:[%s11564_s5 + $0x354] ss:$8 sps:$4 sm:$0xff]  }
 0x2b2   :  { %1820 = vmatpush1.bf16.msra.mxu1 %v8195_v17  ;;  %v2199_v17 = vsel %vm2175_vm2, %v2194_v12, %v9891_v5  ;;  %v2460_v12 = vld [vmem:[#allocation2 + $0x18] sm:$0xfc] }
 0x2b3   :  { %1821 = vmatprep.subr.bf16.mxu1 %v8200_v18  ;;  %v8264_v18 = vld [vmem:[%s11564_s5 + $0x350] ss:$8 sps:$4 sm:$0xff]  }
 0x2b6   :  { %1822 = vmatpush1.bf16.msra.mxu1 %v8198_v19  ;;  %v8269_v19 = vld [vmem:[%s11564_s5 + $0x364] ss:$8 sps:$4 sm:$0xff]  }
 0x2b7   :  { %2053 = vmatprep.subr.bf16.mxu1 %v8203_v2  ;;  %v8267_v2 = vld [vmem:[%s11564_s5 + $0x360] ss:$8 sps:$4 sm:$0xff]  }
 0x2b9   :  { %1824 = vmatmul.mubr.bf16.vlgmr.msra.gmra.mrb[0].mxu1 %v9617_v59  ;;  %v8212_v59 = vld [vmem:[%s11564_s5 + $0x234] ss:$8 sps:$4 sm:$0xff]  }
 0x2ba   :  { %1833 = vmatprep.mubr.bf16.mxu1 %v9654_v37  ;;  %2054 = vmatpush1.bf16.msra.mxu1 %v8201_v20  ;;  %v8236_v37 = vld [vmem:[%s11564_s5 + $0x2b4] ss:$8 sps:$4 sm:$0xff]  }
 0x2bb   :  { %2055 = vmatprep.subr.bf16.mxu1 %v8206_v21  ;;  %v8272_v20 = vld [vmem:[%s11564_s5 + $0x374] ss:$8 sps:$4 sm:$0xff]   ;;  %v8270_v21 = vld [vmem:[%s11564_s5 + $0x370] ss:$8 sps:$4 sm:$0xff]  }
 0x2be   :  { %2056 = vmatpush1.bf16.msra.mxu1 %v8204_v3  ;;  %v8275_v3 = vld [vmem:[%s11564_s5 + $0x384] ss:$8 sps:$4 sm:$0xff]  }
 0x2bf   :  { %2057 = vmatprep.subr.bf16.mxu1 %v8209_v22  ;;  %v8273_v22 = vld [vmem:[%s11564_s5 + $0x380] ss:$8 sps:$4 sm:$0xff]  }
 0x2c1   :  { %1834 = vmatmul.mubr.bf16.gmra.mrb[4].mxu1 %v9647_v33  ;;  %v8230_v33 = vld [vmem:[%s11564_s5 + $0x294] ss:$8 sps:$4 sm:$0xff]  }
 0x2c2   :  { %1843 = vmatprep.mubr.bf16.mxu1 %v9640_v29  ;;  %2058 = vmatpush1.bf16.msra.mxu1 %v8207_v23  ;;  %v8216_v29 = vld [vmem:[%s11564_s5 + $0x250] ss:$8 sps:$4 sm:$0xff]   ;;  %v8278_v23 = vld [vmem:[%s11564_s5 + $0x394] ss:$8 sps:$4 sm:$0xff]  }
 0x2c3   :  { %2059 = vmatprep.subr.bf16.mxu1 %v8212_v59  ;;  %v8276_v59 = vld [vmem:[%s11564_s5 + $0x390] ss:$8 sps:$4 sm:$0xff]  }
 0x2c6   :  { %2060 = vmatpush1.bf16.msra.mxu1 %v8210_v24  ;;  %v8281_v24 = vld [vmem:[%s11564_s5 + $0x3a4] ss:$8 sps:$4 sm:$0xff]  }
 0x2c7   :  { %2061 = vmatprep.subr.bf16.mxu1 %v8215_v25  ;;  %v8279_v25 = vld [vmem:[%s11564_s5 + $0x3a0] ss:$8 sps:$4 sm:$0xff]  }
 0x2c9   :  { %1844 = vmatmul.mubr.bf16.gmra.mrb[12].mxu1 %v9638_v26  ;;  %v8227_v26 = vld [vmem:[%s11564_s5 + $0x284] ss:$8 sps:$4 sm:$0xff]  }
 0x2ca   :  { %2062 = vmatpush1.bf16.msra.mxu1 %v8213_v27  ;;  %2085 = vmatprep.mubr.bf16.mxu1 %v1855_v15  ;;  %v8222_v15 = vld [vmem:[%s11564_s5 + $0x270] ss:$8 sps:$4 sm:$0xff]   ;;  %v8284_v27 = vld [vmem:[%s11564_s5 + $0x3b4] ss:$8 sps:$4 sm:$0xff]  }
 0x2cb   :  { %2063 = vmatprep.subr.bf16.mxu1 %v8218_v28  ;;  %v8282_v28 = vld [vmem:[%s11564_s5 + $0x3b0] ss:$8 sps:$4 sm:$0xff]  }
 0x2ce   :  { %2064 = vmatpush1.bf16.msra.mxu1 %v8216_v29  ;;  %v8287_v29 = vld [vmem:[%s11564_s5 + $0x3c4] ss:$8 sps:$4 sm:$0xff]  }
 0x2cf   :  { %2065 = vmatprep.subr.bf16.mxu1 %v8221_v30  ;;  %v8285_v30 = vld [vmem:[%s11564_s5 + $0x3c0] ss:$8 sps:$4 sm:$0xff]  }
 0x2d2   :  { %2066 = vmatpush1.bf16.msra.mxu1 %v8219_v31  ;;  %v8290_v31 = vld [vmem:[%s11564_s5 + $0x3d4] ss:$8 sps:$4 sm:$0xff]  }
 0x2d3   :  { %2067 = vmatprep.subr.bf16.mxu1 %v8224_v9  ;;  %v2124_v9 = vld [vmem:[#allocation2 + $0x10] sm:$0xfe] }
 0x2d6   :  { %2068 = vmatpush1.bf16.msra.mxu1 %v8222_v15  ;;  %v8288_v15 = vld [vmem:[%s11564_s5 + $0x3d0] ss:$8 sps:$4 sm:$0xff]  }
 0x2d7   :  { %2069 = vmatprep.subr.bf16.mxu1 %v8227_v26  ;;  %v2136_v26 = vpack.c.bf16 %v9586_v11, %v2124_v9  ;;  %v8329_v9 = vld [vmem:[%s11564_s5 + $0x4a4] ss:$8 sps:$4 sm:$0xff]  }
 0x2da   :  { %2070 = vmatpush1.bf16.msra.mxu1 %v8225_v32  ;;  %v2135_v32 = vld [vmem:[#allocation2 + $0x68] sm:$0x1] }
 0x2db   :  { %2071 = vmatprep.subr.bf16.mxu1 %v8230_v33  ;;  %v8293_v33 = vld [vmem:[%s11564_s5 + $0x3e4] ss:$8 sps:$4 sm:$0xff]  }
 0x2de   :  { %2072 = vmatpush1.bf16.msra.mxu1 %v8228_v34  ;;  %v2141_v34 = vpack.c.bf16 %v2135_v32, %v9867_v0 }
 0x2df   :  { %2073 = vmatprep.subr.bf16.mxu1 %v8233_v35  ;;  %v8291_v35 = vld [vmem:[%s11564_s5 + $0x3e0] ss:$8 sps:$4 sm:$0xff]  }
 0x2e0   :  { %v2219_v63 = vshrl.u32 %v2141_v34, 16 }
 0x2e2   :  { %2074 = vmatpush1.bf16.msra.mxu1 %v8231_v36  ;;  %v2179_v36 = vshll.u32 %v2136_v26, 16 }
 0x2e3   :  { %2075 = vmatprep.subr.bf16.mxu1 %v8236_v37  ;;  %v8296_v37 = vld [vmem:[%s11564_s5 + $0x3f4] ss:$8 sps:$4 sm:$0xff]  }
 0x2e6   :  { %2076 = vmatpush1.bf16.msra.mxu1 %v8234_v38 }
 0x2e7   :  { %2077 = vmatprep.subr.bf16.mxu1 %v8239_v39  ;;  %v2212_v39 = vshll.u32 %v2141_v34, 16 }
 0x2ea   :  { %2078 = vmatpush1.bf16.msra.mxu1 %v8237_v42  ;;  %v2134_v42 = vld [vmem:[#allocation2 + $0x60] sm:$0x1] }
 0x2eb   :  { %2079 = vmatprep.subr.bf16.mxu1 %v8242_v43  ;;  %v8294_v43 = vld [vmem:[%s11564_s5 + $0x3f0] ss:$8 sps:$4 sm:$0xff]  }
 0x2ee   :  { %2080 = vmatpush1.bf16.msra.mxu1 %v8240_v44  ;;  %v2181_v44 = vrot.slane %v2179_v36, 1  ;;  %v8330_v36 = vld [vmem:[%s11564_s5 + $0x4b0] ss:$8 sps:$4 sm:$0xff]  }
 0x2ef   :  { %2081 = vmatprep.subr.bf16.mxu1 %v8245_v45  ;;  %v8299_v45 = vld [vmem:[%s11564_s5 + $0x404] ss:$8 sps:$4 sm:$0xff]  }
 0x2f2   :  { %2082 = vmatpush1.bf16.msra.mxu1 %v8243_v46  ;;  %v2177_v46 = vshrl.u32 %v2136_v26, 16 }
 0x2f3   :  { %2083 = vmatprep.subr.bf16.mxu1 %v8248_v47 }
 0x2f6   :  { %2084 = vmatpush1.bf16.msra.mxu1 %v8246_v48  ;;  %v2140_v48 = vpack.c.bf16 %v2134_v42, %v9889_v1  ;;  %v8348_v42 = vld [vmem:[%s11567_s7 + $0x10] ss:$8 sps:$4 sm:$0xff]  }
 0x2f7   :  { %2388 = vmatprep.subr.bf16.mxu1 %v8251_v50  ;;  %v2208_v50 = vshrl.u32 %v9854_v53, 16 }
 0x2f9   :  { %2086 = vmatmul.mubr.bf16.vlgmr.msra.gmra.mrb[0].mxu1 %v1854_v14  ;;  %v9874_v14 = vpack.c.bf16 %v9621_v62, %v9606_v40  ;;  %v8258_v40 = vld [vmem:[%s11564_s5 + $0x330] ss:$8 sps:$4 sm:$0xff]   ;;  %v8263_v62 = vld [vmem:[%s11564_s5 + $0x344] ss:$8 sps:$4 sm:$0xff]  }
 0x2fa   :  { %2095 = vmatprep.mubr.bf16.mxu1 %v9854_v53  ;;  %2389 = vmatpush1.bf16.msra.mxu1 %v8249_v51  ;;  %v2214_v51 = vrot.slane %v2212_v39, 1  ;;  %v8347_v39 = vld [vmem:[%s11567_s7 + $0x4] ss:$8 sps:$4 sm:$0xff]  }
 0x2fb   :  { %2390 = vmatprep.subr.bf16.mxu1 %v8254_v52  ;;  %v2184_v38 = vshll.u32 %v9874_v14, 16  ;;  %v2182_v52 = vor.u32 %v2181_v44, %v2177_v46  ;;  %v2200_v60 = vshrl.u32 %v9874_v14, 16  ;;  %2996 = vmatprep.subr.bf16.mxu0 %v8347_v39  ;;  %v8333_v44 = vld [vmem:[%s11564_s5 + $0x4c0] ss:$8 sps:$4 sm:$0xff]   ;;  %v8336_v46 = vld [vmem:[%s11564_s5 + $0x4d0] ss:$8 sps:$4 sm:$0xff]  }
 0x2fd   :  { %v2186_v47 = vrot.slane %v2184_v38, 1  ;;  %v8335_v38 = vld [vmem:[%s11564_s5 + $0x4c4] ss:$8 sps:$4 sm:$0xff]  }
 0x2fe   :  { %2391 = vmatpush1.bf16.msra.mxu1 %v8252_v55  ;;  %v2210_v55 = vor.u32 %v2208_v50, %v9891_v5  ;;  %v8308_v5 = vld [vmem:[%s11564_s5 + $0x434] ss:$8 sps:$4 sm:$0xff]   ;;  %v2462_v50 = vld [vmem:[#allocation2 + $0x68] sm:$0x3] }
 0x2ff   :  { %2392 = vmatprep.subr.bf16.mxu1 %v8257_v56  ;;  %v8302_v56 = vld [vmem:[%s11564_s5 + $0x414] ss:$8 sps:$4 sm:$0xff]   ;;  %v2187_v41 = vsel %vm2175_vm2, %v2182_v52, %v2186_v47 }
 0x300   :  { %v2459_v52 = vld [vmem:[#allocation2 + $0x10] sm:$0xfc] }
 0x301   :  { %2096 = vmatmul.mubr.bf16.gmra.mrb[4].mxu1 %v9874_v14 }
 0x302   :  { %2105 = vmatprep.mubr.bf16.mxu1 %v1859_v49  ;;  %2393 = vmatpush1.bf16.msra.mxu1 %v8255_v7  ;;  %v2204_v7 = vshll.u32 %v2140_v48, 16  ;;  %v8305_v49 = vld [vmem:[%s11564_s5 + $0x424] ss:$8 sps:$4 sm:$0xff]  }
 0x303   :  { %2394 = vmatprep.subr.bf16.mxu1 %v8260_v57  ;;  %v2215_v57 = vsel %vm2175_vm2, %v2210_v55, %v2214_v51  ;;  %v8342_v55 = vld [vmem:[%s11564_s5 + $0x4f0] ss:$8 sps:$4 sm:$0xff]  }
 0x306   :  { %2395 = vmatpush1.bf16.msra.mxu1 %v8258_v40  ;;  %v2206_v40 = vrot.slane %v2204_v7, 1 }
 0x307   :  { %2396 = vmatprep.subr.bf16.mxu1 %v8263_v62  ;;  %v2202_v62 = vor.u32 %v2200_v60, %v2186_v47  ;;  %v8341_v47 = vld [vmem:[%s11564_s5 + $0x4e4] ss:$8 sps:$4 sm:$0xff]  }
 0x309   :  { %2106 = vmatmul.mubr.bf16.gmra.mrb[16].mxu1 %v1858_v10  ;;  %v2221_v10 = vor.u32 %v2219_v63, %v2214_v51  ;;  %v8344_v51 = vld [vmem:[%s11564_s5 + $0x4f4] ss:$8 sps:$4 sm:$0xff]  }
 0x30a   :  { %2397 = vmatpush1.bf16.msra.mxu1 %v8261_v8  ;;  %2420 = vmatprep.mubr.bf16.mxu1 %v2199_v17  ;;  %v2207_v8 = vsel %vm2175_vm2, %v2202_v62, %v2206_v40  ;;  %v8311_v17 = vld [vmem:[%s11564_s5 + $0x444] ss:$8 sps:$4 sm:$0xff]  }
 0x30b   :  { %2398 = vmatprep.subr.bf16.mxu1 %v8266_v16  ;;  %v8306_v16 = vld [vmem:[%s11564_s5 + $0x430] ss:$8 sps:$4 sm:$0xff]  }
 0x30e   :  { %2399 = vmatpush1.bf16.msra.mxu1 %v8264_v18  ;;  %v2464_v18 = vpack.c.bf16 %v9590_v13, %v2460_v12  ;;  %v8354_v12 = vld [vmem:[%s11567_s7 + $0x30] ss:$8 sps:$4 sm:$0xff]  }
 0x30f   :  { %2400 = vmatprep.subr.bf16.mxu1 %v8269_v19  ;;  %v2216_v19 = vshrl.u32 %v2140_v48, 16  ;;  %v8339_v48 = vld [vmem:[%s11564_s5 + $0x4e0] ss:$8 sps:$4 sm:$0xff]  }
 0x312   :  { %2401 = vmatpush1.bf16.msra.mxu1 %v8267_v2  ;;  %v2511_v2 = vrot.slane %v9854_v53, 1  ;;  %v8353_v53 = vld [vmem:[%s11567_s7 + $0x24] ss:$8 sps:$4 sm:$0xff]  }
 0x313   :  { %2402 = vmatprep.subr.bf16.mxu1 %v8272_v20  ;;  %v8309_v20 = vld [vmem:[%s11564_s5 + $0x440] ss:$8 sps:$4 sm:$0xff]  }
 0x316   :  { %2403 = vmatpush1.bf16.msra.mxu1 %v8270_v21  ;;  %v2218_v21 = vor.u32 %v2216_v19, %v2206_v40  ;;  %v8360_v19 = vld [vmem:[%s11567_s7 + $0x50] ss:$8 sps:$4 sm:$0xff]  }
 0x317   :  { %2404 = vmatprep.subr.bf16.mxu1 %v8275_v3  ;;  %v2510_v3 = vrot.slane %v2464_v18, 1  ;;  %v8362_v18 = vld [vmem:[%s11567_s7 + $0x54] ss:$8 sps:$4 sm:$0xff]  }
 0x319   :  { %v2512_v13 = vsel %vm2506_vm3, %v2510_v3, %v2511_v2  ;;  %v8366_v3 = vld [vmem:[%s11567_s7 + $0x70] ss:$8 sps:$4 sm:$0xff]  }
 0x31a   :  { %2405 = vmatpush1.bf16.msra.mxu1 %v8273_v22  ;;  %v8314_v22 = vld [vmem:[%s11564_s5 + $0x454] ss:$8 sps:$4 sm:$0xff]  }
 0x31b   :  { %2406 = vmatprep.subr.bf16.mxu1 %v8278_v23  ;;  %v8312_v23 = vld [vmem:[%s11564_s5 + $0x450] ss:$8 sps:$4 sm:$0xff]  }
 0x31e   :  { %2407 = vmatpush1.bf16.msra.mxu1 %v8276_v59  ;;  %v8317_v59 = vld [vmem:[%s11564_s5 + $0x464] ss:$8 sps:$4 sm:$0xff]  }
 0x31f   :  { %2408 = vmatprep.subr.bf16.mxu1 %v8281_v24  ;;  %v8315_v24 = vld [vmem:[%s11564_s5 + $0x460] ss:$8 sps:$4 sm:$0xff]  }
 0x322   :  { %2409 = vmatpush1.bf16.msra.mxu1 %v8279_v25  ;;  %v8320_v25 = vld [vmem:[%s11564_s5 + $0x474] ss:$8 sps:$4 sm:$0xff]  }
 0x323   :  { %2410 = vmatprep.subr.bf16.mxu1 %v8284_v27  ;;  %v8318_v27 = vld [vmem:[%s11564_s5 + $0x470] ss:$8 sps:$4 sm:$0xff]  }
 0x326   :  { %2411 = vmatpush1.bf16.msra.mxu1 %v8282_v28  ;;  %v8323_v28 = vld [vmem:[%s11564_s5 + $0x484] ss:$8 sps:$4 sm:$0xff]  }
 0x327   :  { %2412 = vmatprep.subr.bf16.mxu1 %v8287_v29  ;;  %v8321_v29 = vld [vmem:[%s11564_s5 + $0x480] ss:$8 sps:$4 sm:$0xff]  }
 0x32a   :  { %2413 = vmatpush1.bf16.msra.mxu1 %v8285_v30  ;;  %v8326_v30 = vld [vmem:[%s11564_s5 + $0x494] ss:$8 sps:$4 sm:$0xff]  }
 0x32b   :  { %2414 = vmatprep.subr.bf16.mxu1 %v8290_v31  ;;  %v8324_v31 = vld [vmem:[%s11564_s5 + $0x490] ss:$8 sps:$4 sm:$0xff]  }
 0x32e   :  { %2415 = vmatpush1.bf16.msra.mxu1 %v8288_v15 }
 0x32f   :  { %2416 = vmatprep.subr.bf16.mxu1 %v8293_v33  ;;  %v8327_v33 = vld [vmem:[%s11564_s5 + $0x4a0] ss:$8 sps:$4 sm:$0xff]  }
 0x332   :  { %2417 = vmatpush1.bf16.msra.mxu1 %v8291_v35  ;;  %v8332_v35 = vld [vmem:[%s11564_s5 + $0x4b4] ss:$8 sps:$4 sm:$0xff]  }
 0x333   :  { %2418 = vmatprep.subr.bf16.mxu1 %v8296_v37  ;;  %v8345_v37 = vld [vmem:[%s11567_s7] ss:$8 sps:$4 sm:$0xff]  }
 0x334   :  { %2997 = vmatpush1.bf16.msra.mxu0 %v8345_v37 }
 0x336   :  { %2419 = vmatpush1.bf16.msra.mxu1 %v8294_v43  ;;  %v8350_v43 = vld [vmem:[%s11567_s7 + $0x14] ss:$8 sps:$4 sm:$0xff]  }
 0x337   :  { %2683 = vmatprep.subr.bf16.mxu1 %v8299_v45  ;;  %v8338_v45 = vld [vmem:[%s11564_s5 + $0x4d4] ss:$8 sps:$4 sm:$0xff]   ;;  %2998 = vmatprep.subr.bf16.mxu0 %v8350_v43 }
 0x338   :  { %2999 = vmatpush1.bf16.msra.mxu0 %v8348_v42  ;;  %v8395_v42 = vld [vmem:[%s11568_s9 + $0x104] ss:$8 sps:$4 sm:$0xff]  }
 0x339   :  { %2421 = vmatmul.mubr.bf16.vlgmr.msra.gmra.mrb[0].mxu1 %v2187_v41  ;;  %v2508_v41 = vrot.slane %v9874_v14, 1  ;;  %3000 = vmatprep.subr.bf16.mxu0 %v8353_v53 }
 0x33a   :  { %2430 = vmatprep.mubr.bf16.mxu1 %v2215_v57  ;;  %2684 = vmatpush1.bf16.msra.mxu1 %v8297_v54  ;;  %v2466_v54 = vpack.c.bf16 %v2462_v50, %v9867_v0  ;;  %v2461_v57 = vld [vmem:[#allocation2 + $0x60] sm:$0x3] }
 0x33b   :  { %2685 = vmatprep.subr.bf16.mxu1 %v8302_v56  ;;  %v2463_v56 = vpack.c.bf16 %v9586_v11, %v2459_v52  ;;  %v2465_v60 = vpack.c.bf16 %v2461_v57, %v9889_v1  ;;  %v8351_v1 = vld [vmem:[%s11567_s7 + $0x20] ss:$8 sps:$4 sm:$0xff]  }
 0x33c   :  { %v2515_v7 = vrot.slane %v2466_v54, 1  ;;  %3001 = vmatpush1.bf16.msra.mxu0 %v8351_v1  ;;  %v2754_v50 = vld [vmem:[%s11569_s6] sm:$0x3]  ;;  %v8398_v1 = vld [vmem:[%s11568_s9 + $0x114] ss:$8 sps:$4 sm:$0xff]  }
 0x33d   :  { %v2513_v40 = vrot.slane %v2465_v60, 1  ;;  %v2763_v52 = vrot.slane %v2754_v50, %v9516_v6 }
 0x33e   :  { %2686 = vmatpush1.bf16.msra.mxu1 %v8300_v58  ;;  %v2507_v58 = vrot.slane %v2463_v56, 1  ;;  %v2516_v0 = vsel %vm2506_vm3, %v2511_v2, %v2515_v7  ;;  %v8365_v2 = vld [vmem:[%s11567_s7 + $0x64] ss:$8 sps:$4 sm:$0xff]  }
 0x33f   :  { %2687 = vmatprep.subr.bf16.mxu1 %v8305_v49  ;;  %v2514_v11 = vsel %vm2506_vm3, %v2508_v41, %v2513_v40 }
 0x340   :  { %v2509_v49 = vsel %vm2506_vm3, %v2507_v58, %v2508_v41 }
 0x341   :  { %2431 = vmatmul.mubr.bf16.gmra.mrb[4].mxu1 %v2207_v8 }
 0x342   :  { %2440 = vmatprep.mubr.bf16.mxu1 %v2221_v10  ;;  %2688 = vmatpush1.bf16.msra.mxu1 %v8303_v61  ;;  %v8356_v10 = vld [vmem:[%s11567_s7 + $0x34] ss:$8 sps:$4 sm:$0xff]  }
 0x343   :  { %2689 = vmatprep.subr.bf16.mxu1 %v8308_v5  ;;  %3002 = vmatprep.subr.bf16.mxu0 %v8356_v10 }
 0x344   :  { %3003 = vmatpush1.bf16.msra.mxu0 %v8354_v12 }
 0x346   :  { %2690 = vmatpush1.bf16.msra.mxu1 %v8306_v16  ;;  %v8359_v16 = vld [vmem:[%s11567_s7 + $0x44] ss:$8 sps:$4 sm:$0xff]  }
 0x347   :  { %2691 = vmatprep.subr.bf16.mxu1 %v8311_v17  ;;  %v8357_v17 = vld [vmem:[%s11567_s7 + $0x40] ss:$8 sps:$4 sm:$0xff]   ;;  %3004 = vmatprep.subr.bf16.mxu0 %v8359_v16 }
 0x348   :  { %3005 = vmatpush1.bf16.msra.mxu0 %v8357_v17 }
 0x349   :  { %2441 = vmatmul.mubr.bf16.gmra.mrb[20].mxu1 %v2218_v21  ;;  %3006 = vmatprep.subr.bf16.mxu0 %v8362_v18  ;;  %v8368_v21 = vld [vmem:[%s11567_s7 + $0x74] ss:$8 sps:$4 sm:$0xff]   ;;  %v8396_v18 = vld [vmem:[%s11568_s9 + $0x110] ss:$8 sps:$4 sm:$0xff]  }
 0x34a   :  { %2692 = vmatpush1.bf16.msra.mxu1 %v8309_v20  ;;  %2715 = vmatprep.mubr.bf16.mxu1 %v2512_v13  ;;  %v8363_v20 = vld [vmem:[%s11567_s7 + $0x60] ss:$8 sps:$4 sm:$0xff]  }
 0x34b   :  { %2693 = vmatprep.subr.bf16.mxu1 %v8314_v22  ;;  %v8371_v22 = vld [vmem:[%s11567_s7 + $0x84] ss:$8 sps:$4 sm:$0xff]   ;;  %v8369_v13 = vld [vmem:[%s11567_s7 + $0x80] ss:$8 sps:$4 sm:$0xff]  }
 0x34c   :  { %3007 = vmatpush1.bf16.msra.mxu0 %v8360_v19 }
 0x34d   :  { %3008 = vmatprep.subr.bf16.mxu0 %v8365_v2 }
 0x34e   :  { %2694 = vmatpush1.bf16.msra.mxu1 %v8312_v23  ;;  %v8374_v23 = vld [vmem:[%s11567_s7 + $0x94] ss:$8 sps:$4 sm:$0xff]  }
 0x34f   :  { %2695 = vmatprep.subr.bf16.mxu1 %v8317_v59  ;;  %v8372_v59 = vld [vmem:[%s11567_s7 + $0x90] ss:$8 sps:$4 sm:$0xff]  }
 0x350   :  { %3009 = vmatpush1.bf16.msra.mxu0 %v8363_v20  ;;  %v8401_v20 = vld [vmem:[%s11568_s9 + $0x124] ss:$8 sps:$4 sm:$0xff]  }
 0x351   :  { %3010 = vmatprep.subr.bf16.mxu0 %v8368_v21 }
 0x352   :  { %2696 = vmatpush1.bf16.msra.mxu1 %v8315_v24  ;;  %v8377_v24 = vld [vmem:[%s11567_s7 + $0xa4] ss:$8 sps:$4 sm:$0xff]  }
 0x353   :  { %2697 = vmatprep.subr.bf16.mxu1 %v8320_v25  ;;  %v8375_v25 = vld [vmem:[%s11567_s7 + $0xa0] ss:$8 sps:$4 sm:$0xff]  }
 0x354   :  { %3011 = vmatpush1.bf16.msra.mxu0 %v8366_v3 }
 0x355   :  { %3012 = vmatprep.subr.bf16.mxu0 %v8371_v22 }
 0x356   :  { %2698 = vmatpush1.bf16.msra.mxu1 %v8318_v27  ;;  %v8380_v27 = vld [vmem:[%s11567_s7 + $0xb4] ss:$8 sps:$4 sm:$0xff]  }
 0x357   :  { %2699 = vmatprep.subr.bf16.mxu1 %v8323_v28  ;;  %v8378_v28 = vld [vmem:[%s11567_s7 + $0xb0] ss:$8 sps:$4 sm:$0xff]  }
 0x358   :  { %3013 = vmatpush1.bf16.msra.mxu0 %v8369_v13 }
 0x359   :  { %3014 = vmatprep.subr.bf16.mxu0 %v8374_v23 }
 0x35a   :  { %2700 = vmatpush1.bf16.msra.mxu1 %v8321_v29  ;;  %v8383_v29 = vld [vmem:[%s11567_s7 + $0xc4] ss:$8 sps:$4 sm:$0xff]  }
 0x35b   :  { %2701 = vmatprep.subr.bf16.mxu1 %v8326_v30  ;;  %v8381_v30 = vld [vmem:[%s11567_s7 + $0xc0] ss:$8 sps:$4 sm:$0xff]  }
 0x35c   :  { %v1601_v15 = vpop.f32.mrb[8].mxu1  ;;  %3015 = vmatpush1.bf16.msra.mxu0 %v8372_v59  ;;  %v8399_v59 = vld [vmem:[%s11568_s9 + $0x120] ss:$8 sps:$4 sm:$0xff]  }
 0x35d   :  { %v1603_v26 = vpop.f32.mrb[9].mxu1  ;;  %3016 = vmatprep.subr.bf16.mxu0 %v8377_v24 }
 0x35e   :  { %2702 = vmatpush1.bf16.msra.mxu1 %v8324_v31  ;;  %v1605_v32 = vpop.f32.mrb[10].mxu1  ;;  %v8386_v31 = vld [vmem:[%s11567_s7 + $0xd4] ss:$8 sps:$4 sm:$0xff]  }
 0x35f   :  { %v1606_v34 = vpop.f32.mrb[11].mxu1  ;;  %2703 = vmatprep.subr.bf16.mxu1 %v8329_v9  ;;  %v8384_v9 = vld [vmem:[%s11567_s7 + $0xd0] ss:$8 sps:$4 sm:$0xff]   ;;  %v8392_v32 = vld [vmem:[%s11567_s7 + $0xf4] ss:$8 sps:$4 sm:$0xff]  }
 0x360   :  { %3017 = vmatpush1.bf16.msra.mxu0 %v8375_v25 }
 0x361   :  { %3018 = vmatprep.subr.bf16.mxu0 %v8380_v27  ;;  %v8404_v27 = vld [vmem:[%s11568_s9 + $0x134] ss:$8 sps:$4 sm:$0xff]  }
 0x362   :  { %2704 = vmatpush1.bf16.msra.mxu1 %v8327_v33  ;;  %v8390_v33 = vld [vmem:[%s11567_s7 + $0xf0] ss:$8 sps:$4 sm:$0xff]  }
 0x363   :  { %2705 = vmatprep.subr.bf16.mxu1 %v8332_v35 }
 0x364   :  { %3019 = vmatpush1.bf16.msra.mxu0 %v8378_v28 }
 0x365   :  { %3020 = vmatprep.subr.bf16.mxu0 %v8383_v29 }
 0x366   :  { %2706 = vmatpush1.bf16.msra.mxu1 %v8330_v36 }
 0x367   :  { %2707 = vmatprep.subr.bf16.mxu1 %v8335_v38 }
 0x368   :  { %3021 = vmatpush1.bf16.msra.mxu0 %v8381_v30 }
 0x369   :  { %3022 = vmatprep.subr.bf16.mxu0 %v8386_v31 }
 0x36a   :  { %2708 = vmatpush1.bf16.msra.mxu1 %v8333_v44 }
 0x36b   :  { %2709 = vmatprep.subr.bf16.mxu1 %v8338_v45 }
 0x36c   :  { %3023 = vmatpush1.bf16.msra.mxu0 %v8384_v9 }
 0x36e   :  { %2710 = vmatpush1.bf16.msra.mxu1 %v8336_v46 }
 0x36f   :  { %2711 = vmatprep.subr.bf16.mxu1 %v8341_v47 }
 0x372   :  { %2712 = vmatpush1.bf16.msra.mxu1 %v8339_v48 }
 0x373   :  { %2713 = vmatprep.subr.bf16.mxu1 %v8344_v51  ;;  %v2759_v51 = vrot.slane %v2754_v50, %v9511_v4  ;;  %v8425_v50 = vld [vmem:[%s11568_s9 + $0x1a4] ss:$8 sps:$4 sm:$0xff]  }
 0x376   :  { %2714 = vmatpush1.bf16.msra.mxu1 %v8342_v55 }
 0x379   :  { %2716 = vmatmul.mubr.bf16.vlgmr.msra.gmra.mrb[0].mxu1 %v2509_v49 }
 0x37a   :  { %2725 = vmatprep.mubr.bf16.mxu1 %v2516_v0 }
 0x381   :  { %2726 = vmatmul.mubr.bf16.gmra.mrb[4].mxu1 %v2514_v11 }
 0x382   :  { %2735 = vmatprep.mubr.bf16.mxu1 %v2515_v7 }
 0x389   :  { %2736 = vmatmul.mubr.bf16.gmra.mrb[24].mxu1 %v2513_v40 }
 0x39c   :  { %v1845_v14 = vpop.f32.mrb[12].mxu1 }
 0x39d   :  { %v1846_v62 = vadd.f32 %v1845_v14, %v1601_v15  ;;  %v1847_v61 = vpop.f32.mrb[13].mxu1  ;;  %v8387_v15 = vld [vmem:[%s11567_s7 + $0xe0] ss:$8 sps:$4 sm:$0xff]  }
 0x39e   :  { %v1848_v63 = vadd.f32 %v1847_v61, %v1603_v26  ;;  %v1849_v5 = vpop.f32.mrb[14].mxu1  ;;  %v8389_v26 = vld [vmem:[%s11567_s7 + $0xe4] ss:$8 sps:$4 sm:$0xff]  }
 0x39f   :  { %v1850_v8 = vpop.f32.mrb[15].mxu1  ;;  %3024 = vmatprep.subr.bf16.mxu0 %v8389_v26 }
 0x3a0   :  { %3025 = vmatpush1.bf16.msra.mxu0 %v8387_v15  ;;  %v8402_v15 = vld [vmem:[%s11568_s9 + $0x130] ss:$8 sps:$4 sm:$0xff]  }
 0x3a1   :  { %3026 = vmatprep.subr.bf16.mxu0 %v8392_v32  ;;  %v8407_v32 = vld [vmem:[%s11568_s9 + $0x144] ss:$8 sps:$4 sm:$0xff]  }
 0x3a4   :  { %3027 = vmatpush1.bf16.msra.mxu0 %v8390_v33 }
 0x3a5   :  { %3380 = vmatprep.subr.bf16.mxu0 %v8395_v42  ;;  %v8411_v42 = vld [vmem:[%s11568_s9 + $0x160] ss:$8 sps:$4 sm:$0xff]  }
 0x3dc   :  { %v2107_v34 = vpop.f32.mrb[16].mxu1 }
 0x3dd   :  { %v2122_v35 = vadd.f32 %v2107_v34, %v1846_v62  ;;  %v2109_v36 = vpop.f32.mrb[17].mxu1 }
 0x3de   :  { %v2123_v37 = vadd.f32 %v2109_v36, %v1848_v63  ;;  %v2111_v38 = vpop.f32.mrb[18].mxu1  ;;  %v8393_v63 = vld [vmem:[%s11568_s9 + $0x100] ss:$8 sps:$4 sm:$0xff]  }
 0x3df   :  { %v2112_v39 = vpop.f32.mrb[19].mxu1  ;;  %v8408_v38 = vld [vmem:[%s11568_s9 + $0x150] ss:$8 sps:$4 sm:$0xff]  }
 0x3e0   :  { %v8413_v39 = vld [vmem:[%s11568_s9 + $0x164] ss:$8 sps:$4 sm:$0xff]  }
 0x41c   :  { %v2442_v43 = vpop.f32.mrb[20].mxu1 }
 0x41d   :  { %v2457_v44 = vadd.f32 %v2442_v43, %v2122_v35  ;;  %v2444_v45 = vpop.f32.mrb[21].mxu1  ;;  %v8405_v35 = vld [vmem:[%s11568_s9 + $0x140] ss:$8 sps:$4 sm:$0xff]   ;;  %v8416_v43 = vld [vmem:[%s11568_s9 + $0x174] ss:$8 sps:$4 sm:$0xff]  }
 0x41e   :  { %v2458_v46 = vadd.f32 %v2444_v45, %v2123_v37  ;;  %v2446_v47 = vpop.f32.mrb[22].mxu1  ;;  %v8410_v37 = vld [vmem:[%s11568_s9 + $0x154] ss:$8 sps:$4 sm:$0xff]   ;;  %v8419_v45 = vld [vmem:[%s11568_s9 + $0x184] ss:$8 sps:$4 sm:$0xff]  }
 0x41f   :  { %v2447_v48 = vpop.f32.mrb[23].mxu1  ;;  %v8420_v47 = vld [vmem:[%s11568_s9 + $0x190] ss:$8 sps:$4 sm:$0xff]  }
 0x420   :  { %v8422_v48 = vld [vmem:[%s11568_s9 + $0x194] ss:$8 sps:$4 sm:$0xff]  }
 0x44c   :  { %v2717_v54 = vpop.f32.mrb[0].mxu1 }
 0x44d   :  { %v2766_v55 = vadd.f32 %v2759_v51, %v2717_v54  ;;  %v2719_v56 = vpop.f32.mrb[1].mxu1  ;;  %v8428_v54 = vld [vmem:[%s11568_s9 + $0x1b4] ss:$8 sps:$4 sm:$0xff]  }
 0x44e   :  { %v2767_v41 = vadd.f32 %v2763_v52, %v2719_v56  ;;  %v2721_v7 = vpop.f32.mrb[2].mxu1  ;;  %v8429_v56 = vld [vmem:[%s11568_s9 + $0x1c0] ss:$8 sps:$4 sm:$0xff]  }
 0x44f   :  { %v2768_v57 = vadd.f32 %v2759_v51, %v2721_v7  ;;  %v2723_v58 = vpop.f32.mrb[3].mxu1  ;;  %v2776_v60 = vmax.f32 %v2766_v55, 0.0  ;;  %v8431_v55 = vld [vmem:[%s11568_s9 + $0x1c4] ss:$8 sps:$4 sm:$0xff]   ;;  %v8434_v7 = vld [vmem:[%s11568_s9 + $0x1d4] ss:$8 sps:$4 sm:$0xff]  }
 0x450   :  { %v2769_v49 = vadd.f32 %v2763_v52, %v2723_v58  ;;  %v2777_v40 = vmax.f32 %v2767_v41, 0.0  ;;  %v8432_v41 = vld [vmem:[%s11568_s9 + $0x1d0] ss:$8 sps:$4 sm:$0xff]   ;;  %v8435_v58 = vld [vmem:[%s11568_s9 + $0x1e0] ss:$8 sps:$4 sm:$0xff]  }
 0x451   :  { %v2778_v0 = vmax.f32 %v2768_v57, 0.0  ;;  %v8437_v57 = vld [vmem:[%s11568_s9 + $0x1e4] ss:$8 sps:$4 sm:$0xff]  }
 0x452   :  { %v2779_v11 = vmax.f32 %v2769_v49, 0.0  ;;  %v8440_v49 = vld [vmem:[%s11568_s9 + $0x1f4] ss:$8 sps:$4 sm:$0xff]  }
 0x453   :  { %v2786_v14 = vpack.c.bf16 %v2778_v0, %v2776_v60  ;;  %v8438_v60 = vld [vmem:[%s11568_s9 + $0x1f0] ss:$8 sps:$4 sm:$0xff]   ;;  %v8443_v0 = vld [vmem:[%s11568_s9 + $0x4] ss:$8 sps:$4 sm:$0xff]  }
 0x454   :  { %v2787_v62 = vpack.c.bf16 %v2779_v11, %v2777_v40  ;;  %v2727_v61 = vpop.f32.mrb[4].mxu1  ;;  %v2824_v40 = vld [vmem:[%s11570_s8] sm:$0x3] }
 0x455   :  { %v2770_v5 = vadd.f32 %v2759_v51, %v2727_v61  ;;  %v2729_v8 = vpop.f32.mrb[5].mxu1  ;;  %v10290_v11 = vrot.slane %v2824_v40, %v9511_v4 }
 0x456   :  { %v2771_v53 = vadd.f32 %v2763_v52, %v2729_v8  ;;  %v2731_v10 = vpop.f32.mrb[6].mxu1  ;;  %3028 = vmatprep.mubr.bf16.mxu0 %v2787_v62 }
 0x457   :  { %v2772_v12 = vadd.f32 %v2759_v51, %v2731_v10  ;;  %v2733_v16 = vpop.f32.mrb[7].mxu1  ;;  %3029 = vmatmul.mubr.bf16.vlgmr.msra.gmra.mrb[40].mxu0 %v2786_v14  ;;  %v2780_v19 = vmax.f32 %v2770_v5, 0.0  ;;  %v10293_v14 = vrot.slane %v2824_v40, %v9516_v6 }
 0x458   :  { %v2773_v17 = vadd.f32 %v2763_v52, %v2733_v16  ;;  %3381 = vmatpush1.bf16.msra.mxu0 %v8393_v63  ;;  %v2781_v21 = vmax.f32 %v2771_v53, 0.0 }
 0x459   :  { %v2782_v2 = vmax.f32 %v2772_v12, 0.0  ;;  %3382 = vmatprep.subr.bf16.mxu0 %v8398_v1 }
 0x45a   :  { %v2783_v3 = vmax.f32 %v2773_v17, 0.0 }
 0x45b   :  { %v2788_v22 = vpack.c.bf16 %v2782_v2, %v2780_v19 }
 0x45c   :  { %v2789_v13 = vpack.c.bf16 %v2783_v3, %v2781_v21  ;;  %v2737_v23 = vpop.f32.mrb[24].mxu1  ;;  %3383 = vmatpush1.bf16.msra.mxu0 %v8396_v18  ;;  %v3121_v21 = vld [vmem:[#allocation2] sm:$0x80] }
 0x45d   :  { %v2752_v24 = vadd.f32 %v2737_v23, %v2457_v44  ;;  %v2739_v25 = vpop.f32.mrb[25].mxu1  ;;  %3384 = vmatprep.subr.bf16.mxu0 %v8401_v20  ;;  %v8414_v44 = vld [vmem:[%s11568_s9 + $0x170] ss:$8 sps:$4 sm:$0xff]  }
 0x45e   :  { %v2753_v28 = vadd.f32 %v2739_v25, %v2458_v46  ;;  %v2741_v29 = vpop.f32.mrb[26].mxu1  ;;  %3038 = vmatprep.mubr.bf16.mxu0 %v2789_v13  ;;  %v8417_v46 = vld [vmem:[%s11568_s9 + $0x180] ss:$8 sps:$4 sm:$0xff]   ;;  %v3072_v25 = vld [vmem:[#allocation2 + $0x8] sm:$0xc0] }
 0x45f   :  { %v2774_v30 = vadd.f32 %v2759_v51, %v2752_v24  ;;  %v2742_v31 = vpop.f32.mrb[27].mxu1  ;;  %3039 = vmatmul.mubr.bf16.gmra.mrb[44].mxu0 %v2788_v22  ;;  %v8423_v51 = vld [vmem:[%s11568_s9 + $0x1a0] ss:$8 sps:$4 sm:$0xff]   ;;  %v3122_v22 = vld [vmem:[#allocation2 + $0x8] sm:$0x80] }
 0x460   :  { %v2775_v9 = vadd.f32 %v2763_v52, %v2753_v28  ;;  %3385 = vmatpush1.bf16.msra.mxu0 %v8399_v59  ;;  %v8426_v52 = vld [vmem:[%s11568_s9 + $0x1b0] ss:$8 sps:$4 sm:$0xff]   ;;  %v8937_v13 = vld [vmem:[#allocation2] sm:$0xff] }
 0x461   :  { %v2784_v26 = vmax.f32 %v2774_v30, 0.0  ;;  %3386 = vmatprep.subr.bf16.mxu0 %v8404_v27  ;;  %v3071_v59 = vld [vmem:[#allocation2] sm:$0xc0] }
 0x462   :  { %v2785_v33 = vmax.f32 %v2775_v9, 0.0 }
 0x463   :  { %v2790_v36 = vpack.c.bf16 %v2784_v26, %v2784_v26 }
 0x464   :  { %v2791_v34 = vpack.c.bf16 %v2785_v33, %v2785_v33  ;;  %3387 = vmatpush1.bf16.msra.mxu0 %v8402_v15 }
 0x465   :  { %3388 = vmatprep.subr.bf16.mxu0 %v8407_v32 }
 0x466   :  { %3048 = vmatprep.mubr.bf16.mxu0 %v2791_v34 }
 0x467   :  { %3049 = vmatmul.mubr.bf16.gmra.mrb[48].mxu0 %v2790_v36 }
 0x468   :  { %3389 = vmatpush1.bf16.msra.mxu0 %v8405_v35 }
 0x469   :  { %3390 = vmatprep.subr.bf16.mxu0 %v8410_v37 }
 0x46c   :  { %3391 = vmatpush1.bf16.msra.mxu0 %v8408_v38 }
 0x46d   :  { %3392 = vmatprep.subr.bf16.mxu0 %v8413_v39 }
 0x470   :  { %3393 = vmatpush1.bf16.msra.mxu0 %v8411_v42 }
 0x471   :  { %3394 = vmatprep.subr.bf16.mxu0 %v8416_v43 }
 0x474   :  { %3395 = vmatpush1.bf16.msra.mxu0 %v8414_v44 }
 0x475   :  { %3396 = vmatprep.subr.bf16.mxu0 %v8419_v45 }
 0x478   :  { %3397 = vmatpush1.bf16.msra.mxu0 %v8417_v46 }
 0x479   :  { %3398 = vmatprep.subr.bf16.mxu0 %v8422_v48 }
 0x47c   :  { %3399 = vmatpush1.bf16.msra.mxu0 %v8420_v47 }
 0x47d   :  { %3400 = vmatprep.subr.bf16.mxu0 %v8425_v50 }
 0x480   :  { %3401 = vmatpush1.bf16.msra.mxu0 %v8423_v51 }
 0x481   :  { %3402 = vmatprep.subr.bf16.mxu0 %v8428_v54 }
 0x484   :  { %3403 = vmatpush1.bf16.msra.mxu0 %v8426_v52 }
 0x485   :  { %3404 = vmatprep.subr.bf16.mxu0 %v8431_v55 }
 0x488   :  { %3405 = vmatpush1.bf16.msra.mxu0 %v8429_v56 }
 0x489   :  { %3406 = vmatprep.subr.bf16.mxu0 %v8434_v7 }
 0x48c   :  { %3407 = vmatpush1.bf16.msra.mxu0 %v8432_v41 }
 0x48d   :  { %3408 = vmatprep.subr.bf16.mxu0 %v8437_v57 }
 0x490   :  { %3409 = vmatpush1.bf16.msra.mxu0 %v8435_v58 }
 0x491   :  { %3410 = vmatprep.subr.bf16.mxu0 %v8440_v49 }
 0x494   :  { %3411 = vmatpush1.bf16.msra.mxu0 %v8438_v60 }
 0x495   :  { %3623 = vmatprep.subr.bf16.mxu0 %v8443_v0 }
 0x52a   :  { %v3030_v62 = vpop.f32.mrb[40].mxu0 }
 0x52b   :  { %v10296_v61 = vadd.f32 %v3030_v62, %v10290_v11  ;;  %v3032_v63 = vpop.f32.mrb[41].mxu0 }
 0x52c   :  { %v10299_v5 = vadd.f32 %v3032_v63, %v10293_v14  ;;  %v3034_v8 = vpop.f32.mrb[42].mxu0 }
 0x52d   :  { %3057 = vst [vmem:[#allocation2 + $0x10] sm:$0xff] %v10296_v61  ;;  %v10303_v1 = vadd.f32 %v3034_v8, %v10290_v11  ;;  %v3036_v53 = vpop.f32.mrb[43].mxu0  ;;  %v3125_v23 = vpack.c.bf16 %v10296_v61, %v3121_v21  ;;  %v3083_v28 = vpack.c.bf16 %v10296_v61, %v3071_v59 }
 0x52e   :  { %3058 = vst [vmem:[#allocation2 + $0x18] sm:$0xff] %v10299_v5  ;;  %v10307_v10 = vadd.f32 %v3036_v53, %v10293_v14  ;;  %v3126_v24 = vpack.c.bf16 %v10299_v5, %v3122_v22  ;;  %v3084_v15 = vpack.c.bf16 %v10299_v5, %v3072_v25 }
 0x52f   :  { %v3686_v12 = vpack.c.bf16 %v10303_v1, %v10296_v61  ;;  %v3163_v31 = vshrl.u32 %v3125_v23, 16  ;;  %v3166_v9 = vshll.u32 %v3125_v23, 16  ;;  %v3447_v39 = vrot.slane %v3083_v28, 3  ;;  %v8543_v61 = vld [vmem:[%s11568_s9 + $0x320] ss:$8 sps:$4 sm:$0xff]  }
 0x530   :  { %v3687_v16 = vpack.c.bf16 %v10307_v10, %v10299_v5  ;;  %v3180_v33 = vshrl.u32 %v3126_v24, 16  ;;  %v3183_v35 = vshll.u32 %v3126_v24, 16  ;;  %v3450_v45 = vrot.slane %v3084_v15, 3  ;;  %v8512_v5 = vld [vmem:[%s11568_s9 + $0x274] ss:$8 sps:$4 sm:$0xff]  }
 0x531   :  { %v3165_v43 = vrot.slane %v3163_v31, 3  ;;  %v3168_v44 = vrot.slane %v3166_v9, 4 }
 0x532   :  { %v3040_v17 = vpop.f32.mrb[44].mxu0  ;;  %v3182_v46 = vrot.slane %v3180_v33, 3  ;;  %v3185_v51 = vrot.slane %v3183_v35, 4 }
 0x533   :  { %v3041_v18 = vadd.f32 %v3040_v17, %v10290_v11  ;;  %v3042_v19 = vpop.f32.mrb[45].mxu0  ;;  %v3169_v0 = vor.u32 %v3168_v44, %v3165_v43  ;;  %v8452_v43 = vld [vmem:[%s11568_s9 + $0x34] ss:$8 sps:$4 sm:$0xff]   ;;  %v8450_v44 = vld [vmem:[%s11568_s9 + $0x30] ss:$8 sps:$4 sm:$0xff]  }
 0x534   :  { %v3043_v2 = vadd.f32 %v3042_v19, %v10293_v14  ;;  %v3044_v20 = vpop.f32.mrb[46].mxu0  ;;  %v3186_v63 = vor.u32 %v3185_v51, %v3182_v46  ;;  %v8453_v46 = vld [vmem:[%s11568_s9 + $0x40] ss:$8 sps:$4 sm:$0xff]  }
 0x535   :  { %3061 = vst [vmem:[#allocation2 + $0x30] sm:$0xff] %v3041_v18  ;;  %v3046_v3 = vpop.f32.mrb[47].mxu0  ;;  %v10334_v60 = vadd.f32 %v3044_v20, %v10290_v11  ;;  %v8441_v18 = vld [vmem:[%s11568_s9] ss:$8 sps:$4 sm:$0xff]  }
 0x536   :  { %3067 = vst [vmem:[#allocation2 + $0x30] sm:$0xf] %v8937_v13  ;;  %3062 = vst [vmem:[#allocation2 + $0x38] sm:$0xff] %v3043_v2  ;;  %v10337_v62 = vadd.f32 %v3046_v3, %v10293_v14  ;;  %v8459_v51 = vld [vmem:[%s11568_s9 + $0x60] ss:$8 sps:$4 sm:$0xff]  }
 0x537   :  { %3068 = vst [vmem:[#allocation2 + $0x38] sm:$0xf] %v8937_v13 }
 0x53a   :  { %v3050_v27 = vpop.f32.mrb[48].mxu0 }
 0x53b   :  { %v3051_v29 = vadd.f32 %v3050_v27, %v10290_v11  ;;  %v3052_v30 = vpop.f32.mrb[49].mxu0 }
 0x53c   :  { %v3053_v26 = vadd.f32 %v3052_v30, %v10293_v14  ;;  %v3054_v32 = vpop.f32.mrb[50].mxu0  ;;  %v8446_v14 = vld [vmem:[%s11568_s9 + $0x14] ss:$8 sps:$4 sm:$0xff]  }
 0x53d   :  { %3065 = vst [vmem:[#allocation2 + $0x50] sm:$0xff] %v3051_v29  ;;  %v3055_v34 = vpop.f32.mrb[51].mxu0  ;;  %v10321_v36 = vld [vmem:[#allocation2 + $0x30] sm:$0xff]  ;;  %v8449_v32 = vld [vmem:[%s11568_s9 + $0x24] ss:$8 sps:$4 sm:$0xff]  }
 0x53e   :  { %3069 = vst [vmem:[#allocation2 + $0x50] sm:$0xf0] %v8937_v13  ;;  %3066 = vst [vmem:[#allocation2 + $0x58] sm:$0xff] %v3053_v26  ;;  %v10323_v37 = vld [vmem:[#allocation2 + $0x38] sm:$0xff]  ;;  %v3085_v38 = vpack.c.bf16 %v10321_v36, %v10303_v1 }
 0x53f   :  { %3070 = vst [vmem:[#allocation2 + $0x58] sm:$0xf0] %v8937_v13  ;;  %v3086_v42 = vpack.c.bf16 %v10323_v37, %v10307_v10  ;;  %v8444_v29 = vld [vmem:[%s11568_s9 + $0x10] ss:$8 sps:$4 sm:$0xff]  }
 0x540   :  { %v3171_v47 = vshrl.u32 %v3085_v38, 16  ;;  %v3174_v48 = vshll.u32 %v3085_v38, 16  ;;  %v3448_v50 = vrot.slane %v3085_v38, 3  ;;  %v8447_v38 = vld [vmem:[%s11568_s9 + $0x20] ss:$8 sps:$4 sm:$0xff]  }
 0x541   :  { %v3188_v52 = vshrl.u32 %v3086_v42, 16  ;;  %v3191_v54 = vshll.u32 %v3086_v42, 16  ;;  %v3451_v55 = vrot.slane %v3086_v42, 3 }
 0x542   :  { %v3173_v56 = vrot.slane %v3171_v47, 3  ;;  %v3176_v41 = vrot.slane %v3174_v48, 4  ;;  %v10330_v7 = vsel %vm1614_vm0, %v3447_v39, %v3448_v50  ;;  %v8458_v47 = vld [vmem:[%s11568_s9 + $0x54] ss:$8 sps:$4 sm:$0xff]   ;;  %v8456_v48 = vld [vmem:[%s11568_s9 + $0x50] ss:$8 sps:$4 sm:$0xff]  }
 0x543   :  { %v3190_v57 = vrot.slane %v3188_v52, 3  ;;  %v3193_v58 = vrot.slane %v3191_v54, 4  ;;  %v3452_v49 = vsel %vm1614_vm0, %v3450_v45, %v3451_v55  ;;  %v8455_v45 = vld [vmem:[%s11568_s9 + $0x44] ss:$8 sps:$4 sm:$0xff]   ;;  %v8464_v52 = vld [vmem:[%s11568_s9 + $0x74] ss:$8 sps:$4 sm:$0xff]  }
 0x544   :  { %v3177_v40 = vor.u32 %v3176_v41, %v3173_v56  ;;  %v8462_v54 = vld [vmem:[%s11568_s9 + $0x70] ss:$8 sps:$4 sm:$0xff]   ;;  %v8465_v56 = vld [vmem:[%s11568_s9 + $0x80] ss:$8 sps:$4 sm:$0xff]   ;;  %v8470_v41 = vld [vmem:[%s11568_s9 + $0x94] ss:$8 sps:$4 sm:$0xff]  }
 0x545   :  { %v3194_v8 = vor.u32 %v3193_v58, %v3190_v57  ;;  %v3123_v53 = vld [vmem:[#allocation2 + $0x50] sm:$0x7f]  ;;  %v8473_v58 = vld [vmem:[%s11568_s9 + $0xa4] ss:$8 sps:$4 sm:$0xff]  }
 0x546   :  { %v3081_v17 = vld [vmem:[#allocation2 + $0x50] sm:$0x3f]  ;;  %v3178_v19 = vsel %vm1328_vm1, %v3169_v0, %v3177_v40  ;;  %v3124_v2 = vld [vmem:[#allocation2 + $0x58] sm:$0x7f]  ;;  %v3127_v21 = vpack.c.bf16 %v3123_v53, %v10334_v60 }
 0x547   :  { %v3082_v11 = vld [vmem:[#allocation2 + $0x58] sm:$0x3f]  ;;  %v3087_v20 = vpack.c.bf16 %v3081_v17, %v10334_v60  ;;  %v3195_v22 = vsel %vm1328_vm1, %v3186_v63, %v3194_v8  ;;  %v3128_v3 = vpack.c.bf16 %v3124_v2, %v10337_v62  ;;  %v8479_v63 = vld [vmem:[%s11568_s9 + $0xc4] ss:$8 sps:$4 sm:$0xff]  }
 0x548   :  { %v3088_v13 = vpack.c.bf16 %v3082_v11, %v10337_v62  ;;  %3412 = vmatprep.mubr.bf16.mxu0 %v3195_v22  ;;  %v3197_v23 = vshrl.u32 %v3127_v21, 16  ;;  %v3200_v59 = vshll.u32 %v3127_v21, 16  ;;  %v8468_v57 = vld [vmem:[%s11568_s9 + $0x90] ss:$8 sps:$4 sm:$0xff]   ;;  %v8476_v0 = vld [vmem:[%s11568_s9 + $0xb4] ss:$8 sps:$4 sm:$0xff]  }
 0x549   :  { %v10351_v24 = vrot.slane %v3087_v20, 3  ;;  %3413 = vmatmul.mubr.bf16.vlgmr.msra.gmra.mrb[52].mxu0 %v3178_v19  ;;  %v3206_v25 = vshrl.u32 %v3128_v3, 16  ;;  %v3209_v27 = vshll.u32 %v3128_v3, 16  ;;  %v8482_v53 = vld [vmem:[%s11568_s9 + $0xd4] ss:$8 sps:$4 sm:$0xff]  }
 0x54a   :  { %v10353_v28 = vrot.slane %v3088_v13, 3  ;;  %3624 = vmatpush1.bf16.msra.mxu0 %v8441_v18  ;;  %v3199_v30 = vrot.slane %v3197_v23, 3  ;;  %v3202_v31 = vrot.slane %v3200_v59, 4  ;;  %v8480_v17 = vld [vmem:[%s11568_s9 + $0xd0] ss:$8 sps:$4 sm:$0xff]  }
 0x54b   :  { %v10360_v9 = vsel %vm1614_vm0, %v3448_v50, %v10351_v24  ;;  %3625 = vmatprep.subr.bf16.mxu0 %v8446_v14  ;;  %v3208_v15 = vrot.slane %v3206_v25, 3  ;;  %v3211_v26 = vrot.slane %v3209_v27, 4  ;;  %v8461_v50 = vld [vmem:[%s11568_s9 + $0x64] ss:$8 sps:$4 sm:$0xff]   ;;  %v8483_v19 = vld [vmem:[%s11568_s9 + $0xe0] ss:$8 sps:$4 sm:$0xff]  }
 0x54c   :  { %v10367_v33 = vsel %vm1614_vm0, %v3451_v55, %v10353_v28  ;;  %v3203_v34 = vor.u32 %v3202_v31, %v3199_v30  ;;  %v8467_v55 = vld [vmem:[%s11568_s9 + $0x84] ss:$8 sps:$4 sm:$0xff]   ;;  %v8488_v2 = vld [vmem:[%s11568_s9 + $0xf4] ss:$8 sps:$4 sm:$0xff]   ;;  %v8486_v21 = vld [vmem:[%s11568_s9 + $0xf0] ss:$8 sps:$4 sm:$0xff]  }
 0x54d   :  { %v3212_v35 = vor.u32 %v3211_v26, %v3208_v15  ;;  %v8485_v18 = vld [vmem:[%s11568_s9 + $0xe4] ss:$8 sps:$4 sm:$0xff]   ;;  %v8489_v20 = vld [vmem:[%s11568_s9 + $0x200] ss:$8 sps:$4 sm:$0xff]   ;;  %v8494_v22 = vld [vmem:[%s11568_s9 + $0x214] ss:$8 sps:$4 sm:$0xff]  }
 0x54e   :  { %3626 = vmatpush1.bf16.msra.mxu0 %v8444_v29  ;;  %v3204_v39 = vsel %vm1328_vm1, %v3177_v40, %v3203_v34  ;;  %v8474_v40 = vld [vmem:[%s11568_s9 + $0xb0] ss:$8 sps:$4 sm:$0xff]   ;;  %v8491_v11 = vld [vmem:[%s11568_s9 + $0x204] ss:$8 sps:$4 sm:$0xff]   ;;  %v8495_v13 = vld [vmem:[%s11568_s9 + $0x220] ss:$8 sps:$4 sm:$0xff]  }
 0x54f   :  { %v3213_v42 = vsel %vm1328_vm1, %v3194_v8, %v3212_v35  ;;  %3627 = vmatprep.subr.bf16.mxu0 %v8449_v32  ;;  %v8477_v8 = vld [vmem:[%s11568_s9 + $0xc0] ss:$8 sps:$4 sm:$0xff]   ;;  %v8492_v14 = vld [vmem:[%s11568_s9 + $0x210] ss:$8 sps:$4 sm:$0xff]   ;;  %v8497_v3 = vld [vmem:[%s11568_s9 + $0x224] ss:$8 sps:$4 sm:$0xff]  }
 0x550   :  { %3422 = vmatprep.mubr.bf16.mxu0 %v3213_v42  ;;  %v8498_v23 = vld [vmem:[%s11568_s9 + $0x230] ss:$8 sps:$4 sm:$0xff]   ;;  %v8503_v59 = vld [vmem:[%s11568_s9 + $0x244] ss:$8 sps:$4 sm:$0xff]   ;;  %v8501_v25 = vld [vmem:[%s11568_s9 + $0x240] ss:$8 sps:$4 sm:$0xff]  }
 0x551   :  { %3423 = vmatmul.mubr.bf16.gmra.mrb[56].mxu0 %v3204_v39  ;;  %v8506_v27 = vld [vmem:[%s11568_s9 + $0x254] ss:$8 sps:$4 sm:$0xff]   ;;  %v8509_v29 = vld [vmem:[%s11568_s9 + $0x264] ss:$8 sps:$4 sm:$0xff]   ;;  %v8507_v30 = vld [vmem:[%s11568_s9 + $0x260] ss:$8 sps:$4 sm:$0xff]  }
 0x552   :  { %3628 = vmatpush1.bf16.msra.mxu0 %v8447_v38  ;;  %3432 = vmatprep.mubr.bf16.mxu0 %v3212_v35  ;;  %v8513_v31 = vld [vmem:[%s11568_s9 + $0x280] ss:$8 sps:$4 sm:$0xff]   ;;  %v8516_v15 = vld [vmem:[%s11568_s9 + $0x290] ss:$8 sps:$4 sm:$0xff]   ;;  %v8521_v26 = vld [vmem:[%s11568_s9 + $0x2a4] ss:$8 sps:$4 sm:$0xff]  }
 0x553   :  { %3629 = vmatprep.subr.bf16.mxu0 %v8452_v43  ;;  %v8519_v32 = vld [vmem:[%s11568_s9 + $0x2a0] ss:$8 sps:$4 sm:$0xff]   ;;  %v8527_v35 = vld [vmem:[%s11568_s9 + $0x2c4] ss:$8 sps:$4 sm:$0xff]   ;;  %v8530_v39 = vld [vmem:[%s11568_s9 + $0x2d4] ss:$8 sps:$4 sm:$0xff]  }
 0x554   :  { %v8525_v38 = vld [vmem:[%s11568_s9 + $0x2c0] ss:$8 sps:$4 sm:$0xff]   ;;  %v8528_v42 = vld [vmem:[%s11568_s9 + $0x2d0] ss:$8 sps:$4 sm:$0xff]   ;;  %v8533_v43 = vld [vmem:[%s11568_s9 + $0x2e4] ss:$8 sps:$4 sm:$0xff]  }
 0x556   :  { %3630 = vmatpush1.bf16.msra.mxu0 %v8450_v44  ;;  %v8531_v44 = vld [vmem:[%s11568_s9 + $0x2e0] ss:$8 sps:$4 sm:$0xff]  }
 0x557   :  { %3631 = vmatprep.subr.bf16.mxu0 %v8455_v45  ;;  %v8536_v45 = vld [vmem:[%s11568_s9 + $0x2f4] ss:$8 sps:$4 sm:$0xff]  }
 0x559   :  { %3433 = vmatmul.mubr.bf16.gmra.mrb[60].mxu0 %v3203_v34  ;;  %v8522_v34 = vld [vmem:[%s11568_s9 + $0x2b0] ss:$8 sps:$4 sm:$0xff]  }
 0x55a   :  { %3632 = vmatpush1.bf16.msra.mxu0 %v8453_v46  ;;  %3655 = vmatprep.mubr.bf16.mxu0 %v3452_v49  ;;  %v8471_v49 = vld [vmem:[%s11568_s9 + $0xa0] ss:$8 sps:$4 sm:$0xff]   ;;  %v8534_v46 = vld [vmem:[%s11568_s9 + $0x2f0] ss:$8 sps:$4 sm:$0xff]  }
 0x55b   :  { %3633 = vmatprep.subr.bf16.mxu0 %v8458_v47  ;;  %v8539_v47 = vld [vmem:[%s11568_s9 + $0x304] ss:$8 sps:$4 sm:$0xff]  }
 0x55e   :  { %3634 = vmatpush1.bf16.msra.mxu0 %v8456_v48  ;;  %v8537_v48 = vld [vmem:[%s11568_s9 + $0x300] ss:$8 sps:$4 sm:$0xff]  }
 0x55f   :  { %3635 = vmatprep.subr.bf16.mxu0 %v8461_v50  ;;  %v8542_v50 = vld [vmem:[%s11568_s9 + $0x314] ss:$8 sps:$4 sm:$0xff]  }
 0x562   :  { %3636 = vmatpush1.bf16.msra.mxu0 %v8459_v51  ;;  %v10567_v51 = vpack.c.bf16 %v10337_v62, %v10323_v37  ;;  %v10580_v62 = vld [vmem:[#allocation2 + $0x58] sm:$0xff] }
 0x563   :  { %3637 = vmatprep.subr.bf16.mxu0 %v8464_v52  ;;  %v3957_v52 = vld [vmem:[#allocation2 + $0x18] sm:$0xfe] }
 0x564   :  { %v3969_v37 = vpack.c.bf16 %v10307_v10, %v3957_v52  ;;  %v8585_v52 = vld [vmem:[%s11568_s9 + $0x400] ss:$8 sps:$4 sm:$0xff]  }
 0x566   :  { %3638 = vmatpush1.bf16.msra.mxu0 %v8462_v54  ;;  %v8540_v54 = vld [vmem:[%s11568_s9 + $0x310] ss:$8 sps:$4 sm:$0xff]  }
 0x567   :  { %3639 = vmatprep.subr.bf16.mxu0 %v8467_v55  ;;  %v8545_v55 = vld [vmem:[%s11568_s9 + $0x324] ss:$8 sps:$4 sm:$0xff]  }
 0x56a   :  { %3640 = vmatpush1.bf16.msra.mxu0 %v8465_v56  ;;  %v8548_v56 = vld [vmem:[%s11568_s9 + $0x334] ss:$8 sps:$4 sm:$0xff]  }
 0x56b   :  { %3641 = vmatprep.subr.bf16.mxu0 %v8470_v41  ;;  %v4022_v41 = vshll.u32 %v3969_v37, 16 }
 0x56e   :  { %3642 = vmatpush1.bf16.msra.mxu0 %v8468_v57  ;;  %v3691_v57 = vpack.c.bf16 %v10580_v62, %v10580_v62 }
 0x56f   :  { %3643 = vmatprep.subr.bf16.mxu0 %v8473_v58  ;;  %v4027_v58 = vshll.u32 %v10567_v51, 16 }
 0x572   :  { %3644 = vmatpush1.bf16.msra.mxu0 %v8471_v49  ;;  %v4024_v49 = vrot.slane %v4022_v41, 1  ;;  %v8588_v41 = vld [vmem:[%s11568_s9 + $0x410] ss:$8 sps:$4 sm:$0xff]  }
 0x573   :  { %3645 = vmatprep.subr.bf16.mxu0 %v8476_v0  ;;  %v10602_v0 = vld [vmem:[#allocation2 + $0x50] sm:$0xff] }
 0x576   :  { %3646 = vmatpush1.bf16.msra.mxu0 %v8474_v40  ;;  %v4020_v40 = vshrl.u32 %v3969_v37, 16 }
 0x577   :  { %3647 = vmatprep.subr.bf16.mxu0 %v8479_v63  ;;  %v10604_v63 = vrot.slane %v4027_v58, 1 }
 0x57a   :  { %3648 = vmatpush1.bf16.msra.mxu0 %v8477_v8  ;;  %v8549_v8 = vld [vmem:[%s11568_s9 + $0x340] ss:$8 sps:$4 sm:$0xff]  }
 0x57b   :  { %3649 = vmatprep.subr.bf16.mxu0 %v8482_v53  ;;  %v3690_v53 = vpack.c.bf16 %v10602_v0, %v10602_v0 }
 0x57e   :  { %3650 = vmatpush1.bf16.msra.mxu0 %v8480_v17  ;;  %v4025_v17 = vor.u32 %v4024_v49, %v4020_v40  ;;  %v8591_v49 = vld [vmem:[%s11568_s9 + $0x420] ss:$8 sps:$4 sm:$0xff]  }
 0x57f   :  { %3651 = vmatprep.subr.bf16.mxu0 %v8485_v18  ;;  %v8554_v18 = vld [vmem:[%s11568_s9 + $0x354] ss:$8 sps:$4 sm:$0xff]  }
 0x582   :  { %3652 = vmatpush1.bf16.msra.mxu0 %v8483_v19  ;;  %v4030_v19 = vsel %vm2175_vm2, %v4025_v17, %v10604_v63  ;;  %v4291_v17 = vld [vmem:[#allocation2 + $0x18] sm:$0xfc] }
 0x583   :  { %3653 = vmatprep.subr.bf16.mxu0 %v8488_v2  ;;  %v8552_v2 = vld [vmem:[%s11568_s9 + $0x350] ss:$8 sps:$4 sm:$0xff]  }
 0x586   :  { %3654 = vmatpush1.bf16.msra.mxu0 %v8486_v21  ;;  %v8557_v21 = vld [vmem:[%s11568_s9 + $0x364] ss:$8 sps:$4 sm:$0xff]  }
 0x587   :  { %3885 = vmatprep.subr.bf16.mxu0 %v8491_v11  ;;  %v8555_v11 = vld [vmem:[%s11568_s9 + $0x360] ss:$8 sps:$4 sm:$0xff]  }
 0x589   :  { %3656 = vmatmul.mubr.bf16.vlgmr.msra.gmra.mrb[52].mxu0 %v10330_v7  ;;  %v8500_v7 = vld [vmem:[%s11568_s9 + $0x234] ss:$8 sps:$4 sm:$0xff]  }
 0x58a   :  { %3665 = vmatprep.mubr.bf16.mxu0 %v10367_v33  ;;  %3886 = vmatpush1.bf16.msra.mxu0 %v8489_v20  ;;  %v8524_v33 = vld [vmem:[%s11568_s9 + $0x2b4] ss:$8 sps:$4 sm:$0xff]  }
 0x58b   :  { %3887 = vmatprep.subr.bf16.mxu0 %v8494_v22  ;;  %v8560_v20 = vld [vmem:[%s11568_s9 + $0x374] ss:$8 sps:$4 sm:$0xff]   ;;  %v8558_v22 = vld [vmem:[%s11568_s9 + $0x370] ss:$8 sps:$4 sm:$0xff]  }
 0x58e   :  { %3888 = vmatpush1.bf16.msra.mxu0 %v8492_v14  ;;  %v8563_v14 = vld [vmem:[%s11568_s9 + $0x384] ss:$8 sps:$4 sm:$0xff]  }
 0x58f   :  { %3889 = vmatprep.subr.bf16.mxu0 %v8497_v3  ;;  %v8561_v3 = vld [vmem:[%s11568_s9 + $0x380] ss:$8 sps:$4 sm:$0xff]  }
 0x591   :  { %3666 = vmatmul.mubr.bf16.gmra.mrb[56].mxu0 %v10360_v9  ;;  %v8518_v9 = vld [vmem:[%s11568_s9 + $0x294] ss:$8 sps:$4 sm:$0xff]  }
 0x592   :  { %3675 = vmatprep.mubr.bf16.mxu0 %v10353_v28  ;;  %3890 = vmatpush1.bf16.msra.mxu0 %v8495_v13  ;;  %v8504_v28 = vld [vmem:[%s11568_s9 + $0x250] ss:$8 sps:$4 sm:$0xff]   ;;  %v8566_v13 = vld [vmem:[%s11568_s9 + $0x394] ss:$8 sps:$4 sm:$0xff]  }
 0x593   :  { %3891 = vmatprep.subr.bf16.mxu0 %v8500_v7  ;;  %v8564_v7 = vld [vmem:[%s11568_s9 + $0x390] ss:$8 sps:$4 sm:$0xff]  }
 0x596   :  { %3892 = vmatpush1.bf16.msra.mxu0 %v8498_v23  ;;  %v8569_v23 = vld [vmem:[%s11568_s9 + $0x3a4] ss:$8 sps:$4 sm:$0xff]  }
 0x597   :  { %3893 = vmatprep.subr.bf16.mxu0 %v8503_v59  ;;  %v8567_v59 = vld [vmem:[%s11568_s9 + $0x3a0] ss:$8 sps:$4 sm:$0xff]  }
 0x599   :  { %3676 = vmatmul.mubr.bf16.gmra.mrb[64].mxu0 %v10351_v24  ;;  %v8515_v24 = vld [vmem:[%s11568_s9 + $0x284] ss:$8 sps:$4 sm:$0xff]  }
 0x59a   :  { %3894 = vmatpush1.bf16.msra.mxu0 %v8501_v25  ;;  %3917 = vmatprep.mubr.bf16.mxu0 %v3687_v16  ;;  %v8510_v16 = vld [vmem:[%s11568_s9 + $0x270] ss:$8 sps:$4 sm:$0xff]   ;;  %v8572_v25 = vld [vmem:[%s11568_s9 + $0x3b4] ss:$8 sps:$4 sm:$0xff]  }
 0x59b   :  { %3895 = vmatprep.subr.bf16.mxu0 %v8506_v27  ;;  %v8570_v27 = vld [vmem:[%s11568_s9 + $0x3b0] ss:$8 sps:$4 sm:$0xff]  }
 0x59e   :  { %3896 = vmatpush1.bf16.msra.mxu0 %v8504_v28  ;;  %v8575_v28 = vld [vmem:[%s11568_s9 + $0x3c4] ss:$8 sps:$4 sm:$0xff]  }
 0x59f   :  { %3897 = vmatprep.subr.bf16.mxu0 %v8509_v29  ;;  %v8573_v29 = vld [vmem:[%s11568_s9 + $0x3c0] ss:$8 sps:$4 sm:$0xff]  }
 0x5a2   :  { %3898 = vmatpush1.bf16.msra.mxu0 %v8507_v30  ;;  %v8578_v30 = vld [vmem:[%s11568_s9 + $0x3d4] ss:$8 sps:$4 sm:$0xff]  }
 0x5a3   :  { %3899 = vmatprep.subr.bf16.mxu0 %v8512_v5  ;;  %v3956_v5 = vld [vmem:[#allocation2 + $0x10] sm:$0xfe] }
 0x5a6   :  { %3900 = vmatpush1.bf16.msra.mxu0 %v8510_v16  ;;  %v8576_v16 = vld [vmem:[%s11568_s9 + $0x3d0] ss:$8 sps:$4 sm:$0xff]  }
 0x5a7   :  { %3901 = vmatprep.subr.bf16.mxu0 %v8515_v24  ;;  %v3968_v24 = vpack.c.bf16 %v10303_v1, %v3956_v5  ;;  %v8617_v5 = vld [vmem:[%s11568_s9 + $0x4a4] ss:$8 sps:$4 sm:$0xff]  }
 0x5aa   :  { %3902 = vmatpush1.bf16.msra.mxu0 %v8513_v31  ;;  %v3967_v31 = vld [vmem:[#allocation2 + $0x68] sm:$0x1] }
 0x5ab   :  { %3903 = vmatprep.subr.bf16.mxu0 %v8518_v9  ;;  %v8581_v9 = vld [vmem:[%s11568_s9 + $0x3e4] ss:$8 sps:$4 sm:$0xff]  }
 0x5ae   :  { %3904 = vmatpush1.bf16.msra.mxu0 %v8516_v15  ;;  %v3973_v15 = vpack.c.bf16 %v3967_v31, %v10580_v62 }
 0x5af   :  { %3905 = vmatprep.subr.bf16.mxu0 %v8521_v26  ;;  %v8579_v26 = vld [vmem:[%s11568_s9 + $0x3e0] ss:$8 sps:$4 sm:$0xff]  }
 0x5b0   :  { %v4050_v40 = vshrl.u32 %v3973_v15, 16 }
 0x5b2   :  { %3906 = vmatpush1.bf16.msra.mxu0 %v8519_v32  ;;  %v4010_v32 = vshll.u32 %v3968_v24, 16 }
 0x5b3   :  { %3907 = vmatprep.subr.bf16.mxu0 %v8524_v33  ;;  %v8584_v33 = vld [vmem:[%s11568_s9 + $0x3f4] ss:$8 sps:$4 sm:$0xff]  }
 0x5b6   :  { %3908 = vmatpush1.bf16.msra.mxu0 %v8522_v34 }
 0x5b7   :  { %3909 = vmatprep.subr.bf16.mxu0 %v8527_v35  ;;  %v4043_v35 = vshll.u32 %v3973_v15, 16 }
 0x5ba   :  { %3910 = vmatpush1.bf16.msra.mxu0 %v8525_v38  ;;  %v3966_v38 = vld [vmem:[#allocation2 + $0x60] sm:$0x1] }
 0x5bb   :  { %3911 = vmatprep.subr.bf16.mxu0 %v8530_v39  ;;  %v8582_v39 = vld [vmem:[%s11568_s9 + $0x3f0] ss:$8 sps:$4 sm:$0xff]  }
 0x5be   :  { %3912 = vmatpush1.bf16.msra.mxu0 %v8528_v42  ;;  %v4012_v42 = vrot.slane %v4010_v32, 1  ;;  %v8618_v32 = vld [vmem:[%s11568_s9 + $0x4b0] ss:$8 sps:$4 sm:$0xff]  }
 0x5bf   :  { %3913 = vmatprep.subr.bf16.mxu0 %v8533_v43  ;;  %v8587_v43 = vld [vmem:[%s11568_s9 + $0x404] ss:$8 sps:$4 sm:$0xff]  }
 0x5c2   :  { %3914 = vmatpush1.bf16.msra.mxu0 %v8531_v44  ;;  %v4008_v44 = vshrl.u32 %v3968_v24, 16 }
 0x5c3   :  { %3915 = vmatprep.subr.bf16.mxu0 %v8536_v45 }
 0x5c6   :  { %3916 = vmatpush1.bf16.msra.mxu0 %v8534_v46  ;;  %v3972_v46 = vpack.c.bf16 %v3966_v38, %v10602_v0  ;;  %v8636_v38 = vld [vmem:[%s11571_s11 + $0x10] ss:$8 sps:$4 sm:$0xff]  }
 0x5c7   :  { %4219 = vmatprep.subr.bf16.mxu0 %v8539_v47  ;;  %v4039_v47 = vshrl.u32 %v10567_v51, 16 }
 0x5c9   :  { %3918 = vmatmul.mubr.bf16.vlgmr.msra.gmra.mrb[52].mxu0 %v3686_v12  ;;  %v10587_v12 = vpack.c.bf16 %v10334_v60, %v10321_v36  ;;  %v8546_v36 = vld [vmem:[%s11568_s9 + $0x330] ss:$8 sps:$4 sm:$0xff]   ;;  %v8551_v60 = vld [vmem:[%s11568_s9 + $0x344] ss:$8 sps:$4 sm:$0xff]  }
 0x5ca   :  { %3927 = vmatprep.mubr.bf16.mxu0 %v10567_v51  ;;  %4220 = vmatpush1.bf16.msra.mxu0 %v8537_v48  ;;  %v4045_v48 = vrot.slane %v4043_v35, 1  ;;  %v8635_v35 = vld [vmem:[%s11571_s11 + $0x4] ss:$8 sps:$4 sm:$0xff]  }
 0x5cb   :  { %4221 = vmatprep.subr.bf16.mxu0 %v8542_v50  ;;  %v4015_v34 = vshll.u32 %v10587_v12, 16  ;;  %v4013_v50 = vor.u32 %v4012_v42, %v4008_v44  ;;  %v4031_v58 = vshrl.u32 %v10587_v12, 16  ;;  %4826 = vmatprep.subr.bf16.mxu1 %v8635_v35  ;;  %v8621_v42 = vld [vmem:[%s11568_s9 + $0x4c0] ss:$8 sps:$4 sm:$0xff]   ;;  %v8624_v44 = vld [vmem:[%s11568_s9 + $0x4d0] ss:$8 sps:$4 sm:$0xff]  }
 0x5cd   :  { %v4017_v45 = vrot.slane %v4015_v34, 1  ;;  %v8623_v34 = vld [vmem:[%s11568_s9 + $0x4c4] ss:$8 sps:$4 sm:$0xff]  }
 0x5ce   :  { %4222 = vmatpush1.bf16.msra.mxu0 %v8540_v54  ;;  %v4041_v54 = vor.u32 %v4039_v47, %v10604_v63  ;;  %v8596_v63 = vld [vmem:[%s11568_s9 + $0x434] ss:$8 sps:$4 sm:$0xff]   ;;  %v4293_v47 = vld [vmem:[#allocation2 + $0x68] sm:$0x3] }
 0x5cf   :  { %4223 = vmatprep.subr.bf16.mxu0 %v8545_v55  ;;  %v8590_v55 = vld [vmem:[%s11568_s9 + $0x414] ss:$8 sps:$4 sm:$0xff]   ;;  %v4018_v37 = vsel %vm2175_vm2, %v4013_v50, %v4017_v45 }
 0x5d0   :  { %v4290_v50 = vld [vmem:[#allocation2 + $0x10] sm:$0xfc] }
 0x5d1   :  { %3928 = vmatmul.mubr.bf16.gmra.mrb[56].mxu0 %v10587_v12 }
 0x5d2   :  { %3937 = vmatprep.mubr.bf16.mxu0 %v3691_v57  ;;  %4224 = vmatpush1.bf16.msra.mxu0 %v8543_v61  ;;  %v4035_v61 = vshll.u32 %v3972_v46, 16  ;;  %v8593_v57 = vld [vmem:[%s11568_s9 + $0x424] ss:$8 sps:$4 sm:$0xff]  }
 0x5d3   :  { %4225 = vmatprep.subr.bf16.mxu0 %v8548_v56  ;;  %v4046_v56 = vsel %vm2175_vm2, %v4041_v54, %v4045_v48  ;;  %v8630_v54 = vld [vmem:[%s11568_s9 + $0x4f0] ss:$8 sps:$4 sm:$0xff]  }
 0x5d6   :  { %4226 = vmatpush1.bf16.msra.mxu0 %v8546_v36  ;;  %v4037_v36 = vrot.slane %v4035_v61, 1 }
 0x5d7   :  { %4227 = vmatprep.subr.bf16.mxu0 %v8551_v60  ;;  %v4033_v60 = vor.u32 %v4031_v58, %v4017_v45  ;;  %v8629_v45 = vld [vmem:[%s11568_s9 + $0x4e4] ss:$8 sps:$4 sm:$0xff]  }
 0x5d9   :  { %3938 = vmatmul.mubr.bf16.gmra.mrb[68].mxu0 %v3690_v53  ;;  %v4052_v53 = vor.u32 %v4050_v40, %v4045_v48  ;;  %v8632_v48 = vld [vmem:[%s11568_s9 + $0x4f4] ss:$8 sps:$4 sm:$0xff]  }
 0x5da   :  { %4228 = vmatpush1.bf16.msra.mxu0 %v8549_v8  ;;  %4251 = vmatprep.mubr.bf16.mxu0 %v4030_v19  ;;  %v4038_v8 = vsel %vm2175_vm2, %v4033_v60, %v4037_v36  ;;  %v8599_v19 = vld [vmem:[%s11568_s9 + $0x444] ss:$8 sps:$4 sm:$0xff]  }
 0x5db   :  { %4229 = vmatprep.subr.bf16.mxu0 %v8554_v18  ;;  %v8594_v18 = vld [vmem:[%s11568_s9 + $0x430] ss:$8 sps:$4 sm:$0xff]  }
 0x5de   :  { %4230 = vmatpush1.bf16.msra.mxu0 %v8552_v2  ;;  %v4295_v2 = vpack.c.bf16 %v10307_v10, %v4291_v17  ;;  %v8642_v17 = vld [vmem:[%s11571_s11 + $0x30] ss:$8 sps:$4 sm:$0xff]  }
 0x5df   :  { %4231 = vmatprep.subr.bf16.mxu0 %v8557_v21  ;;  %v4047_v21 = vshrl.u32 %v3972_v46, 16  ;;  %v8627_v46 = vld [vmem:[%s11568_s9 + $0x4e0] ss:$8 sps:$4 sm:$0xff]  }
 0x5e2   :  { %4232 = vmatpush1.bf16.msra.mxu0 %v8555_v11  ;;  %v4341_v11 = vrot.slane %v10567_v51, 1  ;;  %v8641_v51 = vld [vmem:[%s11571_s11 + $0x24] ss:$8 sps:$4 sm:$0xff]  }
 0x5e3   :  { %4233 = vmatprep.subr.bf16.mxu0 %v8560_v20  ;;  %v8597_v20 = vld [vmem:[%s11568_s9 + $0x440] ss:$8 sps:$4 sm:$0xff]  }
 0x5e6   :  { %4234 = vmatpush1.bf16.msra.mxu0 %v8558_v22  ;;  %v4049_v22 = vor.u32 %v4047_v21, %v4037_v36  ;;  %v8648_v21 = vld [vmem:[%s11571_s11 + $0x50] ss:$8 sps:$4 sm:$0xff]  }
 0x5e7   :  { %4235 = vmatprep.subr.bf16.mxu0 %v8563_v14  ;;  %v4340_v14 = vrot.slane %v4295_v2, 1  ;;  %v8650_v2 = vld [vmem:[%s11571_s11 + $0x54] ss:$8 sps:$4 sm:$0xff]  }
 0x5e9   :  { %v4342_v10 = vsel %vm2506_vm3, %v4340_v14, %v4341_v11  ;;  %v8654_v14 = vld [vmem:[%s11571_s11 + $0x70] ss:$8 sps:$4 sm:$0xff]  }
 0x5ea   :  { %4236 = vmatpush1.bf16.msra.mxu0 %v8561_v3  ;;  %v8602_v3 = vld [vmem:[%s11568_s9 + $0x454] ss:$8 sps:$4 sm:$0xff]  }
 0x5eb   :  { %4237 = vmatprep.subr.bf16.mxu0 %v8566_v13  ;;  %v8600_v13 = vld [vmem:[%s11568_s9 + $0x450] ss:$8 sps:$4 sm:$0xff]  }
 0x5ee   :  { %4238 = vmatpush1.bf16.msra.mxu0 %v8564_v7  ;;  %v8605_v7 = vld [vmem:[%s11568_s9 + $0x464] ss:$8 sps:$4 sm:$0xff]  }
 0x5ef   :  { %4239 = vmatprep.subr.bf16.mxu0 %v8569_v23  ;;  %v8603_v23 = vld [vmem:[%s11568_s9 + $0x460] ss:$8 sps:$4 sm:$0xff]  }
 0x5f2   :  { %4240 = vmatpush1.bf16.msra.mxu0 %v8567_v59  ;;  %v8608_v59 = vld [vmem:[%s11568_s9 + $0x474] ss:$8 sps:$4 sm:$0xff]  }
 0x5f3   :  { %4241 = vmatprep.subr.bf16.mxu0 %v8572_v25  ;;  %v8606_v25 = vld [vmem:[%s11568_s9 + $0x470] ss:$8 sps:$4 sm:$0xff]  }
 0x5f6   :  { %4242 = vmatpush1.bf16.msra.mxu0 %v8570_v27  ;;  %v8611_v27 = vld [vmem:[%s11568_s9 + $0x484] ss:$8 sps:$4 sm:$0xff]  }
 0x5f7   :  { %4243 = vmatprep.subr.bf16.mxu0 %v8575_v28  ;;  %v8609_v28 = vld [vmem:[%s11568_s9 + $0x480] ss:$8 sps:$4 sm:$0xff]  }
 0x5fa   :  { %4244 = vmatpush1.bf16.msra.mxu0 %v8573_v29  ;;  %v8614_v29 = vld [vmem:[%s11568_s9 + $0x494] ss:$8 sps:$4 sm:$0xff]  }
 0x5fb   :  { %4245 = vmatprep.subr.bf16.mxu0 %v8578_v30  ;;  %v8612_v30 = vld [vmem:[%s11568_s9 + $0x490] ss:$8 sps:$4 sm:$0xff]  }
 0x5fe   :  { %4246 = vmatpush1.bf16.msra.mxu0 %v8576_v16 }
 0x5ff   :  { %4247 = vmatprep.subr.bf16.mxu0 %v8581_v9  ;;  %v8615_v9 = vld [vmem:[%s11568_s9 + $0x4a0] ss:$8 sps:$4 sm:$0xff]  }
 0x602   :  { %4248 = vmatpush1.bf16.msra.mxu0 %v8579_v26  ;;  %v8620_v26 = vld [vmem:[%s11568_s9 + $0x4b4] ss:$8 sps:$4 sm:$0xff]  }
 0x603   :  { %4249 = vmatprep.subr.bf16.mxu0 %v8584_v33  ;;  %v8633_v33 = vld [vmem:[%s11571_s11] ss:$8 sps:$4 sm:$0xff]  }
 0x604   :  { %4827 = vmatpush1.bf16.msra.mxu1 %v8633_v33 }
 0x606   :  { %4250 = vmatpush1.bf16.msra.mxu0 %v8582_v39  ;;  %v8638_v39 = vld [vmem:[%s11571_s11 + $0x14] ss:$8 sps:$4 sm:$0xff]  }
 0x607   :  { %4513 = vmatprep.subr.bf16.mxu0 %v8587_v43  ;;  %v8626_v43 = vld [vmem:[%s11568_s9 + $0x4d4] ss:$8 sps:$4 sm:$0xff]   ;;  %4828 = vmatprep.subr.bf16.mxu1 %v8638_v39 }
 0x608   :  { %4829 = vmatpush1.bf16.msra.mxu1 %v8636_v38  ;;  %v8683_v38 = vld [vmem:[%s11572_s13 + $0x104] ss:$8 sps:$4 sm:$0xff]  }
 0x609   :  { %4252 = vmatmul.mubr.bf16.vlgmr.msra.gmra.mrb[52].mxu0 %v4018_v37  ;;  %v4338_v37 = vrot.slane %v10587_v12, 1  ;;  %4830 = vmatprep.subr.bf16.mxu1 %v8641_v51 }
 0x60a   :  { %4261 = vmatprep.mubr.bf16.mxu0 %v4046_v56  ;;  %4514 = vmatpush1.bf16.msra.mxu0 %v8585_v52  ;;  %v4297_v52 = vpack.c.bf16 %v4293_v47, %v10580_v62  ;;  %v4292_v56 = vld [vmem:[#allocation2 + $0x60] sm:$0x3] }
 0x60b   :  { %4515 = vmatprep.subr.bf16.mxu0 %v8590_v55  ;;  %v4294_v55 = vpack.c.bf16 %v10303_v1, %v4290_v50  ;;  %v4296_v58 = vpack.c.bf16 %v4292_v56, %v10602_v0  ;;  %v8639_v0 = vld [vmem:[%s11571_s11 + $0x20] ss:$8 sps:$4 sm:$0xff]  }
 0x60c   :  { %v4345_v61 = vrot.slane %v4297_v52, 1  ;;  %4831 = vmatpush1.bf16.msra.mxu1 %v8639_v0  ;;  %v4584_v47 = vld [vmem:[%s11573_s10] sm:$0x3]  ;;  %v8686_v0 = vld [vmem:[%s11572_s13 + $0x114] ss:$8 sps:$4 sm:$0xff]  }
 0x60d   :  { %v4343_v36 = vrot.slane %v4296_v58, 1  ;;  %v4593_v50 = vrot.slane %v4584_v47, %v9516_v6 }
 0x60e   :  { %4516 = vmatpush1.bf16.msra.mxu0 %v8588_v41  ;;  %v4337_v41 = vrot.slane %v4294_v55, 1  ;;  %v4346_v62 = vsel %vm2506_vm3, %v4341_v11, %v4345_v61  ;;  %v8653_v11 = vld [vmem:[%s11571_s11 + $0x64] ss:$8 sps:$4 sm:$0xff]  }
 0x60f   :  { %4517 = vmatprep.subr.bf16.mxu0 %v8593_v57  ;;  %v4344_v1 = vsel %vm2506_vm3, %v4338_v37, %v4343_v36 }
 0x610   :  { %v4339_v57 = vsel %vm2506_vm3, %v4337_v41, %v4338_v37 }
 0x611   :  { %4262 = vmatmul.mubr.bf16.gmra.mrb[56].mxu0 %v4038_v8 }
 0x612   :  { %4271 = vmatprep.mubr.bf16.mxu0 %v4052_v53  ;;  %4518 = vmatpush1.bf16.msra.mxu0 %v8591_v49  ;;  %v8644_v53 = vld [vmem:[%s11571_s11 + $0x34] ss:$8 sps:$4 sm:$0xff]  }
 0x613   :  { %4519 = vmatprep.subr.bf16.mxu0 %v8596_v63  ;;  %4832 = vmatprep.subr.bf16.mxu1 %v8644_v53 }
 0x614   :  { %4833 = vmatpush1.bf16.msra.mxu1 %v8642_v17 }
 0x616   :  { %4520 = vmatpush1.bf16.msra.mxu0 %v8594_v18  ;;  %v8647_v18 = vld [vmem:[%s11571_s11 + $0x44] ss:$8 sps:$4 sm:$0xff]  }
 0x617   :  { %4521 = vmatprep.subr.bf16.mxu0 %v8599_v19  ;;  %v8645_v19 = vld [vmem:[%s11571_s11 + $0x40] ss:$8 sps:$4 sm:$0xff]   ;;  %4834 = vmatprep.subr.bf16.mxu1 %v8647_v18 }
 0x618   :  { %4835 = vmatpush1.bf16.msra.mxu1 %v8645_v19 }
 0x619   :  { %4272 = vmatmul.mubr.bf16.gmra.mrb[72].mxu0 %v4049_v22  ;;  %4836 = vmatprep.subr.bf16.mxu1 %v8650_v2  ;;  %v8656_v22 = vld [vmem:[%s11571_s11 + $0x74] ss:$8 sps:$4 sm:$0xff]   ;;  %v8684_v2 = vld [vmem:[%s11572_s13 + $0x110] ss:$8 sps:$4 sm:$0xff]  }
 0x61a   :  { %4522 = vmatpush1.bf16.msra.mxu0 %v8597_v20  ;;  %4545 = vmatprep.mubr.bf16.mxu0 %v4342_v10  ;;  %v8651_v20 = vld [vmem:[%s11571_s11 + $0x60] ss:$8 sps:$4 sm:$0xff]  }
 0x61b   :  { %4523 = vmatprep.subr.bf16.mxu0 %v8602_v3  ;;  %v8659_v3 = vld [vmem:[%s11571_s11 + $0x84] ss:$8 sps:$4 sm:$0xff]   ;;  %v8657_v10 = vld [vmem:[%s11571_s11 + $0x80] ss:$8 sps:$4 sm:$0xff]  }
 0x61c   :  { %4837 = vmatpush1.bf16.msra.mxu1 %v8648_v21 }
 0x61d   :  { %4838 = vmatprep.subr.bf16.mxu1 %v8653_v11 }
 0x61e   :  { %4524 = vmatpush1.bf16.msra.mxu0 %v8600_v13  ;;  %v8662_v13 = vld [vmem:[%s11571_s11 + $0x94] ss:$8 sps:$4 sm:$0xff]  }
 0x61f   :  { %4525 = vmatprep.subr.bf16.mxu0 %v8605_v7  ;;  %v8660_v7 = vld [vmem:[%s11571_s11 + $0x90] ss:$8 sps:$4 sm:$0xff]  }
 0x620   :  { %4839 = vmatpush1.bf16.msra.mxu1 %v8651_v20  ;;  %v8689_v20 = vld [vmem:[%s11572_s13 + $0x124] ss:$8 sps:$4 sm:$0xff]  }
 0x621   :  { %4840 = vmatprep.subr.bf16.mxu1 %v8656_v22 }
 0x622   :  { %4526 = vmatpush1.bf16.msra.mxu0 %v8603_v23  ;;  %v8665_v23 = vld [vmem:[%s11571_s11 + $0xa4] ss:$8 sps:$4 sm:$0xff]  }
 0x623   :  { %4527 = vmatprep.subr.bf16.mxu0 %v8608_v59  ;;  %v8663_v59 = vld [vmem:[%s11571_s11 + $0xa0] ss:$8 sps:$4 sm:$0xff]  }
 0x624   :  { %4841 = vmatpush1.bf16.msra.mxu1 %v8654_v14 }
 0x625   :  { %4842 = vmatprep.subr.bf16.mxu1 %v8659_v3 }
 0x626   :  { %4528 = vmatpush1.bf16.msra.mxu0 %v8606_v25  ;;  %v8668_v25 = vld [vmem:[%s11571_s11 + $0xb4] ss:$8 sps:$4 sm:$0xff]  }
 0x627   :  { %4529 = vmatprep.subr.bf16.mxu0 %v8611_v27  ;;  %v8666_v27 = vld [vmem:[%s11571_s11 + $0xb0] ss:$8 sps:$4 sm:$0xff]  }
 0x628   :  { %4843 = vmatpush1.bf16.msra.mxu1 %v8657_v10 }
 0x629   :  { %4844 = vmatprep.subr.bf16.mxu1 %v8662_v13 }
 0x62a   :  { %4530 = vmatpush1.bf16.msra.mxu0 %v8609_v28  ;;  %v8671_v28 = vld [vmem:[%s11571_s11 + $0xc4] ss:$8 sps:$4 sm:$0xff]  }
 0x62b   :  { %4531 = vmatprep.subr.bf16.mxu0 %v8614_v29  ;;  %v8669_v29 = vld [vmem:[%s11571_s11 + $0xc0] ss:$8 sps:$4 sm:$0xff]  }
 0x62c   :  { %v3434_v16 = vpop.f32.mrb[60].mxu0  ;;  %4845 = vmatpush1.bf16.msra.mxu1 %v8660_v7  ;;  %v8687_v7 = vld [vmem:[%s11572_s13 + $0x120] ss:$8 sps:$4 sm:$0xff]  }
 0x62d   :  { %v3436_v24 = vpop.f32.mrb[61].mxu0  ;;  %4846 = vmatprep.subr.bf16.mxu1 %v8665_v23 }
 0x62e   :  { %4532 = vmatpush1.bf16.msra.mxu0 %v8612_v30  ;;  %v3438_v31 = vpop.f32.mrb[62].mxu0  ;;  %v8674_v30 = vld [vmem:[%s11571_s11 + $0xd4] ss:$8 sps:$4 sm:$0xff]  }
 0x62f   :  { %v3439_v15 = vpop.f32.mrb[63].mxu0  ;;  %4533 = vmatprep.subr.bf16.mxu0 %v8617_v5  ;;  %v8672_v5 = vld [vmem:[%s11571_s11 + $0xd0] ss:$8 sps:$4 sm:$0xff]   ;;  %v8680_v31 = vld [vmem:[%s11571_s11 + $0xf4] ss:$8 sps:$4 sm:$0xff]  }
 0x630   :  { %4847 = vmatpush1.bf16.msra.mxu1 %v8663_v59 }
 0x631   :  { %4848 = vmatprep.subr.bf16.mxu1 %v8668_v25  ;;  %v8692_v25 = vld [vmem:[%s11572_s13 + $0x134] ss:$8 sps:$4 sm:$0xff]  }
 0x632   :  { %4534 = vmatpush1.bf16.msra.mxu0 %v8615_v9  ;;  %v8678_v9 = vld [vmem:[%s11571_s11 + $0xf0] ss:$8 sps:$4 sm:$0xff]  }
 0x633   :  { %4535 = vmatprep.subr.bf16.mxu0 %v8620_v26 }
 0x634   :  { %4849 = vmatpush1.bf16.msra.mxu1 %v8666_v27 }
 0x635   :  { %4850 = vmatprep.subr.bf16.mxu1 %v8671_v28 }
 0x636   :  { %4536 = vmatpush1.bf16.msra.mxu0 %v8618_v32 }
 0x637   :  { %4537 = vmatprep.subr.bf16.mxu0 %v8623_v34 }
 0x638   :  { %4851 = vmatpush1.bf16.msra.mxu1 %v8669_v29 }
 0x639   :  { %4852 = vmatprep.subr.bf16.mxu1 %v8674_v30 }
 0x63a   :  { %4538 = vmatpush1.bf16.msra.mxu0 %v8621_v42 }
 0x63b   :  { %4539 = vmatprep.subr.bf16.mxu0 %v8626_v43 }
 0x63c   :  { %4853 = vmatpush1.bf16.msra.mxu1 %v8672_v5 }
 0x63e   :  { %4540 = vmatpush1.bf16.msra.mxu0 %v8624_v44 }
 0x63f   :  { %4541 = vmatprep.subr.bf16.mxu0 %v8629_v45 }
 0x642   :  { %4542 = vmatpush1.bf16.msra.mxu0 %v8627_v46 }
 0x643   :  { %4543 = vmatprep.subr.bf16.mxu0 %v8632_v48  ;;  %v4589_v48 = vrot.slane %v4584_v47, %v9511_v4  ;;  %v8713_v47 = vld [vmem:[%s11572_s13 + $0x1a4] ss:$8 sps:$4 sm:$0xff]  }
 0x646   :  { %4544 = vmatpush1.bf16.msra.mxu0 %v8630_v54 }
 0x649   :  { %4546 = vmatmul.mubr.bf16.vlgmr.msra.gmra.mrb[52].mxu0 %v4339_v57 }
 0x64a   :  { %4555 = vmatprep.mubr.bf16.mxu0 %v4346_v62 }
 0x651   :  { %4556 = vmatmul.mubr.bf16.gmra.mrb[56].mxu0 %v4344_v1 }
 0x652   :  { %4565 = vmatprep.mubr.bf16.mxu0 %v4345_v61 }
 0x659   :  { %4566 = vmatmul.mubr.bf16.gmra.mrb[76].mxu0 %v4343_v36 }
 0x66c   :  { %v3677_v12 = vpop.f32.mrb[64].mxu0 }
 0x66d   :  { %v3678_v60 = vadd.f32 %v3677_v12, %v3434_v16  ;;  %v3679_v49 = vpop.f32.mrb[65].mxu0  ;;  %v8675_v16 = vld [vmem:[%s11571_s11 + $0xe0] ss:$8 sps:$4 sm:$0xff]  }
 0x66e   :  { %v3680_v40 = vadd.f32 %v3679_v49, %v3436_v24  ;;  %v3681_v63 = vpop.f32.mrb[66].mxu0  ;;  %v8677_v24 = vld [vmem:[%s11571_s11 + $0xe4] ss:$8 sps:$4 sm:$0xff]  }
 0x66f   :  { %v3682_v8 = vpop.f32.mrb[67].mxu0  ;;  %4854 = vmatprep.subr.bf16.mxu1 %v8677_v24 }
 0x670   :  { %4855 = vmatpush1.bf16.msra.mxu1 %v8675_v16  ;;  %v8690_v16 = vld [vmem:[%s11572_s13 + $0x130] ss:$8 sps:$4 sm:$0xff]  }
 0x671   :  { %4856 = vmatprep.subr.bf16.mxu1 %v8680_v31  ;;  %v8695_v31 = vld [vmem:[%s11572_s13 + $0x144] ss:$8 sps:$4 sm:$0xff]  }
 0x674   :  { %4857 = vmatpush1.bf16.msra.mxu1 %v8678_v9 }
 0x675   :  { %5210 = vmatprep.subr.bf16.mxu1 %v8683_v38  ;;  %v8699_v38 = vld [vmem:[%s11572_s13 + $0x160] ss:$8 sps:$4 sm:$0xff]  }
 0x6ac   :  { %v3939_v15 = vpop.f32.mrb[68].mxu0 }
 0x6ad   :  { %v3954_v26 = vadd.f32 %v3939_v15, %v3678_v60  ;;  %v3941_v32 = vpop.f32.mrb[69].mxu0 }
 0x6ae   :  { %v3955_v33 = vadd.f32 %v3941_v32, %v3680_v40  ;;  %v3943_v34 = vpop.f32.mrb[70].mxu0  ;;  %v8681_v40 = vld [vmem:[%s11572_s13 + $0x100] ss:$8 sps:$4 sm:$0xff]  }
 0x6af   :  { %v3944_v35 = vpop.f32.mrb[71].mxu0  ;;  %v8696_v34 = vld [vmem:[%s11572_s13 + $0x150] ss:$8 sps:$4 sm:$0xff]  }
 0x6b0   :  { %v8701_v35 = vld [vmem:[%s11572_s13 + $0x164] ss:$8 sps:$4 sm:$0xff]  }
 0x6ec   :  { %v4273_v39 = vpop.f32.mrb[72].mxu0 }
 0x6ed   :  { %v4288_v42 = vadd.f32 %v4273_v39, %v3954_v26  ;;  %v4275_v43 = vpop.f32.mrb[73].mxu0  ;;  %v8693_v26 = vld [vmem:[%s11572_s13 + $0x140] ss:$8 sps:$4 sm:$0xff]   ;;  %v8704_v39 = vld [vmem:[%s11572_s13 + $0x174] ss:$8 sps:$4 sm:$0xff]  }
 0x6ee   :  { %v4289_v44 = vadd.f32 %v4275_v43, %v3955_v33  ;;  %v4277_v45 = vpop.f32.mrb[74].mxu0  ;;  %v8698_v33 = vld [vmem:[%s11572_s13 + $0x154] ss:$8 sps:$4 sm:$0xff]   ;;  %v8707_v43 = vld [vmem:[%s11572_s13 + $0x184] ss:$8 sps:$4 sm:$0xff]  }
 0x6ef   :  { %v4278_v46 = vpop.f32.mrb[75].mxu0  ;;  %v8708_v45 = vld [vmem:[%s11572_s13 + $0x190] ss:$8 sps:$4 sm:$0xff]  }
 0x6f0   :  { %v8710_v46 = vld [vmem:[%s11572_s13 + $0x194] ss:$8 sps:$4 sm:$0xff]  }
 0x71c   :  { %v4547_v52 = vpop.f32.mrb[52].mxu0 }
 0x71d   :  { %v4596_v54 = vadd.f32 %v4589_v48, %v4547_v52  ;;  %v4549_v55 = vpop.f32.mrb[53].mxu0  ;;  %v8716_v52 = vld [vmem:[%s11572_s13 + $0x1b4] ss:$8 sps:$4 sm:$0xff]  }
 0x71e   :  { %v4597_v37 = vadd.f32 %v4593_v50, %v4549_v55  ;;  %v4551_v61 = vpop.f32.mrb[54].mxu0  ;;  %v8717_v55 = vld [vmem:[%s11572_s13 + $0x1c0] ss:$8 sps:$4 sm:$0xff]  }
 0x71f   :  { %v4598_v56 = vadd.f32 %v4589_v48, %v4551_v61  ;;  %v4553_v41 = vpop.f32.mrb[55].mxu0  ;;  %v4606_v58 = vmax.f32 %v4596_v54, 0.0  ;;  %v8719_v54 = vld [vmem:[%s11572_s13 + $0x1c4] ss:$8 sps:$4 sm:$0xff]   ;;  %v8722_v61 = vld [vmem:[%s11572_s13 + $0x1d4] ss:$8 sps:$4 sm:$0xff]  }
 0x720   :  { %v4599_v57 = vadd.f32 %v4593_v50, %v4553_v41  ;;  %v4607_v36 = vmax.f32 %v4597_v37, 0.0  ;;  %v8720_v37 = vld [vmem:[%s11572_s13 + $0x1d0] ss:$8 sps:$4 sm:$0xff]   ;;  %v8723_v41 = vld [vmem:[%s11572_s13 + $0x1e0] ss:$8 sps:$4 sm:$0xff]  }
 0x721   :  { %v4608_v62 = vmax.f32 %v4598_v56, 0.0  ;;  %v8725_v56 = vld [vmem:[%s11572_s13 + $0x1e4] ss:$8 sps:$4 sm:$0xff]  }
 0x722   :  { %v4609_v1 = vmax.f32 %v4599_v57, 0.0  ;;  %v8728_v57 = vld [vmem:[%s11572_s13 + $0x1f4] ss:$8 sps:$4 sm:$0xff]  }
 0x723   :  { %v4616_v12 = vpack.c.bf16 %v4608_v62, %v4606_v58  ;;  %v8726_v58 = vld [vmem:[%s11572_s13 + $0x1f0] ss:$8 sps:$4 sm:$0xff]   ;;  %v8731_v62 = vld [vmem:[%s11572_s13 + $0x4] ss:$8 sps:$4 sm:$0xff]  }
 0x724   :  { %v4617_v60 = vpack.c.bf16 %v4609_v1, %v4607_v36  ;;  %v4557_v49 = vpop.f32.mrb[56].mxu0  ;;  %v4654_v36 = vld [vmem:[%s11574_s12] sm:$0x3] }
 0x725   :  { %v4600_v63 = vadd.f32 %v4589_v48, %v4557_v49  ;;  %v4559_v8 = vpop.f32.mrb[57].mxu0  ;;  %v4659_v1 = vrot.slane %v4654_v36, %v9511_v4 }
 0x726   :  { %v4601_v51 = vadd.f32 %v4593_v50, %v4559_v8  ;;  %v4561_v53 = vpop.f32.mrb[58].mxu0  ;;  %4858 = vmatprep.mubr.bf16.mxu1 %v4617_v60 }
 0x727   :  { %v4602_v17 = vadd.f32 %v4589_v48, %v4561_v53  ;;  %v4563_v18 = vpop.f32.mrb[59].mxu0  ;;  %4859 = vmatmul.mubr.bf16.vlgmr.msra.gmra.mrb[28].mxu1 %v4616_v12  ;;  %v4610_v21 = vmax.f32 %v4600_v63, 0.0  ;;  %v4663_v12 = vrot.slane %v4654_v36, %v9516_v6 }
 0x728   :  { %v4603_v19 = vadd.f32 %v4593_v50, %v4563_v18  ;;  %5211 = vmatpush1.bf16.msra.mxu1 %v8681_v40  ;;  %v4611_v22 = vmax.f32 %v4601_v51, 0.0 }
 0x729   :  { %v4612_v11 = vmax.f32 %v4602_v17, 0.0  ;;  %5212 = vmatprep.subr.bf16.mxu1 %v8686_v0 }
 0x72a   :  { %v4613_v14 = vmax.f32 %v4603_v19, 0.0 }
 0x72b   :  { %v4618_v3 = vpack.c.bf16 %v4612_v11, %v4610_v21 }
 0x72c   :  { %v4619_v10 = vpack.c.bf16 %v4613_v14, %v4611_v22  ;;  %v4567_v13 = vpop.f32.mrb[76].mxu0  ;;  %5213 = vmatpush1.bf16.msra.mxu1 %v8684_v2  ;;  %v4951_v22 = vld [vmem:[#allocation2] sm:$0x80] }
 0x72d   :  { %v4582_v23 = vadd.f32 %v4567_v13, %v4288_v42  ;;  %v4569_v59 = vpop.f32.mrb[77].mxu0  ;;  %5214 = vmatprep.subr.bf16.mxu1 %v8689_v20  ;;  %v8702_v42 = vld [vmem:[%s11572_s13 + $0x170] ss:$8 sps:$4 sm:$0xff]   ;;  %v8938_v13 = vld [vmem:[#allocation2] sm:$0xff] }
 0x72e   :  { %v4583_v27 = vadd.f32 %v4569_v59, %v4289_v44  ;;  %v4571_v28 = vpop.f32.mrb[78].mxu0  ;;  %4868 = vmatprep.mubr.bf16.mxu1 %v4619_v10  ;;  %v8705_v44 = vld [vmem:[%s11572_s13 + $0x180] ss:$8 sps:$4 sm:$0xff]   ;;  %v4952_v10 = vld [vmem:[#allocation2 + $0x8] sm:$0x80] }
 0x72f   :  { %v4604_v29 = vadd.f32 %v4589_v48, %v4582_v23  ;;  %v4572_v30 = vpop.f32.mrb[79].mxu0  ;;  %4869 = vmatmul.mubr.bf16.gmra.mrb[32].mxu1 %v4618_v3  ;;  %v8711_v48 = vld [vmem:[%s11572_s13 + $0x1a0] ss:$8 sps:$4 sm:$0xff]   ;;  %v4902_v59 = vld [vmem:[#allocation2 + $0x8] sm:$0xc0] }
 0x730   :  { %v4605_v5 = vadd.f32 %v4593_v50, %v4583_v27  ;;  %5215 = vmatpush1.bf16.msra.mxu1 %v8687_v7  ;;  %v8714_v50 = vld [vmem:[%s11572_s13 + $0x1b0] ss:$8 sps:$4 sm:$0xff]  }
 0x731   :  { %v4614_v24 = vmax.f32 %v4604_v29, 0.0  ;;  %5216 = vmatprep.subr.bf16.mxu1 %v8692_v25  ;;  %v4901_v25 = vld [vmem:[#allocation2] sm:$0xc0] }
 0x732   :  { %v4615_v9 = vmax.f32 %v4605_v5, 0.0 }
 0x733   :  { %v4620_v32 = vpack.c.bf16 %v4614_v24, %v4614_v24 }
 0x734   :  { %v4621_v15 = vpack.c.bf16 %v4615_v9, %v4615_v9  ;;  %5217 = vmatpush1.bf16.msra.mxu1 %v8690_v16 }
 0x735   :  { %5218 = vmatprep.subr.bf16.mxu1 %v8695_v31 }
 0x736   :  { %4878 = vmatprep.mubr.bf16.mxu1 %v4621_v15 }
 0x737   :  { %4879 = vmatmul.mubr.bf16.gmra.mrb[36].mxu1 %v4620_v32 }
 0x738   :  { %5219 = vmatpush1.bf16.msra.mxu1 %v8693_v26 }
 0x739   :  { %5220 = vmatprep.subr.bf16.mxu1 %v8698_v33 }
 0x73c   :  { %5221 = vmatpush1.bf16.msra.mxu1 %v8696_v34 }
 0x73d   :  { %5222 = vmatprep.subr.bf16.mxu1 %v8701_v35 }
 0x740   :  { %5223 = vmatpush1.bf16.msra.mxu1 %v8699_v38 }
 0x741   :  { %5224 = vmatprep.subr.bf16.mxu1 %v8704_v39 }
 0x744   :  { %5225 = vmatpush1.bf16.msra.mxu1 %v8702_v42 }
 0x745   :  { %5226 = vmatprep.subr.bf16.mxu1 %v8707_v43 }
 0x748   :  { %5227 = vmatpush1.bf16.msra.mxu1 %v8705_v44 }
 0x749   :  { %5228 = vmatprep.subr.bf16.mxu1 %v8710_v46 }
 0x74c   :  { %5229 = vmatpush1.bf16.msra.mxu1 %v8708_v45 }
 0x74d   :  { %5230 = vmatprep.subr.bf16.mxu1 %v8713_v47 }
 0x750   :  { %5231 = vmatpush1.bf16.msra.mxu1 %v8711_v48 }
 0x751   :  { %5232 = vmatprep.subr.bf16.mxu1 %v8716_v52 }
 0x754   :  { %5233 = vmatpush1.bf16.msra.mxu1 %v8714_v50 }
 0x755   :  { %5234 = vmatprep.subr.bf16.mxu1 %v8719_v54 }
 0x758   :  { %5235 = vmatpush1.bf16.msra.mxu1 %v8717_v55 }
 0x759   :  { %5236 = vmatprep.subr.bf16.mxu1 %v8722_v61 }
 0x75c   :  { %5237 = vmatpush1.bf16.msra.mxu1 %v8720_v37 }
 0x75d   :  { %5238 = vmatprep.subr.bf16.mxu1 %v8725_v56 }
 0x760   :  { %5239 = vmatpush1.bf16.msra.mxu1 %v8723_v41 }
 0x761   :  { %5240 = vmatprep.subr.bf16.mxu1 %v8728_v57 }
 0x764   :  { %5241 = vmatpush1.bf16.msra.mxu1 %v8726_v58 }
 0x765   :  { %5453 = vmatprep.subr.bf16.mxu1 %v8731_v62 }
 0x7fa   :  { %v4860_v60 = vpop.f32.mrb[28].mxu1 }
 0x7fb   :  { %v11004_v49 = vadd.f32 %v4860_v60, %v4659_v1  ;;  %v4862_v40 = vpop.f32.mrb[29].mxu1 }
 0x7fc   :  { %v11006_v63 = vadd.f32 %v4862_v40, %v4663_v12  ;;  %v4864_v8 = vpop.f32.mrb[30].mxu1 }
 0x7fd   :  { %4887 = vst [vmem:[#allocation2 + $0x10] sm:$0xff] %v11004_v49  ;;  %v11009_v0 = vadd.f32 %v4864_v8, %v4659_v1  ;;  %v4866_v51 = vpop.f32.mrb[31].mxu1  ;;  %v4955_v23 = vpack.c.bf16 %v11004_v49, %v4951_v22  ;;  %v4913_v30 = vpack.c.bf16 %v11004_v49, %v4901_v25 }
 0x7fe   :  { %4888 = vst [vmem:[#allocation2 + $0x18] sm:$0xff] %v11006_v63  ;;  %v11012_v53 = vadd.f32 %v4866_v51, %v4663_v12  ;;  %v4956_v27 = vpack.c.bf16 %v11006_v63, %v4952_v10  ;;  %v4914_v29 = vpack.c.bf16 %v11006_v63, %v4902_v59 }
 0x7ff   :  { %v5516_v17 = vpack.c.bf16 %v11009_v0, %v11004_v49  ;;  %v4993_v24 = vshrl.u32 %v4955_v23, 16  ;;  %v4996_v31 = vshll.u32 %v4955_v23, 16  ;;  %v5277_v42 = vrot.slane %v4913_v30, 3  ;;  %v8831_v49 = vld [vmem:[%s11572_s13 + $0x320] ss:$8 sps:$4 sm:$0xff]  }
 0x800   :  { %v5517_v18 = vpack.c.bf16 %v11012_v53, %v11006_v63  ;;  %v5010_v26 = vshrl.u32 %v4956_v27, 16  ;;  %v5013_v33 = vshll.u32 %v4956_v27, 16  ;;  %v5280_v39 = vrot.slane %v4914_v29, 3  ;;  %v8800_v63 = vld [vmem:[%s11572_s13 + $0x274] ss:$8 sps:$4 sm:$0xff]  }
 0x801   :  { %v4995_v45 = vrot.slane %v4993_v24, 3  ;;  %v4998_v46 = vrot.slane %v4996_v31, 4 }
 0x802   :  { %v4870_v19 = vpop.f32.mrb[32].mxu1  ;;  %v5012_v48 = vrot.slane %v5010_v26, 3  ;;  %v5015_v55 = vrot.slane %v5013_v33, 4 }
 0x803   :  { %v4871_v2 = vadd.f32 %v4870_v19, %v4659_v1  ;;  %v4872_v21 = vpop.f32.mrb[33].mxu1 }
 0x804   :  { %v4873_v11 = vadd.f32 %v4872_v21, %v4663_v12  ;;  %v4874_v20 = vpop.f32.mrb[34].mxu1  ;;  %v5016_v40 = vor.u32 %v5015_v55, %v5012_v48  ;;  %v8744_v48 = vld [vmem:[%s11572_s13 + $0x50] ss:$8 sps:$4 sm:$0xff]  }
 0x805   :  { %4891 = vst [vmem:[#allocation2 + $0x30] sm:$0xff] %v4871_v2  ;;  %v11018_v14 = vadd.f32 %v4874_v20, %v4659_v1  ;;  %v4876_v3 = vpop.f32.mrb[35].mxu1  ;;  %v8729_v2 = vld [vmem:[%s11572_s13] ss:$8 sps:$4 sm:$0xff]   ;;  %v8750_v55 = vld [vmem:[%s11572_s13 + $0x70] ss:$8 sps:$4 sm:$0xff]  }
 0x806   :  { %4897 = vst [vmem:[#allocation2 + $0x30] sm:$0xf] %v8938_v13  ;;  %4892 = vst [vmem:[#allocation2 + $0x38] sm:$0xff] %v4873_v11  ;;  %v11020_v7 = vadd.f32 %v4876_v3, %v4663_v12 }
 0x807   :  { %4898 = vst [vmem:[#allocation2 + $0x38] sm:$0xf] %v8938_v13 }
 0x80a   :  { %v4880_v28 = vpop.f32.mrb[36].mxu1 }
 0x80b   :  { %v4881_v5 = vadd.f32 %v4880_v28, %v4659_v1  ;;  %v4882_v16 = vpop.f32.mrb[37].mxu1 }
 0x80c   :  { %v4883_v9 = vadd.f32 %v4882_v16, %v4663_v12  ;;  %v4884_v15 = vpop.f32.mrb[38].mxu1  ;;  %v4999_v12 = vor.u32 %v4998_v46, %v4995_v45  ;;  %v8741_v45 = vld [vmem:[%s11572_s13 + $0x40] ss:$8 sps:$4 sm:$0xff]   ;;  %v8746_v46 = vld [vmem:[%s11572_s13 + $0x54] ss:$8 sps:$4 sm:$0xff]  }
 0x80d   :  { %4895 = vst [vmem:[#allocation2 + $0x50] sm:$0xff] %v4881_v5  ;;  %v4885_v32 = vpop.f32.mrb[39].mxu1  ;;  %v4907_v34 = vld [vmem:[#allocation2 + $0x30] sm:$0xff]  ;;  %v8737_v15 = vld [vmem:[%s11572_s13 + $0x24] ss:$8 sps:$4 sm:$0xff]  }
 0x80e   :  { %4899 = vst [vmem:[#allocation2 + $0x50] sm:$0xf0] %v8938_v13  ;;  %4896 = vst [vmem:[#allocation2 + $0x58] sm:$0xff] %v4883_v9  ;;  %v4908_v35 = vld [vmem:[#allocation2 + $0x38] sm:$0xff]  ;;  %v4915_v38 = vpack.c.bf16 %v4907_v34, %v11009_v0  ;;  %v11028_v43 = vpack.c.bf16 %v11018_v14, %v4907_v34  ;;  %v8735_v34 = vld [vmem:[%s11572_s13 + $0x20] ss:$8 sps:$4 sm:$0xff]  }
 0x80f   :  { %4900 = vst [vmem:[#allocation2 + $0x58] sm:$0xf0] %v8938_v13  ;;  %v4916_v44 = vpack.c.bf16 %v4908_v35, %v11012_v53  ;;  %v11032_v47 = vpack.c.bf16 %v11020_v7, %v4908_v35  ;;  %v8734_v13 = vld [vmem:[%s11572_s13 + $0x14] ss:$8 sps:$4 sm:$0xff]  }
 0x810   :  { %v5001_v50 = vshrl.u32 %v4915_v38, 16  ;;  %v5004_v52 = vshll.u32 %v4915_v38, 16  ;;  %v5278_v54 = vrot.slane %v4915_v38, 3 }
 0x811   :  { %v5018_v37 = vshrl.u32 %v4916_v44, 16  ;;  %v5021_v61 = vshll.u32 %v4916_v44, 16  ;;  %v5281_v56 = vrot.slane %v4916_v44, 3  ;;  %v8743_v44 = vld [vmem:[%s11572_s13 + $0x44] ss:$8 sps:$4 sm:$0xff]  }
 0x812   :  { %v5003_v41 = vrot.slane %v5001_v50, 3  ;;  %v5006_v57 = vrot.slane %v5004_v52, 4  ;;  %v11035_v58 = vsel %vm1614_vm0, %v5277_v42, %v5278_v54  ;;  %v8738_v42 = vld [vmem:[%s11572_s13 + $0x30] ss:$8 sps:$4 sm:$0xff]   ;;  %v8749_v50 = vld [vmem:[%s11572_s13 + $0x64] ss:$8 sps:$4 sm:$0xff]  }
 0x813   :  { %v5020_v62 = vrot.slane %v5018_v37, 3  ;;  %v5023_v36 = vrot.slane %v5021_v61, 4  ;;  %v5282_v1 = vsel %vm1614_vm0, %v5280_v39, %v5281_v56  ;;  %v8740_v39 = vld [vmem:[%s11572_s13 + $0x34] ss:$8 sps:$4 sm:$0xff]   ;;  %v8747_v52 = vld [vmem:[%s11572_s13 + $0x60] ss:$8 sps:$4 sm:$0xff]  }
 0x814   :  { %v5007_v60 = vor.u32 %v5006_v57, %v5003_v41  ;;  %v8755_v37 = vld [vmem:[%s11572_s13 + $0x84] ss:$8 sps:$4 sm:$0xff]   ;;  %v8753_v61 = vld [vmem:[%s11572_s13 + $0x80] ss:$8 sps:$4 sm:$0xff]   ;;  %v8756_v41 = vld [vmem:[%s11572_s13 + $0x90] ss:$8 sps:$4 sm:$0xff]  }
 0x815   :  { %v5024_v8 = vor.u32 %v5023_v36, %v5020_v62  ;;  %v4953_v51 = vld [vmem:[#allocation2 + $0x50] sm:$0x7f]  ;;  %v8761_v57 = vld [vmem:[%s11572_s13 + $0xa4] ss:$8 sps:$4 sm:$0xff]   ;;  %v8759_v62 = vld [vmem:[%s11572_s13 + $0xa0] ss:$8 sps:$4 sm:$0xff]  }
 0x816   :  { %v4911_v19 = vld [vmem:[#allocation2 + $0x50] sm:$0x3f]  ;;  %v5008_v21 = vsel %vm1328_vm1, %v4999_v12, %v5007_v60  ;;  %v4954_v11 = vld [vmem:[#allocation2 + $0x58] sm:$0x7f]  ;;  %v4957_v20 = vpack.c.bf16 %v4953_v51, %v11018_v14  ;;  %v8767_v12 = vld [vmem:[%s11572_s13 + $0xc4] ss:$8 sps:$4 sm:$0xff]  }
 0x817   :  { %v4912_v22 = vld [vmem:[#allocation2 + $0x58] sm:$0x3f]  ;;  %v4917_v3 = vpack.c.bf16 %v4911_v19, %v11018_v14  ;;  %v5025_v10 = vsel %vm1328_vm1, %v5016_v40, %v5024_v8  ;;  %v4958_v23 = vpack.c.bf16 %v4954_v11, %v11020_v7  ;;  %v8773_v51 = vld [vmem:[%s11572_s13 + $0xe4] ss:$8 sps:$4 sm:$0xff]   ;;  %v8771_v19 = vld [vmem:[%s11572_s13 + $0xe0] ss:$8 sps:$4 sm:$0xff]  }
 0x818   :  { %v4918_v59 = vpack.c.bf16 %v4912_v22, %v11020_v7  ;;  %5242 = vmatprep.mubr.bf16.mxu1 %v5025_v10  ;;  %v5027_v25 = vshrl.u32 %v4957_v20, 16  ;;  %v5030_v27 = vshll.u32 %v4957_v20, 16  ;;  %v8732_v14 = vld [vmem:[%s11572_s13 + $0x10] ss:$8 sps:$4 sm:$0xff]   ;;  %v8764_v36 = vld [vmem:[%s11572_s13 + $0xb4] ss:$8 sps:$4 sm:$0xff]  }
 0x819   :  { %v11050_v28 = vrot.slane %v4917_v3, 3  ;;  %5243 = vmatmul.mubr.bf16.vlgmr.msra.gmra.mrb[40].mxu1 %v5008_v21  ;;  %v5036_v29 = vshrl.u32 %v4958_v23, 16  ;;  %v5039_v30 = vshll.u32 %v4958_v23, 16  ;;  %v8770_v40 = vld [vmem:[%s11572_s13 + $0xd4] ss:$8 sps:$4 sm:$0xff]  }
 0x81a   :  { %v11052_v5 = vrot.slane %v4918_v59, 3  ;;  %5454 = vmatpush1.bf16.msra.mxu1 %v8729_v2  ;;  %v5029_v16 = vrot.slane %v5027_v25, 3  ;;  %v5032_v24 = vrot.slane %v5030_v27, 4  ;;  %v8776_v2 = vld [vmem:[%s11572_s13 + $0xf4] ss:$8 sps:$4 sm:$0xff]  }
 0x81b   :  { %v11059_v7 = vsel %vm1614_vm0, %v5278_v54, %v11050_v28  ;;  %5455 = vmatprep.subr.bf16.mxu1 %v8734_v13  ;;  %v5038_v31 = vrot.slane %v5036_v29, 3  ;;  %v5041_v9 = vrot.slane %v5039_v30, 4  ;;  %v8752_v54 = vld [vmem:[%s11572_s13 + $0x74] ss:$8 sps:$4 sm:$0xff]   ;;  %v8774_v21 = vld [vmem:[%s11572_s13 + $0xf0] ss:$8 sps:$4 sm:$0xff]  }
 0x81c   :  { %v11066_v26 = vsel %vm1614_vm0, %v5281_v56, %v11052_v5  ;;  %v5033_v32 = vor.u32 %v5032_v24, %v5029_v16  ;;  %v8758_v56 = vld [vmem:[%s11572_s13 + $0x94] ss:$8 sps:$4 sm:$0xff]   ;;  %v8779_v11 = vld [vmem:[%s11572_s13 + $0x204] ss:$8 sps:$4 sm:$0xff]   ;;  %v8777_v20 = vld [vmem:[%s11572_s13 + $0x200] ss:$8 sps:$4 sm:$0xff]  }
 0x81d   :  { %v5042_v33 = vor.u32 %v5041_v9, %v5038_v31  ;;  %v8782_v22 = vld [vmem:[%s11572_s13 + $0x214] ss:$8 sps:$4 sm:$0xff]   ;;  %v8780_v3 = vld [vmem:[%s11572_s13 + $0x210] ss:$8 sps:$4 sm:$0xff]   ;;  %v8785_v10 = vld [vmem:[%s11572_s13 + $0x224] ss:$8 sps:$4 sm:$0xff]  }
 0x81e   :  { %5456 = vmatpush1.bf16.msra.mxu1 %v8732_v14  ;;  %v5034_v35 = vsel %vm1328_vm1, %v5007_v60, %v5033_v32  ;;  %v8765_v60 = vld [vmem:[%s11572_s13 + $0xc0] ss:$8 sps:$4 sm:$0xff]   ;;  %v8786_v23 = vld [vmem:[%s11572_s13 + $0x230] ss:$8 sps:$4 sm:$0xff]   ;;  %v8791_v59 = vld [vmem:[%s11572_s13 + $0x244] ss:$8 sps:$4 sm:$0xff]  }
 0x81f   :  { %v5043_v38 = vsel %vm1328_vm1, %v5024_v8, %v5042_v33  ;;  %5457 = vmatprep.subr.bf16.mxu1 %v8737_v15  ;;  %v8768_v8 = vld [vmem:[%s11572_s13 + $0xd0] ss:$8 sps:$4 sm:$0xff]   ;;  %v8783_v13 = vld [vmem:[%s11572_s13 + $0x220] ss:$8 sps:$4 sm:$0xff]   ;;  %v8794_v27 = vld [vmem:[%s11572_s13 + $0x254] ss:$8 sps:$4 sm:$0xff]  }
 0x820   :  { %5252 = vmatprep.mubr.bf16.mxu1 %v5043_v38  ;;  %v8789_v25 = vld [vmem:[%s11572_s13 + $0x240] ss:$8 sps:$4 sm:$0xff]   ;;  %v8792_v29 = vld [vmem:[%s11572_s13 + $0x250] ss:$8 sps:$4 sm:$0xff]   ;;  %v8797_v30 = vld [vmem:[%s11572_s13 + $0x264] ss:$8 sps:$4 sm:$0xff]  }
 0x821   :  { %5253 = vmatmul.mubr.bf16.gmra.mrb[44].mxu1 %v5034_v35  ;;  %v8801_v14 = vld [vmem:[%s11572_s13 + $0x280] ss:$8 sps:$4 sm:$0xff]   ;;  %v8806_v16 = vld [vmem:[%s11572_s13 + $0x294] ss:$8 sps:$4 sm:$0xff]   ;;  %v8804_v24 = vld [vmem:[%s11572_s13 + $0x290] ss:$8 sps:$4 sm:$0xff]  }
 0x822   :  { %5458 = vmatpush1.bf16.msra.mxu1 %v8735_v34  ;;  %5262 = vmatprep.mubr.bf16.mxu1 %v5042_v33  ;;  %v8807_v31 = vld [vmem:[%s11572_s13 + $0x2a0] ss:$8 sps:$4 sm:$0xff]   ;;  %v8812_v9 = vld [vmem:[%s11572_s13 + $0x2b4] ss:$8 sps:$4 sm:$0xff]   ;;  %v8810_v15 = vld [vmem:[%s11572_s13 + $0x2b0] ss:$8 sps:$4 sm:$0xff]  }
 0x823   :  { %5459 = vmatprep.subr.bf16.mxu1 %v8740_v39  ;;  %v8818_v33 = vld [vmem:[%s11572_s13 + $0x2d4] ss:$8 sps:$4 sm:$0xff]   ;;  %v8816_v34 = vld [vmem:[%s11572_s13 + $0x2d0] ss:$8 sps:$4 sm:$0xff]   ;;  %v8821_v35 = vld [vmem:[%s11572_s13 + $0x2e4] ss:$8 sps:$4 sm:$0xff]  }
 0x824   :  { %v8819_v38 = vld [vmem:[%s11572_s13 + $0x2e0] ss:$8 sps:$4 sm:$0xff]   ;;  %v8824_v39 = vld [vmem:[%s11572_s13 + $0x2f4] ss:$8 sps:$4 sm:$0xff]  }
 0x826   :  { %5460 = vmatpush1.bf16.msra.mxu1 %v8738_v42  ;;  %v8822_v42 = vld [vmem:[%s11572_s13 + $0x2f0] ss:$8 sps:$4 sm:$0xff]  }
 0x827   :  { %5461 = vmatprep.subr.bf16.mxu1 %v8743_v44  ;;  %v8827_v44 = vld [vmem:[%s11572_s13 + $0x304] ss:$8 sps:$4 sm:$0xff]  }
 0x829   :  { %5263 = vmatmul.mubr.bf16.gmra.mrb[48].mxu1 %v5033_v32  ;;  %v8813_v32 = vld [vmem:[%s11572_s13 + $0x2c0] ss:$8 sps:$4 sm:$0xff]  }
 0x82a   :  { %5462 = vmatpush1.bf16.msra.mxu1 %v8741_v45  ;;  %5485 = vmatprep.mubr.bf16.mxu1 %v5282_v1  ;;  %v8762_v1 = vld [vmem:[%s11572_s13 + $0xb0] ss:$8 sps:$4 sm:$0xff]   ;;  %v8825_v45 = vld [vmem:[%s11572_s13 + $0x300] ss:$8 sps:$4 sm:$0xff]  }
 0x82b   :  { %5463 = vmatprep.subr.bf16.mxu1 %v8746_v46  ;;  %v8830_v46 = vld [vmem:[%s11572_s13 + $0x314] ss:$8 sps:$4 sm:$0xff]  }
 0x82e   :  { %5464 = vmatpush1.bf16.msra.mxu1 %v8744_v48  ;;  %v5787_v48 = vld [vmem:[#allocation2 + $0x18] sm:$0xfe] }
 0x82f   :  { %5465 = vmatprep.subr.bf16.mxu1 %v8749_v50  ;;  %v8828_v50 = vld [vmem:[%s11572_s13 + $0x310] ss:$8 sps:$4 sm:$0xff]  }
 0x832   :  { %5466 = vmatpush1.bf16.msra.mxu1 %v8747_v52  ;;  %v8833_v52 = vld [vmem:[%s11572_s13 + $0x324] ss:$8 sps:$4 sm:$0xff]  }
 0x833   :  { %5467 = vmatprep.subr.bf16.mxu1 %v8752_v54  ;;  %v5799_v54 = vpack.c.bf16 %v11012_v53, %v5787_v48  ;;  %v8873_v48 = vld [vmem:[%s11572_s13 + $0x400] ss:$8 sps:$4 sm:$0xff]  }
 0x836   :  { %5468 = vmatpush1.bf16.msra.mxu1 %v8750_v55  ;;  %v11275_v55 = vld [vmem:[#allocation2 + $0x58] sm:$0xff] }
 0x837   :  { %5469 = vmatprep.subr.bf16.mxu1 %v8755_v37  ;;  %v5852_v37 = vshll.u32 %v5799_v54, 16 }
 0x83a   :  { %5470 = vmatpush1.bf16.msra.mxu1 %v8753_v61  ;;  %v5521_v61 = vpack.c.bf16 %v11275_v55, %v11275_v55 }
 0x83b   :  { %5471 = vmatprep.subr.bf16.mxu1 %v8758_v56  ;;  %v5857_v56 = vshll.u32 %v11032_v47, 16 }
 0x83e   :  { %5472 = vmatpush1.bf16.msra.mxu1 %v8756_v41  ;;  %v8834_v41 = vld [vmem:[%s11572_s13 + $0x330] ss:$8 sps:$4 sm:$0xff]  }
 0x83f   :  { %5473 = vmatprep.subr.bf16.mxu1 %v8761_v57  ;;  %v8839_v57 = vld [vmem:[%s11572_s13 + $0x344] ss:$8 sps:$4 sm:$0xff]  }
 0x842   :  { %5474 = vmatpush1.bf16.msra.mxu1 %v8759_v62  ;;  %v5854_v62 = vrot.slane %v5852_v37, 1  ;;  %v8876_v37 = vld [vmem:[%s11572_s13 + $0x410] ss:$8 sps:$4 sm:$0xff]  }
 0x843   :  { %5475 = vmatprep.subr.bf16.mxu1 %v8764_v36  ;;  %v11293_v36 = vld [vmem:[#allocation2 + $0x50] sm:$0xff] }
 0x846   :  { %5476 = vmatpush1.bf16.msra.mxu1 %v8762_v1  ;;  %v5850_v1 = vshrl.u32 %v5799_v54, 16 }
 0x847   :  { %5477 = vmatprep.subr.bf16.mxu1 %v8767_v12  ;;  %v11295_v12 = vrot.slane %v5857_v56, 1  ;;  %v5861_v56 = vshrl.u32 %v11028_v43, 16 }
 0x84a   :  { %5478 = vmatpush1.bf16.msra.mxu1 %v8765_v60  ;;  %v8837_v60 = vld [vmem:[%s11572_s13 + $0x340] ss:$8 sps:$4 sm:$0xff]  }
 0x84b   :  { %5479 = vmatprep.subr.bf16.mxu1 %v8770_v40  ;;  %v5520_v40 = vpack.c.bf16 %v11293_v36, %v11293_v36 }
 0x84e   :  { %5480 = vmatpush1.bf16.msra.mxu1 %v8768_v8  ;;  %v5855_v8 = vor.u32 %v5854_v62, %v5850_v1  ;;  %v8879_v62 = vld [vmem:[%s11572_s13 + $0x420] ss:$8 sps:$4 sm:$0xff]  }
 0x84f   :  { %5481 = vmatprep.subr.bf16.mxu1 %v8773_v51  ;;  %v8842_v51 = vld [vmem:[%s11572_s13 + $0x354] ss:$8 sps:$4 sm:$0xff]  }
 0x852   :  { %5482 = vmatpush1.bf16.msra.mxu1 %v8771_v19  ;;  %v5860_v19 = vsel %vm2175_vm2, %v5855_v8, %v11295_v12  ;;  %v6121_v8 = vld [vmem:[#allocation2 + $0x18] sm:$0xfc] }
 0x853   :  { %5483 = vmatprep.subr.bf16.mxu1 %v8776_v2  ;;  %v8840_v2 = vld [vmem:[%s11572_s13 + $0x350] ss:$8 sps:$4 sm:$0xff]  }
 0x856   :  { %5484 = vmatpush1.bf16.msra.mxu1 %v8774_v21  ;;  %v8845_v21 = vld [vmem:[%s11572_s13 + $0x364] ss:$8 sps:$4 sm:$0xff]  }
 0x857   :  { %5715 = vmatprep.subr.bf16.mxu1 %v8779_v11  ;;  %v8843_v11 = vld [vmem:[%s11572_s13 + $0x360] ss:$8 sps:$4 sm:$0xff]  }
 0x859   :  { %5486 = vmatmul.mubr.bf16.vlgmr.msra.gmra.mrb[40].mxu1 %v11035_v58  ;;  %v8788_v58 = vld [vmem:[%s11572_s13 + $0x234] ss:$8 sps:$4 sm:$0xff]  }
 0x85a   :  { %5495 = vmatprep.mubr.bf16.mxu1 %v11066_v26  ;;  %5716 = vmatpush1.bf16.msra.mxu1 %v8777_v20  ;;  %v8815_v26 = vld [vmem:[%s11572_s13 + $0x2c4] ss:$8 sps:$4 sm:$0xff]   ;;  %v8848_v20 = vld [vmem:[%s11572_s13 + $0x374] ss:$8 sps:$4 sm:$0xff]  }
 0x85b   :  { %5717 = vmatprep.subr.bf16.mxu1 %v8782_v22  ;;  %v8846_v22 = vld [vmem:[%s11572_s13 + $0x370] ss:$8 sps:$4 sm:$0xff]  }
 0x85e   :  { %5718 = vmatpush1.bf16.msra.mxu1 %v8780_v3  ;;  %v8851_v3 = vld [vmem:[%s11572_s13 + $0x384] ss:$8 sps:$4 sm:$0xff]  }
 0x85f   :  { %5719 = vmatprep.subr.bf16.mxu1 %v8785_v10  ;;  %v8849_v10 = vld [vmem:[%s11572_s13 + $0x380] ss:$8 sps:$4 sm:$0xff]  }
 0x861   :  { %5496 = vmatmul.mubr.bf16.gmra.mrb[44].mxu1 %v11059_v7  ;;  %v8809_v7 = vld [vmem:[%s11572_s13 + $0x2a4] ss:$8 sps:$4 sm:$0xff]  }
 0x862   :  { %5505 = vmatprep.mubr.bf16.mxu1 %v11052_v5  ;;  %5720 = vmatpush1.bf16.msra.mxu1 %v8783_v13  ;;  %v8795_v5 = vld [vmem:[%s11572_s13 + $0x260] ss:$8 sps:$4 sm:$0xff]   ;;  %v8854_v13 = vld [vmem:[%s11572_s13 + $0x394] ss:$8 sps:$4 sm:$0xff]  }
 0x863   :  { %5721 = vmatprep.subr.bf16.mxu1 %v8788_v58  ;;  %v8852_v58 = vld [vmem:[%s11572_s13 + $0x390] ss:$8 sps:$4 sm:$0xff]  }
 0x866   :  { %5722 = vmatpush1.bf16.msra.mxu1 %v8786_v23  ;;  %v8857_v23 = vld [vmem:[%s11572_s13 + $0x3a4] ss:$8 sps:$4 sm:$0xff]  }
 0x867   :  { %5723 = vmatprep.subr.bf16.mxu1 %v8791_v59  ;;  %v8855_v59 = vld [vmem:[%s11572_s13 + $0x3a0] ss:$8 sps:$4 sm:$0xff]  }
 0x869   :  { %5506 = vmatmul.mubr.bf16.gmra.mrb[52].mxu1 %v11050_v28  ;;  %v8803_v28 = vld [vmem:[%s11572_s13 + $0x284] ss:$8 sps:$4 sm:$0xff]  }
 0x86a   :  { %5724 = vmatpush1.bf16.msra.mxu1 %v8789_v25  ;;  %5747 = vmatprep.mubr.bf16.mxu1 %v5517_v18  ;;  %v8798_v18 = vld [vmem:[%s11572_s13 + $0x270] ss:$8 sps:$4 sm:$0xff]   ;;  %v8860_v25 = vld [vmem:[%s11572_s13 + $0x3b4] ss:$8 sps:$4 sm:$0xff]  }
 0x86b   :  { %5725 = vmatprep.subr.bf16.mxu1 %v8794_v27  ;;  %v8858_v27 = vld [vmem:[%s11572_s13 + $0x3b0] ss:$8 sps:$4 sm:$0xff]  }
 0x86e   :  { %5726 = vmatpush1.bf16.msra.mxu1 %v8792_v29  ;;  %v8863_v29 = vld [vmem:[%s11572_s13 + $0x3c4] ss:$8 sps:$4 sm:$0xff]  }
 0x86f   :  { %5727 = vmatprep.subr.bf16.mxu1 %v8797_v30  ;;  %v8861_v30 = vld [vmem:[%s11572_s13 + $0x3c0] ss:$8 sps:$4 sm:$0xff]  }
 0x872   :  { %5728 = vmatpush1.bf16.msra.mxu1 %v8795_v5  ;;  %v8866_v5 = vld [vmem:[%s11572_s13 + $0x3d4] ss:$8 sps:$4 sm:$0xff]  }
 0x873   :  { %5729 = vmatprep.subr.bf16.mxu1 %v8800_v63  ;;  %v5786_v63 = vld [vmem:[#allocation2 + $0x10] sm:$0xfe] }
 0x876   :  { %5730 = vmatpush1.bf16.msra.mxu1 %v8798_v18  ;;  %v8864_v18 = vld [vmem:[%s11572_s13 + $0x3d0] ss:$8 sps:$4 sm:$0xff]  }
 0x877   :  { %5731 = vmatprep.subr.bf16.mxu1 %v8803_v28  ;;  %v5798_v28 = vpack.c.bf16 %v11009_v0, %v5786_v63  ;;  %v8905_v63 = vld [vmem:[%s11572_s13 + $0x4a4] ss:$8 sps:$4 sm:$0xff]  }
 0x87a   :  { %5732 = vmatpush1.bf16.msra.mxu1 %v8801_v14  ;;  %v5797_v14 = vld [vmem:[#allocation2 + $0x68] sm:$0x1] }
 0x87b   :  { %5733 = vmatprep.subr.bf16.mxu1 %v8806_v16  ;;  %v8869_v16 = vld [vmem:[%s11572_s13 + $0x3e4] ss:$8 sps:$4 sm:$0xff]  }
 0x87e   :  { %5734 = vmatpush1.bf16.msra.mxu1 %v8804_v24  ;;  %v5803_v24 = vpack.c.bf16 %v5797_v14, %v11275_v55 }
 0x87f   :  { %5735 = vmatprep.subr.bf16.mxu1 %v8809_v7  ;;  %v8867_v7 = vld [vmem:[%s11572_s13 + $0x3e0] ss:$8 sps:$4 sm:$0xff]  }
 0x880   :  { %v5880_v1 = vshrl.u32 %v5803_v24, 16 }
 0x882   :  { %5736 = vmatpush1.bf16.msra.mxu1 %v8807_v31  ;;  %v5840_v31 = vshll.u32 %v5798_v28, 16 }
 0x883   :  { %5737 = vmatprep.subr.bf16.mxu1 %v8812_v9  ;;  %v8872_v9 = vld [vmem:[%s11572_s13 + $0x3f4] ss:$8 sps:$4 sm:$0xff]  }
 0x886   :  { %5738 = vmatpush1.bf16.msra.mxu1 %v8810_v15  ;;  %v5845_v15 = vshll.u32 %v11028_v43, 16 }
 0x887   :  { %5739 = vmatprep.subr.bf16.mxu1 %v8815_v26  ;;  %v5873_v26 = vshll.u32 %v5803_v24, 16 }
 0x88a   :  { %5740 = vmatpush1.bf16.msra.mxu1 %v8813_v32  ;;  %v5796_v32 = vld [vmem:[#allocation2 + $0x60] sm:$0x1] }
 0x88b   :  { %5741 = vmatprep.subr.bf16.mxu1 %v8818_v33  ;;  %v8870_v33 = vld [vmem:[%s11572_s13 + $0x3f0] ss:$8 sps:$4 sm:$0xff]  }
 0x88e   :  { %5742 = vmatpush1.bf16.msra.mxu1 %v8816_v34  ;;  %v5842_v34 = vrot.slane %v5840_v31, 1  ;;  %v8906_v31 = vld [vmem:[%s11572_s13 + $0x4b0] ss:$8 sps:$4 sm:$0xff]  }
 0x88f   :  { %5743 = vmatprep.subr.bf16.mxu1 %v8821_v35  ;;  %v8875_v35 = vld [vmem:[%s11572_s13 + $0x404] ss:$8 sps:$4 sm:$0xff]  }
 0x892   :  { %5744 = vmatpush1.bf16.msra.mxu1 %v8819_v38  ;;  %v5838_v38 = vshrl.u32 %v5798_v28, 16 }
 0x893   :  { %5745 = vmatprep.subr.bf16.mxu1 %v8824_v39  ;;  %v5847_v39 = vrot.slane %v5845_v15, 1  ;;  %v8909_v15 = vld [vmem:[%s11572_s13 + $0x4c0] ss:$8 sps:$4 sm:$0xff]  }
 0x896   :  { %5746 = vmatpush1.bf16.msra.mxu1 %v8822_v42  ;;  %v5802_v42 = vpack.c.bf16 %v5796_v32, %v11293_v36  ;;  %v8912_v32 = vld [vmem:[%s11572_s13 + $0x4d0] ss:$8 sps:$4 sm:$0xff]  }
 0x897   :  { %6049 = vmatprep.subr.bf16.mxu1 %v8827_v44  ;;  %v5869_v44 = vshrl.u32 %v11032_v47, 16 }
 0x899   :  { %5748 = vmatmul.mubr.bf16.vlgmr.msra.gmra.mrb[40].mxu1 %v5516_v17  ;;  %v8836_v17 = vld [vmem:[%s11572_s13 + $0x334] ss:$8 sps:$4 sm:$0xff]  }
 0x89a   :  { %5757 = vmatprep.mubr.bf16.mxu1 %v11032_v47  ;;  %6050 = vmatpush1.bf16.msra.mxu1 %v8825_v45  ;;  %v5875_v45 = vrot.slane %v5873_v26, 1  ;;  %v8914_v26 = vld [vmem:[%s11572_s13 + $0x4d4] ss:$8 sps:$4 sm:$0xff]  }
 0x89b   :  { %6051 = vmatprep.subr.bf16.mxu1 %v8830_v46  ;;  %v5843_v46 = vor.u32 %v5842_v34, %v5838_v38  ;;  %v8915_v34 = vld [vmem:[%s11572_s13 + $0x4e0] ss:$8 sps:$4 sm:$0xff]   ;;  %v8920_v38 = vld [vmem:[%s11572_s13 + $0x4f4] ss:$8 sps:$4 sm:$0xff]  }
 0x89d   :  { %v5848_v54 = vsel %vm2175_vm2, %v5843_v46, %v5847_v39  ;;  %v6168_v46 = vrot.slane %v11028_v43, 1 }
 0x89e   :  { %6052 = vmatpush1.bf16.msra.mxu1 %v8828_v50  ;;  %v5871_v50 = vor.u32 %v5869_v44, %v11295_v12  ;;  %v8884_v12 = vld [vmem:[%s11572_s13 + $0x434] ss:$8 sps:$4 sm:$0xff]   ;;  %v8918_v44 = vld [vmem:[%s11572_s13 + $0x4f0] ss:$8 sps:$4 sm:$0xff]  }
 0x89f   :  { %6053 = vmatprep.subr.bf16.mxu1 %v8833_v52  ;;  %v8878_v52 = vld [vmem:[%s11572_s13 + $0x414] ss:$8 sps:$4 sm:$0xff]  }
 0x8a1   :  { %5758 = vmatmul.mubr.bf16.gmra.mrb[44].mxu1 %v11028_v43 }
 0x8a2   :  { %5767 = vmatprep.mubr.bf16.mxu1 %v5521_v61  ;;  %6054 = vmatpush1.bf16.msra.mxu1 %v8831_v49  ;;  %v5865_v49 = vshll.u32 %v5802_v42, 16  ;;  %v8881_v61 = vld [vmem:[%s11572_s13 + $0x424] ss:$8 sps:$4 sm:$0xff]  }
 0x8a3   :  { %6055 = vmatprep.subr.bf16.mxu1 %v8836_v17  ;;  %v5876_v17 = vsel %vm2175_vm2, %v5871_v50, %v5875_v45  ;;  %v6122_v50 = vld [vmem:[#allocation2 + $0x60] sm:$0x3] }
 0x8a6   :  { %6056 = vmatpush1.bf16.msra.mxu1 %v8834_v41  ;;  %v5867_v41 = vrot.slane %v5865_v49, 1  ;;  %v6126_v49 = vpack.c.bf16 %v6122_v50, %v11293_v36  ;;  %v8921_v36 = vld [vmem:[%s11575_s15 + $0x40] sm:$0xff]  }
 0x8a7   :  { %6057 = vmatprep.subr.bf16.mxu1 %v8839_v57  ;;  %v5863_v57 = vor.u32 %v5861_v56, %v5847_v39  ;;  %v6120_v39 = vld [vmem:[#allocation2 + $0x10] sm:$0xfc]  ;;  %7773 = vmatprep.subr.bf16.mxu0 %v8921_v36 }
 0x8a9   :  { %5768 = vmatmul.mubr.bf16.gmra.mrb[56].mxu1 %v5520_v40  ;;  %v5882_v40 = vor.u32 %v5880_v1, %v5875_v45  ;;  %v6124_v45 = vpack.c.bf16 %v11009_v0, %v6120_v39  ;;  %v8924_v1 = vld [vmem:[%s11575_s15 + $0x8] sm:$0xff]  }
 0x8aa   :  { %6058 = vmatpush1.bf16.msra.mxu1 %v8837_v60  ;;  %6081 = vmatprep.mubr.bf16.mxu1 %v5860_v19  ;;  %v5868_v60 = vsel %vm2175_vm2, %v5863_v57, %v5867_v41  ;;  %v8887_v19 = vld [vmem:[%s11572_s13 + $0x444] ss:$8 sps:$4 sm:$0xff]  }
 0x8ab   :  { %6059 = vmatprep.subr.bf16.mxu1 %v8842_v51  ;;  %v8882_v51 = vld [vmem:[%s11572_s13 + $0x430] ss:$8 sps:$4 sm:$0xff]  }
 0x8ae   :  { %6060 = vmatpush1.bf16.msra.mxu1 %v8840_v2  ;;  %v6125_v2 = vpack.c.bf16 %v11012_v53, %v6121_v8  ;;  %v8928_v8 = vld [vmem:[%s11575_s15 + $0x18] sm:$0xff]  }
 0x8af   :  { %6061 = vmatprep.subr.bf16.mxu1 %v8845_v21  ;;  %v5877_v21 = vshrl.u32 %v5802_v42, 16 }
 0x8b2   :  { %6062 = vmatpush1.bf16.msra.mxu1 %v8843_v11  ;;  %v6171_v11 = vrot.slane %v11032_v47, 1  ;;  %v8922_v47 = vld [vmem:[%s11575_s15] sm:$0xff]  }
 0x8b3   :  { %6063 = vmatprep.subr.bf16.mxu1 %v8848_v20  ;;  %v8885_v20 = vld [vmem:[%s11572_s13 + $0x440] ss:$8 sps:$4 sm:$0xff]   ;;  %7774 = vmatpush3.bf16.msra.mxu0 %v8922_v47 }
 0x8b6   :  { %6064 = vmatpush1.bf16.msra.mxu1 %v8846_v22  ;;  %v5879_v22 = vor.u32 %v5877_v21, %v5867_v41  ;;  %v8932_v21 = vld [vmem:[%s11575_s15 + $0x28] sm:$0xff]  }
 0x8b7   :  { %6065 = vmatprep.subr.bf16.mxu1 %v8851_v3  ;;  %v6170_v3 = vrot.slane %v6125_v2, 1  ;;  %v8931_v2 = vld [vmem:[%s11575_s15 + $0x68] sm:$0xff]  }
 0x8b9   :  { %v6172_v53 = vsel %vm2506_vm3, %v6170_v3, %v6171_v11  ;;  %v8936_v3 = vld [vmem:[%s11575_s15 + $0x38] sm:$0xff]  }
 0x8ba   :  { %6066 = vmatpush1.bf16.msra.mxu1 %v8849_v10  ;;  %v8890_v10 = vld [vmem:[%s11572_s13 + $0x454] ss:$8 sps:$4 sm:$0xff]  }
 0x8bb   :  { %6067 = vmatprep.subr.bf16.mxu1 %v8854_v13  ;;  %v8888_v13 = vld [vmem:[%s11572_s13 + $0x450] ss:$8 sps:$4 sm:$0xff]  }
 0x8be   :  { %6068 = vmatpush1.bf16.msra.mxu1 %v8852_v58  ;;  %v8893_v58 = vld [vmem:[%s11572_s13 + $0x464] ss:$8 sps:$4 sm:$0xff]  }
 0x8bf   :  { %6069 = vmatprep.subr.bf16.mxu1 %v8857_v23  ;;  %v8891_v23 = vld [vmem:[%s11572_s13 + $0x460] ss:$8 sps:$4 sm:$0xff]  }
 0x8c2   :  { %6070 = vmatpush1.bf16.msra.mxu1 %v8855_v59  ;;  %v8896_v59 = vld [vmem:[%s11572_s13 + $0x474] ss:$8 sps:$4 sm:$0xff]  }
 0x8c3   :  { %6071 = vmatprep.subr.bf16.mxu1 %v8860_v25  ;;  %v8894_v25 = vld [vmem:[%s11572_s13 + $0x470] ss:$8 sps:$4 sm:$0xff]  }
 0x8c6   :  { %6072 = vmatpush1.bf16.msra.mxu1 %v8858_v27  ;;  %v8899_v27 = vld [vmem:[%s11572_s13 + $0x484] ss:$8 sps:$4 sm:$0xff]  }
 0x8c7   :  { %6073 = vmatprep.subr.bf16.mxu1 %v8863_v29  ;;  %v8897_v29 = vld [vmem:[%s11572_s13 + $0x480] ss:$8 sps:$4 sm:$0xff]  }
 0x8ca   :  { %6074 = vmatpush1.bf16.msra.mxu1 %v8861_v30  ;;  %v8902_v30 = vld [vmem:[%s11572_s13 + $0x494] ss:$8 sps:$4 sm:$0xff]  }
 0x8cb   :  { %6075 = vmatprep.subr.bf16.mxu1 %v8866_v5  ;;  %v8900_v5 = vld [vmem:[%s11572_s13 + $0x490] ss:$8 sps:$4 sm:$0xff]  }
 0x8ce   :  { %6076 = vmatpush1.bf16.msra.mxu1 %v8864_v18 }
 0x8cf   :  { %6077 = vmatprep.subr.bf16.mxu1 %v8869_v16  ;;  %v8903_v16 = vld [vmem:[%s11572_s13 + $0x4a0] ss:$8 sps:$4 sm:$0xff]  }
 0x8d2   :  { %6078 = vmatpush1.bf16.msra.mxu1 %v8867_v7  ;;  %v8908_v7 = vld [vmem:[%s11572_s13 + $0x4b4] ss:$8 sps:$4 sm:$0xff]  }
 0x8d3   :  { %6079 = vmatprep.subr.bf16.mxu1 %v8872_v9  ;;  %v8911_v9 = vld [vmem:[%s11572_s13 + $0x4c4] ss:$8 sps:$4 sm:$0xff]  }
 0x8d6   :  { %6080 = vmatpush1.bf16.msra.mxu1 %v8870_v33  ;;  %v8917_v33 = vld [vmem:[%s11572_s13 + $0x4e4] ss:$8 sps:$4 sm:$0xff]  }
 0x8d7   :  { %6343 = vmatprep.subr.bf16.mxu1 %v8875_v35  ;;  %v6123_v35 = vld [vmem:[#allocation2 + $0x68] sm:$0x3] }
 0x8d8   :  { %v6127_v42 = vpack.c.bf16 %v6123_v35, %v11275_v55 }
 0x8d9   :  { %6082 = vmatmul.mubr.bf16.vlgmr.msra.gmra.mrb[40].mxu1 %v5848_v54 }
 0x8da   :  { %6091 = vmatprep.mubr.bf16.mxu1 %v5876_v17  ;;  %6344 = vmatpush1.bf16.msra.mxu1 %v8873_v48  ;;  %v6175_v48 = vrot.slane %v6127_v42, 1  ;;  %v6173_v17 = vrot.slane %v6126_v49, 1 }
 0x8db   :  { %6345 = vmatprep.subr.bf16.mxu1 %v8878_v52  ;;  %v6167_v52 = vrot.slane %v6124_v45, 1 }
 0x8dc   :  { %v6176_v55 = vsel %vm2506_vm3, %v6171_v11, %v6175_v48  ;;  %v6174_v0 = vsel %vm2506_vm3, %v6168_v46, %v6173_v17  ;;  %v8933_v11 = vld [vmem:[%s11575_s15 + $0x70] sm:$0xff]  }
 0x8dd   :  { %v6169_v54 = vsel %vm2506_vm3, %v6167_v52, %v6168_v46 }
 0x8de   :  { %6346 = vmatpush1.bf16.msra.mxu1 %v8876_v37 }
 0x8df   :  { %6347 = vmatprep.subr.bf16.mxu1 %v8881_v61 }
 0x8e1   :  { %6092 = vmatmul.mubr.bf16.gmra.mrb[44].mxu1 %v5868_v60  ;;  %v8926_v60 = vld [vmem:[%s11575_s15 + $0x10] sm:$0xff]  }
 0x8e2   :  { %6101 = vmatprep.mubr.bf16.mxu1 %v5882_v40  ;;  %6348 = vmatpush1.bf16.msra.mxu1 %v8879_v62  ;;  %v8923_v62 = vld [vmem:[%s11575_s15 + $0x48] sm:$0xff]   ;;  %v8927_v40 = vld [vmem:[%s11575_s15 + $0x58] sm:$0xff]  }
 0x8e3   :  { %6349 = vmatprep.subr.bf16.mxu1 %v8884_v12  ;;  %7775 = vmatprep.subr.bf16.mxu0 %v8923_v62  ;;  %v8925_v12 = vld [vmem:[%s11575_s15 + $0x50] sm:$0xff]  }
 0x8e4   :  { %7776 = vmatpush3.bf16.msra.mxu0 %v8924_v1 }
 0x8e5   :  { %7777 = vmatprep.subr.bf16.mxu0 %v8925_v12 }
 0x8e6   :  { %6350 = vmatpush1.bf16.msra.mxu1 %v8882_v51  ;;  %v8929_v51 = vld [vmem:[%s11575_s15 + $0x60] sm:$0xff]  }
 0x8e7   :  { %6351 = vmatprep.subr.bf16.mxu1 %v8887_v19  ;;  %v8930_v19 = vld [vmem:[%s11575_s15 + $0x20] sm:$0xff]  }
 0x8e8   :  { %7778 = vmatpush3.bf16.msra.mxu0 %v8926_v60 }
 0x8e9   :  { %6102 = vmatmul.mubr.bf16.gmra.mrb[60].mxu1 %v5879_v22  ;;  %7779 = vmatprep.subr.bf16.mxu0 %v8927_v40  ;;  %v8935_v22 = vld [vmem:[%s11575_s15 + $0x78] sm:$0xff]  }
 0x8ea   :  { %6352 = vmatpush1.bf16.msra.mxu1 %v8885_v20  ;;  %6375 = vmatprep.mubr.bf16.mxu1 %v6172_v53  ;;  %v8934_v20 = vld [vmem:[%s11575_s15 + $0x30] sm:$0xff]  }
 0x8eb   :  { %6353 = vmatprep.subr.bf16.mxu1 %v8890_v10 }
 0x8ec   :  { %7780 = vmatpush3.bf16.msra.mxu0 %v8928_v8 }
 0x8ed   :  { %7781 = vmatprep.subr.bf16.mxu0 %v8929_v51  ;;  %v7756_v51 = vld [vmem:[%s11577_s16] ss:$0 sm:$0xff] }
 0x8ee   :  { %6354 = vmatpush1.bf16.msra.mxu1 %v8888_v13 }
 0x8ef   :  { %6355 = vmatprep.subr.bf16.mxu1 %v8893_v58 }
 0x8f0   :  { %7782 = vmatpush3.bf16.msra.mxu0 %v8930_v19 }
 0x8f1   :  { %7783 = vmatprep.subr.bf16.mxu0 %v8931_v2 }
 0x8f2   :  { %6356 = vmatpush1.bf16.msra.mxu1 %v8891_v23 }
 0x8f3   :  { %6357 = vmatprep.subr.bf16.mxu1 %v8896_v59 }
 0x8f4   :  { %7784 = vmatpush3.bf16.msra.mxu0 %v8932_v21 }
 0x8f5   :  { %7785 = vmatprep.subr.bf16.mxu0 %v8933_v11 }
 0x8f6   :  { %6358 = vmatpush1.bf16.msra.mxu1 %v8894_v25 }
 0x8f7   :  { %6359 = vmatprep.subr.bf16.mxu1 %v8899_v27 }
 0x8f8   :  { %7786 = vmatpush3.bf16.msra.mxu0 %v8934_v20 }
 0x8f9   :  { %7787 = vmatprep.subr.bf16.mxu0 %v8935_v22 }
 0x8fa   :  { %6360 = vmatpush1.bf16.msra.mxu1 %v8897_v29 }
 0x8fb   :  { %6361 = vmatprep.subr.bf16.mxu1 %v8902_v30 }
 0x8fc   :  { %v5264_v18 = vpop.f32.mrb[48].mxu1  ;;  %7788 = vmatpush3.bf16.msra.mxu0 %v8936_v3 }
 0x8fd   :  { %v5266_v28 = vpop.f32.mrb[49].mxu1 }
 0x8fe   :  { %6362 = vmatpush1.bf16.msra.mxu1 %v8900_v5  ;;  %v5268_v14 = vpop.f32.mrb[50].mxu1 }
 0x8ff   :  { %v5269_v24 = vpop.f32.mrb[51].mxu1  ;;  %6363 = vmatprep.subr.bf16.mxu1 %v8905_v63 }
 0x902   :  { %6364 = vmatpush1.bf16.msra.mxu1 %v8903_v16 }
 0x903   :  { %6365 = vmatprep.subr.bf16.mxu1 %v8908_v7 }
 0x906   :  { %6366 = vmatpush1.bf16.msra.mxu1 %v8906_v31 }
 0x907   :  { %6367 = vmatprep.subr.bf16.mxu1 %v8911_v9 }
 0x90a   :  { %6368 = vmatpush1.bf16.msra.mxu1 %v8909_v15 }
 0x90b   :  { %6369 = vmatprep.subr.bf16.mxu1 %v8914_v26 }
 0x90e   :  { %6370 = vmatpush1.bf16.msra.mxu1 %v8912_v32 }
 0x90f   :  { %6371 = vmatprep.subr.bf16.mxu1 %v8917_v33 }
 0x912   :  { %6372 = vmatpush1.bf16.msra.mxu1 %v8915_v34 }
 0x913   :  { %6373 = vmatprep.subr.bf16.mxu1 %v8920_v38 }
 0x916   :  { %6374 = vmatpush1.bf16.msra.mxu1 %v8918_v44 }
 0x919   :  { %6376 = vmatmul.mubr.bf16.vlgmr.msra.gmra.mrb[40].mxu1 %v6169_v54 }
 0x91a   :  { %6385 = vmatprep.mubr.bf16.mxu1 %v6176_v55 }
 0x921   :  { %6386 = vmatmul.mubr.bf16.gmra.mrb[44].mxu1 %v6174_v0 }
 0x922   :  { %6395 = vmatprep.mubr.bf16.mxu1 %v6175_v48 }
 0x929   :  { %6396 = vmatmul.mubr.bf16.gmra.mrb[64].mxu1 %v6173_v17 }
 0x93c   :  { %v5507_v43 = vpop.f32.mrb[52].mxu1 }
 0x93d   :  { %v5508_v37 = vadd.f32 %v5507_v43, %v5264_v18  ;;  %v5509_v61 = vpop.f32.mrb[53].mxu1  ;;  %v6414_v18 = vld [vmem:[%s11576_s14] sm:$0x3] }
 0x93e   :  { %v5510_v56 = vadd.f32 %v5509_v61, %v5266_v28  ;;  %v5511_v41 = vpop.f32.mrb[54].mxu1  ;;  %v6419_v28 = vrot.slane %v6414_v18, %v9511_v4  ;;  %v6423_v14 = vrot.slane %v6414_v18, %v9516_v6 }
 0x93f   :  { %v5512_v57 = vpop.f32.mrb[55].mxu1 }
 0x97c   :  { %v5769_v10 = vpop.f32.mrb[56].mxu1 }
 0x97d   :  { %v5784_v53 = vadd.f32 %v5769_v10, %v5508_v37  ;;  %v5771_v13 = vpop.f32.mrb[57].mxu1 }
 0x97e   :  { %v5785_v58 = vadd.f32 %v5771_v13, %v5510_v56  ;;  %v5773_v23 = vpop.f32.mrb[58].mxu1 }
 0x97f   :  { %v5774_v59 = vpop.f32.mrb[59].mxu1 }
 0x9bc   :  { %v6103_v25 = vpop.f32.mrb[60].mxu1 }
 0x9bd   :  { %v6118_v27 = vadd.f32 %v6103_v25, %v5784_v53  ;;  %v6105_v29 = vpop.f32.mrb[61].mxu1 }
 0x9be   :  { %v6119_v30 = vadd.f32 %v6105_v29, %v5785_v58  ;;  %v6107_v5 = vpop.f32.mrb[62].mxu1 }
 0x9bf   :  { %v6108_v63 = vpop.f32.mrb[63].mxu1 }
 0x9ec   :  { %v6377_v16 = vpop.f32.mrb[40].mxu1 }
 0x9ed   :  { %v6426_v24 = vadd.f32 %v6419_v28, %v6377_v16  ;;  %v6379_v7 = vpop.f32.mrb[41].mxu1 }
 0x9ee   :  { %v6427_v31 = vadd.f32 %v6423_v14, %v6379_v7  ;;  %v6381_v9 = vpop.f32.mrb[42].mxu1 }
 0x9ef   :  { %v6428_v15 = vadd.f32 %v6419_v28, %v6381_v9  ;;  %v6383_v26 = vpop.f32.mrb[43].mxu1  ;;  %v6436_v33 = vmax.f32 %v6426_v24, 0.0 }
 0x9f0   :  { %v6429_v32 = vadd.f32 %v6423_v14, %v6383_v26  ;;  %v6437_v35 = vmax.f32 %v6427_v31, 0.0 }
 0x9f1   :  { %v6438_v34 = vmax.f32 %v6428_v15, 0.0 }
 0x9f2   :  { %v6439_v38 = vmax.f32 %v6429_v32, 0.0 }
 0x9f3   :  { %v6446_v39 = vpack.c.bf16 %v6438_v34, %v6436_v33 }
 0x9f4   :  { %v6447_v42 = vpack.c.bf16 %v6439_v38, %v6437_v35  ;;  %v6387_v44 = vpop.f32.mrb[44].mxu1 }
 0x9f5   :  { %v6430_v45 = vadd.f32 %v6419_v28, %v6387_v44  ;;  %v6389_v46 = vpop.f32.mrb[45].mxu1 }
 0x9f6   :  { %v6431_v4 = vadd.f32 %v6423_v14, %v6389_v46  ;;  %v6391_v48 = vpop.f32.mrb[46].mxu1  ;;  %6619 = vmatprep.mubr.bf16.mxu0 %v6447_v42 }
 0x9f7   :  { %v6432_v6 = vadd.f32 %v6419_v28, %v6391_v48  ;;  %v6393_v50 = vpop.f32.mrb[47].mxu1  ;;  %6620 = vmatmul.mubr.bf16.vlgmr.msra.gmra.mrb[80].mxu0 %v6446_v39  ;;  %v6440_v54 = vmax.f32 %v6430_v45, 0.0 }
 0x9f8   :  { %v6433_v52 = vadd.f32 %v6423_v14, %v6393_v50  ;;  %v6441_v55 = vmax.f32 %v6431_v4, 0.0 }
 0x9f9   :  { %v6442_v49 = vmax.f32 %v6432_v6, 0.0 }
 0x9fa   :  { %v6443_v17 = vmax.f32 %v6433_v52, 0.0 }
 0x9fb   :  { %v6448_v0 = vpack.c.bf16 %v6442_v49, %v6440_v54 }
 0x9fc   :  { %v6449_v43 = vpack.c.bf16 %v6443_v17, %v6441_v55  ;;  %v6397_v37 = vpop.f32.mrb[64].mxu1 }
 0x9fd   :  { %v6412_v61 = vadd.f32 %v6397_v37, %v6118_v27  ;;  %v6399_v56 = vpop.f32.mrb[65].mxu1 }
 0x9fe   :  { %v6413_v41 = vadd.f32 %v6399_v56, %v6119_v30  ;;  %v6401_v57 = vpop.f32.mrb[66].mxu1  ;;  %6627 = vmatprep.mubr.bf16.mxu0 %v6449_v43 }
 0x9ff   :  { %v6434_v36 = vadd.f32 %v6419_v28, %v6412_v61  ;;  %v6402_v47 = vpop.f32.mrb[67].mxu1  ;;  %6628 = vmatmul.mubr.bf16.gmra.mrb[84].mxu0 %v6448_v0 }
 0xa00   :  { %v6435_v62 = vadd.f32 %v6423_v14, %v6413_v41 }
 0xa01   :  { %v6444_v1 = vmax.f32 %v6434_v36, 0.0 }
 0xa02   :  { %v6445_v12 = vmax.f32 %v6435_v62, 0.0 }
 0xa03   :  { %v6450_v40 = vpack.c.bf16 %v6444_v1, %v6444_v1 }
 0xa04   :  { %v6451_v60 = vpack.c.bf16 %v6445_v12, %v6445_v12 }
 0xa06   :  { %6635 = vmatprep.mubr.bf16.mxu0 %v6451_v60 }
 0xa07   :  { %6636 = vmatmul.mubr.bf16.gmra.mrb[88].mxu0 %v6450_v40 }
 0xaca   :  { %v7789_v8 = vpop.f32.mrb[80].mxu0 }
 0xacb   :  { %v7790_v19 = vpop.f32.mrb[81].mxu0 }
 0xacc   :  { %v7791_v2 = vadd.f32 %v7790_v19, %v7789_v8  ;;  %v7792_v21 = vpop.f32.mrb[82].mxu0 }
 0xacd   :  { %v7793_v11 = vpop.f32.mrb[83].mxu0 }
 0xace   :  { %v6622_v20 = vadd.f32 %v7791_v2, %v7756_v51  ;;  %v7794_v22 = vadd.f32 %v7793_v11, %v7792_v21 }
 0xad0   :  { %6643 = vst [vmem:[%s11578_s17] sm:$0xff] %v6622_v20  ;;  %v6625_v3 = vadd.f32 %v7794_v22, %v7756_v51 }
 0xad2   :  { %6644 = vst [vmem:[%s11578_s17 + $0x8] sm:$0xff] %v6625_v3  ;;  %v7795_v10 = vpop.f32.mrb[84].mxu0 }
 0xad3   :  { %v7796_v53 = vpop.f32.mrb[85].mxu0 }
 0xad4   :  { %v7797_v13 = vadd.f32 %v7796_v53, %v7795_v10  ;;  %v7798_v58 = vpop.f32.mrb[86].mxu0 }
 0xad5   :  { %v7799_v23 = vpop.f32.mrb[87].mxu0 }
 0xad6   :  { %v6630_v59 = vadd.f32 %v7797_v13, %v7756_v51  ;;  %v7800_v25 = vadd.f32 %v7799_v23, %v7798_v58 }
 0xad8   :  { %6645 = vst [vmem:[%s11578_s17 + $0x10] sm:$0xff] %v6630_v59  ;;  %v6633_v27 = vadd.f32 %v7800_v25, %v7756_v51 }
 0xada   :  { %6646 = vst [vmem:[%s11578_s17 + $0x18] sm:$0xff] %v6633_v27  ;;  %v7801_v29 = vpop.f32.mrb[88].mxu0 }
 0xadb   :  { %v7802_v30 = vpop.f32.mrb[89].mxu0 }
 0xadc   :  { %v7803_v5 = vadd.f32 %v7802_v30, %v7801_v29  ;;  %v7804_v63 = vpop.f32.mrb[90].mxu0 }
 0xadd   :  { %v7805_v18 = vpop.f32.mrb[91].mxu0 }
 0xade   :  { %v6638_v28 = vadd.f32 %v7803_v5, %v7756_v51 }
 0xae0   :  { %6647 = vst [vmem:[%s11578_s17 + $0x20] sm:$0xff] %v6638_v28 }

</bundles_post_ra>
